<compile_context>
chip_gen: v7x
topology: tpu7x:2x2x1
jax: 0.10.0
libtpu: 0.0.40
codegen_flags: <defaults>
</compile_context>

<pallas_src>
import jax
import jax.numpy as jnp
from jax.experimental import pallas as pl
from jax.experimental.pallas import tpu as pltpu

EPS = 1e-5                      # torch BatchNorm2d default
LANE = 128                      # TPU lane width -> lane-dense channel padding
VMEM_LIMIT = 48 * 1024 * 1024   # explicit scoped-VMEM limit, headroom on v7x


# ------------------------------ glue helpers ------------------------------- #

def _rup(c, m=LANE):
    return ((c + m - 1) // m) * m


def _pad_lanes(x, cp):
    c = x.shape[-1]
    return x if c == cp else jnp.pad(x, [(0, 0)] * (x.ndim - 1) + [(0, cp - c)])


def _pad_vec(v, cp):
    return v if v.shape[0] == cp else jnp.pad(v, (0, cp - v.shape[0]))


def _pad_w(w, cin_p, cout_p):
    # w: (3, 3, cin, cout) HWIO -> zero-pad both channel dims
    _, _, ci, co = w.shape
    return jnp.pad(w, ((0, 0), (0, 0), (0, cin_p - ci), (0, cout_p - co)))


def _row_tile(m, cap=512):
    for t in (1024, 512, 256, 128, 64, 32, 16, 8):
        if t <= cap and m % t == 0:
            return t
    return m


def _maxpool2(x):
    # MaxPool2d(2): 2x2 / stride 2, NHWC, plain XLA (no 4x HBM stack, no kernel)
    a = jnp.maximum(x[:, 0::2, 0::2, :], x[:, 0::2, 1::2, :])
    b = jnp.maximum(x[:, 1::2, 0::2, :], x[:, 1::2, 1::2, :])
    return jnp.maximum(a, b)


# ------------------------------ Pallas kernels ------------------------------ #

def make_conv_s2_stats_kernel(Ho, Wo):
    """3x3 / stride-2 / pad-1 conv from 4 even/odd phase planes + bias.
    Writes conv output (bf16) and per-grid-step (sum, sum_sq) for BN."""
    def kernel(p00, p01, p10, p11, w_ref, b_ref, z_ref, ps_ref):
        planes = {(0, 0): p00, (0, 1): p01, (1, 0): p10, (1, 1): p11}
        acc = None
        for kh in range(3):
            for kw in range(3):
                pr = planes[(kh % 2, kw % 2)]
                tap = pr[0, kh // 2:kh // 2 + Ho, kw // 2:kw // 2 + Wo, :]
                tap = tap.reshape(Ho * Wo, tap.shape[-1])
                c = jnp.dot(tap, w_ref[kh * 3 + kw],
                            preferred_element_type=jnp.float32)
                acc = c if acc is None else acc + c
        z = acc + b_ref[...]
        z_ref[...] = z.astype(z_ref.dtype)
        s = jnp.sum(z, axis=0, keepdims=True)
        ss = jnp.sum(z * z, axis=0, keepdims=True)
        ps_ref[...] = jnp.concatenate([s, ss], axis=0)[None]
    return kernel


def make_conv_s1_cat_stats_kernel(Ho, Wo):
    """3x3 / stride-1 / pad-1 conv over the *virtual* channel concat of two
    spatially padded inputs (K-split matmul) + bias, with BN partial stats."""
    def kernel(a_ref, b_ref, wa_ref, wb_ref, bias_ref, z_ref, ps_ref):
        acc = None
        for kh in range(3):
            for kw in range(3):
                t = kh * 3 + kw
                ta = a_ref[0, kh:kh + Ho, kw:kw + Wo, :]
                ta = ta.reshape(Ho * Wo, ta.shape[-1])
                tb = b_ref[0, kh:kh + Ho, kw:kw + Wo, :]
                tb = tb.reshape(Ho * Wo, tb.shape[-1])
                c = (jnp.dot(ta, wa_ref[t], preferred_element_type=jnp.float32)
                     + jnp.dot(tb, wb_ref[t], preferred_element_type=jnp.float32))
                acc = c if acc is None else acc + c
        z = acc + bias_ref[...]
        z_ref[...] = z.astype(z_ref.dtype)
        s = jnp.sum(z, axis=0, keepdims=True)
        ss = jnp.sum(z * z, axis=0, keepdims=True)
        ps_ref[...] = jnp.concatenate([s, ss], axis=0)[None]
    return kernel


def _bn_relu_kernel(z_ref, sc_ref, sh_ref, o_ref):
    z = z_ref[...].astype(jnp.float32)
    o_ref[...] = jnp.maximum(z * sc_ref[...] + sh_ref[...], 0.0).astype(o_ref.dtype)


# ----------------------------- pallas_call wrappers ------------------------- #

def conv_s2_stats(planes, w, b, *, N, Ho, Wo, Cin_p, Cout_p):
    kernel = make_conv_s2_stats_kernel(Ho, Wo)
    plane_spec = pl.BlockSpec((1, Ho + 1, Wo + 1, Cin_p), lambda n: (n, 0, 0, 0))
    flops = 2 * N * Ho * Wo * 9 * Cin_p * Cout_p
    bytes_acc = (4 * N * (Ho + 1) * (Wo + 1) * Cin_p * 2
                 + 9 * Cin_p * Cout_p * 2 + Cout_p * 4
                 + N * Ho * Wo * Cout_p * 2 + N * 2 * Cout_p * 4)
    return pl.pallas_call(
        kernel,
        out_shape=(jax.ShapeDtypeStruct((N * Ho * Wo, Cout_p), jnp.bfloat16),
                   jax.ShapeDtypeStruct((N, 2, Cout_p), jnp.float32)),
        grid=(N,),
        in_specs=[plane_spec, plane_spec, plane_spec, plane_spec,
                  pl.BlockSpec((9, Cin_p, Cout_p), lambda n: (0, 0, 0)),
                  pl.BlockSpec((1, Cout_p), lambda n: (0, 0))],
        out_specs=(pl.BlockSpec((Ho * Wo, Cout_p), lambda n: (n, 0)),
                   pl.BlockSpec((1, 2, Cout_p), lambda n: (n, 0, 0))),
        compiler_params=pltpu.CompilerParams(
            dimension_semantics=("parallel",), vmem_limit_bytes=VMEM_LIMIT),
        cost_estimate=pl.CostEstimate(flops=flops, transcendentals=0,
                                      bytes_accessed=bytes_acc),
    )(*planes, w, b)


def conv_s1_cat_stats(a, b, wa, wb, bias, *, N, Ho, Wo, Ca_p, Cb_p, Cout_p):
    kernel = make_conv_s1_cat_stats_kernel(Ho, Wo)
    flops = 2 * N * Ho * Wo * 9 * (Ca_p + Cb_p) * Cout_p
    bytes_acc = (N * (Ho + 2) * (Wo + 2) * (Ca_p + Cb_p) * 2
                 + 9 * (Ca_p + Cb_p) * Cout_p * 2 + Cout_p * 4
                 + N * Ho * Wo * Cout_p * 2 + N * 2 * Cout_p * 4)
    return pl.pallas_call(
        kernel,
        out_shape=(jax.ShapeDtypeStruct((N * Ho * Wo, Cout_p), jnp.bfloat16),
                   jax.ShapeDtypeStruct((N, 2, Cout_p), jnp.float32)),
        grid=(N,),
        in_specs=[pl.BlockSpec((1, Ho + 2, Wo + 2, Ca_p), lambda n: (n, 0, 0, 0)),
                  pl.BlockSpec((1, Ho + 2, Wo + 2, Cb_p), lambda n: (n, 0, 0, 0)),
                  pl.BlockSpec((9, Ca_p, Cout_p), lambda n: (0, 0, 0)),
                  pl.BlockSpec((9, Cb_p, Cout_p), lambda n: (0, 0, 0)),
                  pl.BlockSpec((1, Cout_p), lambda n: (0, 0))],
        out_specs=(pl.BlockSpec((Ho * Wo, Cout_p), lambda n: (n, 0)),
                   pl.BlockSpec((1, 2, Cout_p), lambda n: (n, 0, 0))),
        compiler_params=pltpu.CompilerParams(
            dimension_semantics=("parallel",), vmem_limit_bytes=VMEM_LIMIT),
        cost_estimate=pl.CostEstimate(flops=flops, transcendentals=0,
                                      bytes_accessed=bytes_acc),
    )(a, b, wa, wb, bias)


def bn_relu_apply(z, scale, shift, out_dtype):
    """Row-tiled normalize + affine + ReLU. scale/shift are VMEM-resident."""
    M, Cp = z.shape
    TM = _row_tile(M)
    return pl.pallas_call(
        _bn_relu_kernel,
        out_shape=jax.ShapeDtypeStruct((M, Cp), out_dtype),
        grid=(M // TM,),
        in_specs=[pl.BlockSpec((TM, Cp), lambda i: (i, 0)),
                  pl.BlockSpec((1, Cp), lambda i: (0, 0)),
                  pl.BlockSpec((1, Cp), lambda i: (0, 0))],
        out_specs=pl.BlockSpec((TM, Cp), lambda i: (i, 0)),
        compiler_params=pltpu.CompilerParams(
            dimension_semantics=("parallel",), vmem_limit_bytes=VMEM_LIMIT),
    )(z, scale, shift)


def _bn_scale_shift(ps, n_rows, gamma_p, beta_p):
    """Fold per-grid-step (sum, sum_sq) into training-mode BN scale/shift
    (biased variance, eps=1e-5). Tiny per-channel XLA reduction."""
    s = jnp.sum(ps[:, 0, :], axis=0)
    ss = jnp.sum(ps[:, 1, :], axis=0)
    mean = s / n_rows
    var = jnp.maximum(ss / n_rows - mean * mean, 0.0)
    scale = gamma_p * jax.lax.rsqrt(var + EPS)
    shift = beta_p - mean * scale
    return (scale.reshape(1, -1).astype(jnp.float32),
            shift.reshape(1, -1).astype(jnp.float32))


# ------------------------------- forward pass ------------------------------- #

def downsample_block(x_nchw, p):
    """Pallas forward of DownsampleBlock (training-mode BatchNorm, .train())."""
    N, Cin, H, W = x_nchw.shape
    assert H % 2 == 0 and W % 2 == 0
    Ho, Wo = H // 2, W // 2
    C1 = p["w1"].shape[-1]
    Cout = p["w2"].shape[-1]
    assert Cout == C1 + Cin, "module requires out_channels == conv1_out_chan + in_channels"
    Cin_p, C1_p, Cout_p = _rup(Cin), _rup(C1), _rup(Cout)
    M = N * Ho * Wo

    x = jnp.transpose(x_nchw, (0, 2, 3, 1)).astype(jnp.float32)   # NHWC
    xc = _pad_lanes(x, Cin_p)                                     # lane-dense channels

    # ---- branch 1: conv1 (3x3, s=2, p=1) -> BN1 (batch stats) -> ReLU
    xp = jnp.pad(xc, ((0, 0), (1, 1), (1, 1), (0, 0)))
    planes = [xp[:, a::2, b::2, :].astype(jnp.bfloat16)           # 4 phase planes (~1x HBM)
              for a in (0, 1) for b in (0, 1)]                    # (N, Ho+1, Wo+1, Cin_p)
    w1 = _pad_w(p["w1"], Cin_p, C1_p).reshape(9, Cin_p, C1_p).astype(jnp.bfloat16)
    b1 = _pad_vec(p["b1"], C1_p).reshape(1, C1_p).astype(jnp.float32)
    z1, ps1 = conv_s2_stats(planes, w1, b1, N=N, Ho=Ho, Wo=Wo,
                            Cin_p=Cin_p, Cout_p=C1_p)
    sc1, sh1 = _bn_scale_shift(ps1, M, _pad_vec(p["g1"], C1_p), _pad_vec(p["be1"], C1_p))
    out1 = bn_relu_apply(z1, sc1, sh1, jnp.bfloat16)              # (M, C1_p) bf16

    # ---- branch 2: MaxPool2d(2) in glue
    pooled = _maxpool2(xc).astype(jnp.bfloat16)                   # (N, Ho, Wo, Cin_p)

    # ---- conv2 over the *virtual* concat [out1, pooled] via K-split matmul
    a_sp = jnp.pad(out1.reshape(N, Ho, Wo, C1_p), ((0, 0), (1, 1), (1, 1), (0, 0)))
    b_sp = jnp.pad(pooled, ((0, 0), (1, 1), (1, 1), (0, 0)))
    wa = _pad_w(p["w2"][:, :, :C1, :], C1_p, Cout_p).reshape(9, C1_p, Cout_p).astype(jnp.bfloat16)
    wb = _pad_w(p["w2"][:, :, C1:, :], Cin_p, Cout_p).reshape(9, Cin_p, Cout_p).astype(jnp.bfloat16)
    b2 = _pad_vec(p["b2"], Cout_p).reshape(1, Cout_p).astype(jnp.float32)
    z2, ps2 = conv_s1_cat_stats(a_sp, b_sp, wa, wb, b2, N=N, Ho=Ho, Wo=Wo,
                                Ca_p=C1_p, Cb_p=Cin_p, Cout_p=Cout_p)
    sc2, sh2 = _bn_scale_shift(ps2, M, _pad_vec(p["g2"], Cout_p), _pad_vec(p["be2"], Cout_p))
    out = bn_relu_apply(z2, sc2, sh2, jnp.float32)                # (M, Cout_p) f32

    out = out.reshape(N, Ho, Wo, Cout_p)[..., :Cout]
    return jnp.transpose(out, (0, 3, 1, 2))                       # NCHW


# ------------------------- reference / params / main ------------------------ #

def init_params(key, cin, c1, cout):
    ks = jax.random.split(key, 8)
    return {
        "w1": jax.random.normal(ks[0], (3, 3, cin, c1), jnp.float32) / jnp.sqrt(9.0 * cin),
        "b1": 0.05 * jax.random.normal(ks[1], (c1,), jnp.float32),
        "g1": 1.0 + 0.1 * jax.random.normal(ks[2], (c1,), jnp.float32),
        "be1": 0.1 * jax.random.normal(ks[3], (c1,), jnp.float32),
        "w2": jax.random.normal(ks[4], (3, 3, c1 + cin, cout), jnp.float32) / jnp.sqrt(9.0 * (c1 + cin)),
        "b2": 0.05 * jax.random.normal(ks[5], (cout,), jnp.float32),
        "g2": 1.0 + 0.1 * jax.random.normal(ks[6], (cout,), jnp.float32),
        "be2": 0.1 * jax.random.normal(ks[7], (cout,), jnp.float32),
    }


def reference_downsample(x_nchw, p):
    """Pure-XLA f32 reference matching the PyTorch module in train() mode."""
    x = jnp.transpose(x_nchw, (0, 2, 3, 1)).astype(jnp.float32)

    def conv(inp, w, b, stride):
        y = jax.lax.conv_general_dilated(
            inp, w, window_strides=(stride, stride), padding=((1, 1), (1, 1)),
            dimension_numbers=("NHWC", "HWIO", "NHWC"))
        return y + b

    def bn_relu(z, g, be):
        mean = jnp.mean(z, axis=(0, 1, 2))
        var = jnp.mean(jnp.square(z - mean), axis=(0, 1, 2))   # biased, like torch BN
        return jnp.maximum((z - mean) * jax.lax.rsqrt(var + EPS) * g + be, 0.0)

    out1 = bn_relu(conv(x, p["w1"], p["b1"], 2), p["g1"], p["be1"])
    out2 = _maxpool2(x)
    cat = jnp.concatenate([out1, out2], axis=-1)
    out = bn_relu(conv(cat, p["w2"], p["b2"], 1), p["g2"], p["be2"])
    return jnp.transpose(out, (0, 3, 1, 2))


if __name__ == "__main__":
    key = jax.random.PRNGKey(0)
    kp, kx = jax.random.split(key)

    N, Cin, H, W = 2, 32, 16, 16          # DownsampleBlock(32, 32, 64), small input
    C1, Cout = 32, 64
    params = init_params(kp, Cin, C1, Cout)
    x = jax.random.normal(kx, (N, Cin, H, W), jnp.float32)

    fwd = jax.jit(downsample_block)
    out = fwd(x, params)
    jax.block_until_ready(out)

    assert out.shape == (N, Cout, H // 2, W // 2), out.shape
    assert bool(jnp.all(jnp.isfinite(out)))

    ref = jax.jit(reference_downsample)(x, params)
    err = float(jnp.max(jnp.abs(out - ref)))
    assert err < 0.15, f"max |err| vs f32 reference = {err}"   # bf16-matmul tolerance

    print("KERNEL_OK")
</pallas_src>

<mosaic_0001>
module attributes {stable_mosaic.version = 11 : i64} {
  func.func @_bn_relu_kernel(%arg0: i32, %arg1: memref<128x128xbf16, #tpu.memory_space<vmem>>, %arg2: memref<1x128xf32, #tpu.memory_space<vmem>>, %arg3: memref<1x128xf32, #tpu.memory_space<vmem>>, %arg4: memref<128x128xbf16, #tpu.memory_space<vmem>>) attributes {dimension_semantics = [#tpu.dimension_semantics<parallel>], iteration_bounds = array<i64: 1>, scalar_prefetch = 0 : i64, scratch_operands = 0 : i64, tpu.core_type = #tpu.core_type<tc>, window_params = [{transform_indices = @transform_0, window_bounds = array<i64: 128, 128>}, {pipeline_mode = #tpu.pipeline_mode<synchronous>, transform_indices = @transform_1, window_bounds = array<i64: 1, 128>}, {pipeline_mode = #tpu.pipeline_mode<synchronous>, transform_indices = @transform_2, window_bounds = array<i64: 1, 128>}, {transform_indices = @transform_3, window_bounds = array<i64: 128, 128>}]} {
    %c0 = arith.constant 0 : index
    %c0_0 = arith.constant 0 : index
    %0 = vector.load %arg1[%c0, %c0_0] : memref<128x128xbf16, #tpu.memory_space<vmem>>, vector<128x128xbf16>
    %1 = arith.extf %0 : vector<128x128xbf16> to vector<128x128xf32>
    %c0_1 = arith.constant 0 : index
    %c0_2 = arith.constant 0 : index
    %2 = vector.load %arg2[%c0_1, %c0_2] : memref<1x128xf32, #tpu.memory_space<vmem>>, vector<1x128xf32>
    %3 = vector.broadcast %2 : vector<1x128xf32> to vector<128x128xf32>
    %4 = arith.mulf %1, %3 : vector<128x128xf32>
    %c0_3 = arith.constant 0 : index
    %c0_4 = arith.constant 0 : index
    %5 = vector.load %arg3[%c0_3, %c0_4] : memref<1x128xf32, #tpu.memory_space<vmem>>, vector<1x128xf32>
    %6 = vector.broadcast %5 : vector<1x128xf32> to vector<128x128xf32>
    %7 = arith.addf %4, %6 : vector<128x128xf32>
    %cst = arith.constant 0.000000e+00 : f32
    %8 = vector.broadcast %cst : f32 to vector<128x128xf32>
    %9 = arith.maximumf %7, %8 : vector<128x128xf32>
    %10 = arith.truncf %9 : vector<128x128xf32> to vector<128x128xbf16>
    %c0_5 = arith.constant 0 : index
    %c0_6 = arith.constant 0 : index
    %11 = vector.load %arg4[%c0_5, %c0_6] : memref<128x128xbf16, #tpu.memory_space<vmem>>, vector<128x128xbf16>
    tpu.vector_store %arg4[%c0_5, %c0_6], %10 {strides = array<i32>} : memref<128x128xbf16, #tpu.memory_space<vmem>>, vector<128x128xbf16>,
    return
  }
  func.func @transform_0(%arg0: i32) -> (i32, i32) {
    %c0_i32 = arith.constant 0 : i32
    %c0_i32_0 = arith.constant 0 : i32
    return %arg0, %c0_i32 : i32, i32
  }
  func.func @transform_1(%arg0: i32) -> (i32, i32) {
    %c0_i32 = arith.constant 0 : i32
    %c0_i32_0 = arith.constant 0 : i32
    %c0_i32_1 = arith.constant 0 : i32
    return %c0_i32, %c0_i32_0 : i32, i32
  }
  func.func @transform_2(%arg0: i32) -> (i32, i32) {
    %c0_i32 = arith.constant 0 : i32
    %c0_i32_0 = arith.constant 0 : i32
    %c0_i32_1 = arith.constant 0 : i32
    return %c0_i32, %c0_i32_0 : i32, i32
  }
  func.func @transform_3(%arg0: i32) -> (i32, i32) {
    %c0_i32 = arith.constant 0 : i32
    %c0_i32_0 = arith.constant 0 : i32
    return %arg0, %c0_i32 : i32, i32
  }
}

module attributes {stable_mosaic.version = 11 : i64} {
  func.func @kernel(%arg0: i32, %arg1: memref<1x9x9x128xbf16, #tpu.memory_space<vmem>>, %arg2: memref<1x9x9x128xbf16, #tpu.memory_space<vmem>>, %arg3: memref<1x9x9x128xbf16, #tpu.memory_space<vmem>>, %arg4: memref<1x9x9x128xbf16, #tpu.memory_space<vmem>>, %arg5: memref<9x128x128xbf16, #tpu.memory_space<vmem>>, %arg6: memref<1x128xf32, #tpu.memory_space<vmem>>, %arg7: memref<64x128xbf16, #tpu.memory_space<vmem>>, %arg8: memref<1x2x128xf32, #tpu.memory_space<vmem>>) attributes {dimension_semantics = [#tpu.dimension_semantics<parallel>], iteration_bounds = array<i64: 2>, scalar_prefetch = 0 : i64, scratch_operands = 0 : i64, tpu.core_type = #tpu.core_type<tc>, window_params = [{transform_indices = @transform_0, window_bounds = array<i64: 1, 9, 9, 128>}, {transform_indices = @transform_1, window_bounds = array<i64: 1, 9, 9, 128>}, {transform_indices = @transform_2, window_bounds = array<i64: 1, 9, 9, 128>}, {transform_indices = @transform_3, window_bounds = array<i64: 1, 9, 9, 128>}, {pipeline_mode = #tpu.pipeline_mode<synchronous>, transform_indices = @transform_4, window_bounds = array<i64: 9, 128, 128>}, {pipeline_mode = #tpu.pipeline_mode<synchronous>, transform_indices = @transform_5, window_bounds = array<i64: 1, 128>}, {transform_indices = @transform_6, window_bounds = array<i64: 64, 128>}, {transform_indices = @transform_7, window_bounds = array<i64: 1, 2, 128>}]} {
    %c0 = arith.constant 0 : index
    %c0_0 = arith.constant 0 : index
    %c0_1 = arith.constant 0 : index
    %c0_2 = arith.constant 0 : index
    %0 = vector.load %arg1[%c0, %c0_0, %c0_1, %c0_2] : memref<1x9x9x128xbf16, #tpu.memory_space<vmem>>, vector<1x8x8x128xbf16>
    %1 = vector.shape_cast %0 : vector<1x8x8x128xbf16> to vector<8x8x128xbf16>
    %2 = vector.shape_cast %1 : vector<8x8x128xbf16> to vector<64x128xbf16>
    %c0_3 = arith.constant 0 : index
    %c0_4 = arith.constant 0 : index
    %c0_5 = arith.constant 0 : index
    %3 = vector.load %arg5[%c0_3, %c0_4, %c0_5] : memref<9x128x128xbf16, #tpu.memory_space<vmem>>, vector<1x128x128xbf16>
    %4 = vector.shape_cast %3 : vector<1x128x128xbf16> to vector<128x128xbf16>
    %cst = arith.constant dense<0.000000e+00> : vector<64x128xf32>
    %5 = tpu.matmul %2, %4, %cst {dimension_numbers = #tpu.dot_dimension_numbers<[1], [0], [0], [1], [0, 0, 1, 1], [], []>} : vector<64x128xbf16>, vector<128x128xbf16>, vector<64x128xf32> -> vector<64x128xf32>
    %c0_6 = arith.constant 0 : index
    %c0_7 = arith.constant 0 : index
    %c0_8 = arith.constant 0 : index
    %c0_9 = arith.constant 0 : index
    %6 = vector.load %arg2[%c0_6, %c0_7, %c0_8, %c0_9] : memref<1x9x9x128xbf16, #tpu.memory_space<vmem>>, vector<1x8x8x128xbf16>
    %7 = vector.shape_cast %6 : vector<1x8x8x128xbf16> to vector<8x8x128xbf16>
    %8 = vector.shape_cast %7 : vector<8x8x128xbf16> to vector<64x128xbf16>
    %c1 = arith.constant 1 : index
    %c0_10 = arith.constant 0 : index
    %c0_11 = arith.constant 0 : index
    %9 = vector.load %arg5[%c1, %c0_10, %c0_11] : memref<9x128x128xbf16, #tpu.memory_space<vmem>>, vector<1x128x128xbf16>
    %10 = vector.shape_cast %9 : vector<1x128x128xbf16> to vector<128x128xbf16>
    %cst_12 = arith.constant dense<0.000000e+00> : vector<64x128xf32>
    %11 = tpu.matmul %8, %10, %cst_12 {dimension_numbers = #tpu.dot_dimension_numbers<[1], [0], [0], [1], [0, 0, 1, 1], [], []>} : vector<64x128xbf16>, vector<128x128xbf16>, vector<64x128xf32> -> vector<64x128xf32>
    %12 = arith.addf %5, %11 : vector<64x128xf32>
    %c0_13 = arith.constant 0 : index
    %c0_14 = arith.constant 0 : index
    %c1_15 = arith.constant 1 : index
    %c0_16 = arith.constant 0 : index
    %13 = vector.load %arg1[%c0_13, %c0_14, %c1_15, %c0_16] : memref<1x9x9x128xbf16, #tpu.memory_space<vmem>>, vector<1x8x8x128xbf16>
    %14 = vector.shape_cast %13 : vector<1x8x8x128xbf16> to vector<8x8x128xbf16>
    %15 = vector.shape_cast %14 : vector<8x8x128xbf16> to vector<64x128xbf16>
    %c2 = arith.constant 2 : index
    %c0_17 = arith.constant 0 : index
    %c0_18 = arith.constant 0 : index
    %16 = vector.load %arg5[%c2, %c0_17, %c0_18] : memref<9x128x128xbf16, #tpu.memory_space<vmem>>, vector<1x128x128xbf16>
    %17 = vector.shape_cast %16 : vector<1x128x128xbf16> to vector<128x128xbf16>
    %cst_19 = arith.constant dense<0.000000e+00> : vector<64x128xf32>
    %18 = tpu.matmul %15, %17, %cst_19 {dimension_numbers = #tpu.dot_dimension_numbers<[1], [0], [0], [1], [0, 0, 1, 1], [], []>} : vector<64x128xbf16>, vector<128x128xbf16>, vector<64x128xf32> -> vector<64x128xf32>
    %19 = arith.addf %12, %18 : vector<64x128xf32>
    %c0_20 = arith.constant 0 : index
    %c0_21 = arith.constant 0 : index
    %c0_22 = arith.constant 0 : index
    %c0_23 = arith.constant 0 : index
    %20 = vector.load %arg3[%c0_20, %c0_21, %c0_22, %c0_23] : memref<1x9x9x128xbf16, #tpu.memory_space<vmem>>, vector<1x8x8x128xbf16>
    %21 = vector.shape_cast %20 : vector<1x8x8x128xbf16> to vector<8x8x128xbf16>
    %22 = vector.shape_cast %21 : vector<8x8x128xbf16> to vector<64x128xbf16>
    %c3 = arith.constant 3 : index
    %c0_24 = arith.constant 0 : index
    %c0_25 = arith.constant 0 : index
    %23 = vector.load %arg5[%c3, %c0_24, %c0_25] : memref<9x128x128xbf16, #tpu.memory_space<vmem>>, vector<1x128x128xbf16>
    %24 = vector.shape_cast %23 : vector<1x128x128xbf16> to vector<128x128xbf16>
    %cst_26 = arith.constant dense<0.000000e+00> : vector<64x128xf32>
    %25 = tpu.matmul %22, %24, %cst_26 {dimension_numbers = #tpu.dot_dimension_numbers<[1], [0], [0], [1], [0, 0, 1, 1], [], []>} : vector<64x128xbf16>, vector<128x128xbf16>, vector<64x128xf32> -> vector<64x128xf32>
    %26 = arith.addf %19, %25 : vector<64x128xf32>
    %c0_27 = arith.constant 0 : index
    %c0_28 = arith.constant 0 : index
    %c0_29 = arith.constant 0 : index
    %c0_30 = arith.constant 0 : index
    %27 = vector.load %arg4[%c0_27, %c0_28, %c0_29, %c0_30] : memref<1x9x9x128xbf16, #tpu.memory_space<vmem>>, vector<1x8x8x128xbf16>
    %28 = vector.shape_cast %27 : vector<1x8x8x128xbf16> to vector<8x8x128xbf16>
    %29 = vector.shape_cast %28 : vector<8x8x128xbf16> to vector<64x128xbf16>
    %c4 = arith.constant 4 : index
    %c0_31 = arith.constant 0 : index
    %c0_32 = arith.constant 0 : index
    %30 = vector.load %arg5[%c4, %c0_31, %c0_32] : memref<9x128x128xbf16, #tpu.memory_space<vmem>>, vector<1x128x128xbf16>
    %31 = vector.shape_cast %30 : vector<1x128x128xbf16> to vector<128x128xbf16>
    %cst_33 = arith.constant dense<0.000000e+00> : vector<64x128xf32>
    %32 = tpu.matmul %29, %31, %cst_33 {dimension_numbers = #tpu.dot_dimension_numbers<[1], [0], [0], [1], [0, 0, 1, 1], [], []>} : vector<64x128xbf16>, vector<128x128xbf16>, vector<64x128xf32> -> vector<64x128xf32>
    %33 = arith.addf %26, %32 : vector<64x128xf32>
    %c0_34 = arith.constant 0 : index
    %c0_35 = arith.constant 0 : index
    %c1_36 = arith.constant 1 : index
    %c0_37 = arith.constant 0 : index
    %34 = vector.load %arg3[%c0_34, %c0_35, %c1_36, %c0_37] : memref<1x9x9x128xbf16, #tpu.memory_space<vmem>>, vector<1x8x8x128xbf16>
    %35 = vector.shape_cast %34 : vector<1x8x8x128xbf16> to vector<8x8x128xbf16>
    %36 = vector.shape_cast %35 : vector<8x8x128xbf16> to vector<64x128xbf16>
    %c5 = arith.constant 5 : index
    %c0_38 = arith.constant 0 : index
    %c0_39 = arith.constant 0 : index
    %37 = vector.load %arg5[%c5, %c0_38, %c0_39] : memref<9x128x128xbf16, #tpu.memory_space<vmem>>, vector<1x128x128xbf16>
    %38 = vector.shape_cast %37 : vector<1x128x128xbf16> to vector<128x128xbf16>
    %cst_40 = arith.constant dense<0.000000e+00> : vector<64x128xf32>
    %39 = tpu.matmul %36, %38, %cst_40 {dimension_numbers = #tpu.dot_dimension_numbers<[1], [0], [0], [1], [0, 0, 1, 1], [], []>} : vector<64x128xbf16>, vector<128x128xbf16>, vector<64x128xf32> -> vector<64x128xf32>
    %40 = arith.addf %33, %39 : vector<64x128xf32>
    %c0_41 = arith.constant 0 : index
    %c1_42 = arith.constant 1 : index
    %c0_43 = arith.constant 0 : index
    %c0_44 = arith.constant 0 : index
    %41 = vector.load %arg1[%c0_41, %c1_42, %c0_43, %c0_44] : memref<1x9x9x128xbf16, #tpu.memory_space<vmem>>, vector<1x8x8x128xbf16>
    %42 = vector.shape_cast %41 : vector<1x8x8x128xbf16> to vector<8x8x128xbf16>
    %43 = vector.shape_cast %42 : vector<8x8x128xbf16> to vector<64x128xbf16>
    %c6 = arith.constant 6 : index
    %c0_45 = arith.constant 0 : index
    %c0_46 = arith.constant 0 : index
    %44 = vector.load %arg5[%c6, %c0_45, %c0_46] : memref<9x128x128xbf16, #tpu.memory_space<vmem>>, vector<1x128x128xbf16>
    %45 = vector.shape_cast %44 : vector<1x128x128xbf16> to vector<128x128xbf16>
    %cst_47 = arith.constant dense<0.000000e+00> : vector<64x128xf32>
    %46 = tpu.matmul %43, %45, %cst_47 {dimension_numbers = #tpu.dot_dimension_numbers<[1], [0], [0], [1], [0, 0, 1, 1], [], []>} : vector<64x128xbf16>, vector<128x128xbf16>, vector<64x128xf32> -> vector<64x128xf32>
    %47 = arith.addf %40, %46 : vector<64x128xf32>
    %c0_48 = arith.constant 0 : index
    %c1_49 = arith.constant 1 : index
    %c0_50 = arith.constant 0 : index
    %c0_51 = arith.constant 0 : index
    %48 = vector.load %arg2[%c0_48, %c1_49, %c0_50, %c0_51] : memref<1x9x9x128xbf16, #tpu.memory_space<vmem>>, vector<1x8x8x128xbf16>
    %49 = vector.shape_cast %48 : vector<1x8x8x128xbf16> to vector<8x8x128xbf16>
    %50 = vector.shape_cast %49 : vector<8x8x128xbf16> to vector<64x128xbf16>
    %c7 = arith.constant 7 : index
    %c0_52 = arith.constant 0 : index
    %c0_53 = arith.constant 0 : index
    %51 = vector.load %arg5[%c7, %c0_52, %c0_53] : memref<9x128x128xbf16, #tpu.memory_space<vmem>>, vector<1x128x128xbf16>
    %52 = vector.shape_cast %51 : vector<1x128x128xbf16> to vector<128x128xbf16>
    %cst_54 = arith.constant dense<0.000000e+00> : vector<64x128xf32>
    %53 = tpu.matmul %50, %52, %cst_54 {dimension_numbers = #tpu.dot_dimension_numbers<[1], [0], [0], [1], [0, 0, 1, 1], [], []>} : vector<64x128xbf16>, vector<128x128xbf16>, vector<64x128xf32> -> vector<64x128xf32>
    %54 = arith.addf %47, %53 : vector<64x128xf32>
    %c0_55 = arith.constant 0 : index
    %c1_56 = arith.constant 1 : index
    %c1_57 = arith.constant 1 : index
    %c0_58 = arith.constant 0 : index
    %55 = vector.load %arg1[%c0_55, %c1_56, %c1_57, %c0_58] : memref<1x9x9x128xbf16, #tpu.memory_space<vmem>>, vector<1x8x8x128xbf16>
    %56 = vector.shape_cast %55 : vector<1x8x8x128xbf16> to vector<8x8x128xbf16>
    %57 = vector.shape_cast %56 : vector<8x8x128xbf16> to vector<64x128xbf16>
    %c8 = arith.constant 8 : index
    %c0_59 = arith.constant 0 : index
    %c0_60 = arith.constant 0 : index
    %58 = vector.load %arg5[%c8, %c0_59, %c0_60] : memref<9x128x128xbf16, #tpu.memory_space<vmem>>, vector<1x128x128xbf16>
    %59 = vector.shape_cast %58 : vector<1x128x128xbf16> to vector<128x128xbf16>
    %cst_61 = arith.constant dense<0.000000e+00> : vector<64x128xf32>
    %60 = tpu.matmul %57, %59, %cst_61 {dimension_numbers = #tpu.dot_dimension_numbers<[1], [0], [0], [1], [0, 0, 1, 1], [], []>} : vector<64x128xbf16>, vector<128x128xbf16>, vector<64x128xf32> -> vector<64x128xf32>
    %61 = arith.addf %54, %60 : vector<64x128xf32>
    %c0_62 = arith.constant 0 : index
    %c0_63 = arith.constant 0 : index
    %62 = vector.load %arg6[%c0_62, %c0_63] : memref<1x128xf32, #tpu.memory_space<vmem>>, vector<1x128xf32>
    %63 = vector.broadcast %62 : vector<1x128xf32> to vector<64x128xf32>
    %64 = arith.addf %61, %63 : vector<64x128xf32>
    %65 = arith.truncf %64 : vector<64x128xf32> to vector<64x128xbf16>
    %c0_64 = arith.constant 0 : index
    %c0_65 = arith.constant 0 : index
    %66 = vector.load %arg7[%c0_64, %c0_65] : memref<64x128xbf16, #tpu.memory_space<vmem>>, vector<64x128xbf16>
    tpu.vector_store %arg7[%c0_64, %c0_65], %65 {strides = array<i32>} : memref<64x128xbf16, #tpu.memory_space<vmem>>, vector<64x128xbf16>,
    %cst_66 = arith.constant dense<0.000000e+00> : vector<128xf32>
    %67 = vector.multi_reduction <add>, %64, %cst_66 [0] : vector<64x128xf32> to vector<128xf32>
    %68 = vector.shape_cast %67 : vector<128xf32> to vector<1x128xf32>
    %69 = arith.mulf %64, %64 : vector<64x128xf32>
    %cst_67 = arith.constant dense<0.000000e+00> : vector<128xf32>
    %70 = vector.multi_reduction <add>, %69, %cst_67 [0] : vector<64x128xf32> to vector<128xf32>
    %71 = vector.shape_cast %70 : vector<128xf32> to vector<1x128xf32>
    %72 = tpu.concatenate %68, %71 in 0 : vector<1x128xf32>, vector<1x128xf32> -> vector<2x128xf32>
    %73 = vector.shape_cast %72 : vector<2x128xf32> to vector<1x2x128xf32>
    %c0_68 = arith.constant 0 : index
    %c0_69 = arith.constant 0 : index
    %c0_70 = arith.constant 0 : index
    %74 = vector.load %arg8[%c0_68, %c0_69, %c0_70] : memref<1x2x128xf32, #tpu.memory_space<vmem>>, vector<1x2x128xf32>
    tpu.vector_store %arg8[%c0_68, %c0_69, %c0_70], %73 {strides = array<i32>} : memref<1x2x128xf32, #tpu.memory_space<vmem>>, vector<1x2x128xf32>,
    return
  }
  func.func @transform_0(%arg0: i32) -> (i32, i32, i32, i32) {
    %c0_i32 = arith.constant 0 : i32
    %c0_i32_0 = arith.constant 0 : i32
    %c0_i32_1 = arith.constant 0 : i32
    %c0_i32_2 = arith.constant 0 : i32
    return %arg0, %c0_i32, %c0_i32_0, %c0_i32_1 : i32, i32, i32, i32
  }
  func.func @transform_1(%arg0: i32) -> (i32, i32, i32, i32) {
    %c0_i32 = arith.constant 0 : i32
    %c0_i32_0 = arith.constant 0 : i32
    %c0_i32_1 = arith.constant 0 : i32
    %c0_i32_2 = arith.constant 0 : i32
    return %arg0, %c0_i32, %c0_i32_0, %c0_i32_1 : i32, i32, i32, i32
  }
  func.func @transform_2(%arg0: i32) -> (i32, i32, i32, i32) {
    %c0_i32 = arith.constant 0 : i32
    %c0_i32_0 = arith.constant 0 : i32
    %c0_i32_1 = arith.constant 0 : i32
    %c0_i32_2 = arith.constant 0 : i32
    return %arg0, %c0_i32, %c0_i32_0, %c0_i32_1 : i32, i32, i32, i32
  }
  func.func @transform_3(%arg0: i32) -> (i32, i32, i32, i32) {
    %c0_i32 = arith.constant 0 : i32
    %c0_i32_0 = arith.constant 0 : i32
    %c0_i32_1 = arith.constant 0 : i32
    %c0_i32_2 = arith.constant 0 : i32
    return %arg0, %c0_i32, %c0_i32_0, %c0_i32_1 : i32, i32, i32, i32
  }
  func.func @transform_4(%arg0: i32) -> (i32, i32, i32) {
    %c0_i32 = arith.constant 0 : i32
    %c0_i32_0 = arith.constant 0 : i32
    %c0_i32_1 = arith.constant 0 : i32
    %c0_i32_2 = arith.constant 0 : i32
    return %c0_i32, %c0_i32_0, %c0_i32_1 : i32, i32, i32
  }
  func.func @transform_5(%arg0: i32) -> (i32, i32) {
    %c0_i32 = arith.constant 0 : i32
    %c0_i32_0 = arith.constant 0 : i32
    %c0_i32_1 = arith.constant 0 : i32
    return %c0_i32, %c0_i32_0 : i32, i32
  }
  func.func @transform_6(%arg0: i32) -> (i32, i32) {
    %c0_i32 = arith.constant 0 : i32
    %c0_i32_0 = arith.constant 0 : i32
    return %arg0, %c0_i32 : i32, i32
  }
  func.func @transform_7(%arg0: i32) -> (i32, i32, i32) {
    %c0_i32 = arith.constant 0 : i32
    %c0_i32_0 = arith.constant 0 : i32
    %c0_i32_1 = arith.constant 0 : i32
    return %arg0, %c0_i32, %c0_i32_0 : i32, i32, i32
  }
}

module attributes {stable_mosaic.version = 11 : i64} {
  func.func @kernel(%arg0: i32, %arg1: memref<1x10x10x128xbf16, #tpu.memory_space<vmem>>, %arg2: memref<1x10x10x128xbf16, #tpu.memory_space<vmem>>, %arg3: memref<9x128x128xbf16, #tpu.memory_space<vmem>>, %arg4: memref<9x128x128xbf16, #tpu.memory_space<vmem>>, %arg5: memref<1x128xf32, #tpu.memory_space<vmem>>, %arg6: memref<64x128xbf16, #tpu.memory_space<vmem>>, %arg7: memref<1x2x128xf32, #tpu.memory_space<vmem>>) attributes {dimension_semantics = [#tpu.dimension_semantics<parallel>], iteration_bounds = array<i64: 2>, scalar_prefetch = 0 : i64, scratch_operands = 0 : i64, tpu.core_type = #tpu.core_type<tc>, window_params = [{transform_indices = @transform_0, window_bounds = array<i64: 1, 10, 10, 128>}, {transform_indices = @transform_1, window_bounds = array<i64: 1, 10, 10, 128>}, {pipeline_mode = #tpu.pipeline_mode<synchronous>, transform_indices = @transform_2, window_bounds = array<i64: 9, 128, 128>}, {pipeline_mode = #tpu.pipeline_mode<synchronous>, transform_indices = @transform_3, window_bounds = array<i64: 9, 128, 128>}, {pipeline_mode = #tpu.pipeline_mode<synchronous>, transform_indices = @transform_4, window_bounds = array<i64: 1, 128>}, {transform_indices = @transform_5, window_bounds = array<i64: 64, 128>}, {transform_indices = @transform_6, window_bounds = array<i64: 1, 2, 128>}]} {
    %c0 = arith.constant 0 : index
    %c0_0 = arith.constant 0 : index
    %c0_1 = arith.constant 0 : index
    %c0_2 = arith.constant 0 : index
    %0 = vector.load %arg1[%c0, %c0_0, %c0_1, %c0_2] : memref<1x10x10x128xbf16, #tpu.memory_space<vmem>>, vector<1x8x8x128xbf16>
    %1 = vector.shape_cast %0 : vector<1x8x8x128xbf16> to vector<8x8x128xbf16>
    %2 = vector.shape_cast %1 : vector<8x8x128xbf16> to vector<64x128xbf16>
    %c0_3 = arith.constant 0 : index
    %c0_4 = arith.constant 0 : index
    %c0_5 = arith.constant 0 : index
    %c0_6 = arith.constant 0 : index
    %3 = vector.load %arg2[%c0_3, %c0_4, %c0_5, %c0_6] : memref<1x10x10x128xbf16, #tpu.memory_space<vmem>>, vector<1x8x8x128xbf16>
    %4 = vector.shape_cast %3 : vector<1x8x8x128xbf16> to vector<8x8x128xbf16>
    %5 = vector.shape_cast %4 : vector<8x8x128xbf16> to vector<64x128xbf16>
    %c0_7 = arith.constant 0 : index
    %c0_8 = arith.constant 0 : index
    %c0_9 = arith.constant 0 : index
    %6 = vector.load %arg3[%c0_7, %c0_8, %c0_9] : memref<9x128x128xbf16, #tpu.memory_space<vmem>>, vector<1x128x128xbf16>
    %7 = vector.shape_cast %6 : vector<1x128x128xbf16> to vector<128x128xbf16>
    %cst = arith.constant dense<0.000000e+00> : vector<64x128xf32>
    %8 = tpu.matmul %2, %7, %cst {dimension_numbers = #tpu.dot_dimension_numbers<[1], [0], [0], [1], [0, 0, 1, 1], [], []>} : vector<64x128xbf16>, vector<128x128xbf16>, vector<64x128xf32> -> vector<64x128xf32>
    %c0_10 = arith.constant 0 : index
    %c0_11 = arith.constant 0 : index
    %c0_12 = arith.constant 0 : index
    %9 = vector.load %arg4[%c0_10, %c0_11, %c0_12] : memref<9x128x128xbf16, #tpu.memory_space<vmem>>, vector<1x128x128xbf16>
    %10 = vector.shape_cast %9 : vector<1x128x128xbf16> to vector<128x128xbf16>
    %cst_13 = arith.constant dense<0.000000e+00> : vector<64x128xf32>
    %11 = tpu.matmul %5, %10, %cst_13 {dimension_numbers = #tpu.dot_dimension_numbers<[1], [0], [0], [1], [0, 0, 1, 1], [], []>} : vector<64x128xbf16>, vector<128x128xbf16>, vector<64x128xf32> -> vector<64x128xf32>
    %12 = arith.addf %8, %11 : vector<64x128xf32>
    %c0_14 = arith.constant 0 : index
    %c0_15 = arith.constant 0 : index
    %c1 = arith.constant 1 : index
    %c0_16 = arith.constant 0 : index
    %13 = vector.load %arg1[%c0_14, %c0_15, %c1, %c0_16] : memref<1x10x10x128xbf16, #tpu.memory_space<vmem>>, vector<1x8x8x128xbf16>
    %14 = vector.shape_cast %13 : vector<1x8x8x128xbf16> to vector<8x8x128xbf16>
    %15 = vector.shape_cast %14 : vector<8x8x128xbf16> to vector<64x128xbf16>
    %c0_17 = arith.constant 0 : index
    %c0_18 = arith.constant 0 : index
    %c1_19 = arith.constant 1 : index
    %c0_20 = arith.constant 0 : index
    %16 = vector.load %arg2[%c0_17, %c0_18, %c1_19, %c0_20] : memref<1x10x10x128xbf16, #tpu.memory_space<vmem>>, vector<1x8x8x128xbf16>
    %17 = vector.shape_cast %16 : vector<1x8x8x128xbf16> to vector<8x8x128xbf16>
    %18 = vector.shape_cast %17 : vector<8x8x128xbf16> to vector<64x128xbf16>
    %c1_21 = arith.constant 1 : index
    %c0_22 = arith.constant 0 : index
    %c0_23 = arith.constant 0 : index
    %19 = vector.load %arg3[%c1_21, %c0_22, %c0_23] : memref<9x128x128xbf16, #tpu.memory_space<vmem>>, vector<1x128x128xbf16>
    %20 = vector.shape_cast %19 : vector<1x128x128xbf16> to vector<128x128xbf16>
    %cst_24 = arith.constant dense<0.000000e+00> : vector<64x128xf32>
    %21 = tpu.matmul %15, %20, %cst_24 {dimension_numbers = #tpu.dot_dimension_numbers<[1], [0], [0], [1], [0, 0, 1, 1], [], []>} : vector<64x128xbf16>, vector<128x128xbf16>, vector<64x128xf32> -> vector<64x128xf32>
    %c1_25 = arith.constant 1 : index
    %c0_26 = arith.constant 0 : index
    %c0_27 = arith.constant 0 : index
    %22 = vector.load %arg4[%c1_25, %c0_26, %c0_27] : memref<9x128x128xbf16, #tpu.memory_space<vmem>>, vector<1x128x128xbf16>
    %23 = vector.shape_cast %22 : vector<1x128x128xbf16> to vector<128x128xbf16>
    %cst_28 = arith.constant dense<0.000000e+00> : vector<64x128xf32>
    %24 = tpu.matmul %18, %23, %cst_28 {dimension_numbers = #tpu.dot_dimension_numbers<[1], [0], [0], [1], [0, 0, 1, 1], [], []>} : vector<64x128xbf16>, vector<128x128xbf16>, vector<64x128xf32> -> vector<64x128xf32>
    %25 = arith.addf %21, %24 : vector<64x128xf32>
    %26 = arith.addf %12, %25 : vector<64x128xf32>
    %c0_29 = arith.constant 0 : index
    %c0_30 = arith.constant 0 : index
    %c2 = arith.constant 2 : index
    %c0_31 = arith.constant 0 : index
    %27 = vector.load %arg1[%c0_29, %c0_30, %c2, %c0_31] : memref<1x10x10x128xbf16, #tpu.memory_space<vmem>>, vector<1x8x8x128xbf16>
    %28 = vector.shape_cast %27 : vector<1x8x8x128xbf16> to vector<8x8x128xbf16>
    %29 = vector.shape_cast %28 : vector<8x8x128xbf16> to vector<64x128xbf16>
    %c0_32 = arith.constant 0 : index
    %c0_33 = arith.constant 0 : index
    %c2_34 = arith.constant 2 : index
    %c0_35 = arith.constant 0 : index
    %30 = vector.load %arg2[%c0_32, %c0_33, %c2_34, %c0_35] : memref<1x10x10x128xbf16, #tpu.memory_space<vmem>>, vector<1x8x8x128xbf16>
    %31 = vector.shape_cast %30 : vector<1x8x8x128xbf16> to vector<8x8x128xbf16>
    %32 = vector.shape_cast %31 : vector<8x8x128xbf16> to vector<64x128xbf16>
    %c2_36 = arith.constant 2 : index
    %c0_37 = arith.constant 0 : index
    %c0_38 = arith.constant 0 : index
    %33 = vector.load %arg3[%c2_36, %c0_37, %c0_38] : memref<9x128x128xbf16, #tpu.memory_space<vmem>>, vector<1x128x128xbf16>
    %34 = vector.shape_cast %33 : vector<1x128x128xbf16> to vector<128x128xbf16>
    %cst_39 = arith.constant dense<0.000000e+00> : vector<64x128xf32>
    %35 = tpu.matmul %29, %34, %cst_39 {dimension_numbers = #tpu.dot_dimension_numbers<[1], [0], [0], [1], [0, 0, 1, 1], [], []>} : vector<64x128xbf16>, vector<128x128xbf16>, vector<64x128xf32> -> vector<64x128xf32>
    %c2_40 = arith.constant 2 : index
    %c0_41 = arith.constant 0 : index
    %c0_42 = arith.constant 0 : index
    %36 = vector.load %arg4[%c2_40, %c0_41, %c0_42] : memref<9x128x128xbf16, #tpu.memory_space<vmem>>, vector<1x128x128xbf16>
    %37 = vector.shape_cast %36 : vector<1x128x128xbf16> to vector<128x128xbf16>
    %cst_43 = arith.constant dense<0.000000e+00> : vector<64x128xf32>
    %38 = tpu.matmul %32, %37, %cst_43 {dimension_numbers = #tpu.dot_dimension_numbers<[1], [0], [0], [1], [0, 0, 1, 1], [], []>} : vector<64x128xbf16>, vector<128x128xbf16>, vector<64x128xf32> -> vector<64x128xf32>
    %39 = arith.addf %35, %38 : vector<64x128xf32>
    %40 = arith.addf %26, %39 : vector<64x128xf32>
    %c0_44 = arith.constant 0 : index
    %c1_45 = arith.constant 1 : index
    %c0_46 = arith.constant 0 : index
    %c0_47 = arith.constant 0 : index
    %41 = vector.load %arg1[%c0_44, %c1_45, %c0_46, %c0_47] : memref<1x10x10x128xbf16, #tpu.memory_space<vmem>>, vector<1x8x8x128xbf16>
    %42 = vector.shape_cast %41 : vector<1x8x8x128xbf16> to vector<8x8x128xbf16>
    %43 = vector.shape_cast %42 : vector<8x8x128xbf16> to vector<64x128xbf16>
    %c0_48 = arith.constant 0 : index
    %c1_49 = arith.constant 1 : index
    %c0_50 = arith.constant 0 : index
    %c0_51 = arith.constant 0 : index
    %44 = vector.load %arg2[%c0_48, %c1_49, %c0_50, %c0_51] : memref<1x10x10x128xbf16, #tpu.memory_space<vmem>>, vector<1x8x8x128xbf16>
    %45 = vector.shape_cast %44 : vector<1x8x8x128xbf16> to vector<8x8x128xbf16>
    %46 = vector.shape_cast %45 : vector<8x8x128xbf16> to vector<64x128xbf16>
    %c3 = arith.constant 3 : index
    %c0_52 = arith.constant 0 : index
    %c0_53 = arith.constant 0 : index
    %47 = vector.load %arg3[%c3, %c0_52, %c0_53] : memref<9x128x128xbf16, #tpu.memory_space<vmem>>, vector<1x128x128xbf16>
    %48 = vector.shape_cast %47 : vector<1x128x128xbf16> to vector<128x128xbf16>
    %cst_54 = arith.constant dense<0.000000e+00> : vector<64x128xf32>
    %49 = tpu.matmul %43, %48, %cst_54 {dimension_numbers = #tpu.dot_dimension_numbers<[1], [0], [0], [1], [0, 0, 1, 1], [], []>} : vector<64x128xbf16>, vector<128x128xbf16>, vector<64x128xf32> -> vector<64x128xf32>
    %c3_55 = arith.constant 3 : index
    %c0_56 = arith.constant 0 : index
    %c0_57 = arith.constant 0 : index
    %50 = vector.load %arg4[%c3_55, %c0_56, %c0_57] : memref<9x128x128xbf16, #tpu.memory_space<vmem>>, vector<1x128x128xbf16>
    %51 = vector.shape_cast %50 : vector<1x128x128xbf16> to vector<128x128xbf16>
    %cst_58 = arith.constant dense<0.000000e+00> : vector<64x128xf32>
    %52 = tpu.matmul %46, %51, %cst_58 {dimension_numbers = #tpu.dot_dimension_numbers<[1], [0], [0], [1], [0, 0, 1, 1], [], []>} : vector<64x128xbf16>, vector<128x128xbf16>, vector<64x128xf32> -> vector<64x128xf32>
    %53 = arith.addf %49, %52 : vector<64x128xf32>
    %54 = arith.addf %40, %53 : vector<64x128xf32>
    %c0_59 = arith.constant 0 : index
    %c1_60 = arith.constant 1 : index
    %c1_61 = arith.constant 1 : index
    %c0_62 = arith.constant 0 : index
    %55 = vector.load %arg1[%c0_59, %c1_60, %c1_61, %c0_62] : memref<1x10x10x128xbf16, #tpu.memory_space<vmem>>, vector<1x8x8x128xbf16>
    %56 = vector.shape_cast %55 : vector<1x8x8x128xbf16> to vector<8x8x128xbf16>
    %57 = vector.shape_cast %56 : vector<8x8x128xbf16> to vector<64x128xbf16>
    %c0_63 = arith.constant 0 : index
    %c1_64 = arith.constant 1 : index
    %c1_65 = arith.constant 1 : index
    %c0_66 = arith.constant 0 : index
    %58 = vector.load %arg2[%c0_63, %c1_64, %c1_65, %c0_66] : memref<1x10x10x128xbf16, #tpu.memory_space<vmem>>, vector<1x8x8x128xbf16>
    %59 = vector.shape_cast %58 : vector<1x8x8x128xbf16> to vector<8x8x128xbf16>
    %60 = vector.shape_cast %59 : vector<8x8x128xbf16> to vector<64x128xbf16>
    %c4 = arith.constant 4 : index
    %c0_67 = arith.constant 0 : index
    %c0_68 = arith.constant 0 : index
    %61 = vector.load %arg3[%c4, %c0_67, %c0_68] : memref<9x128x128xbf16, #tpu.memory_space<vmem>>, vector<1x128x128xbf16>
    %62 = vector.shape_cast %61 : vector<1x128x128xbf16> to vector<128x128xbf16>
    %cst_69 = arith.constant dense<0.000000e+00> : vector<64x128xf32>
    %63 = tpu.matmul %57, %62, %cst_69 {dimension_numbers = #tpu.dot_dimension_numbers<[1], [0], [0], [1], [0, 0, 1, 1], [], []>} : vector<64x128xbf16>, vector<128x128xbf16>, vector<64x128xf32> -> vector<64x128xf32>
    %c4_70 = arith.constant 4 : index
    %c0_71 = arith.constant 0 : index
    %c0_72 = arith.constant 0 : index
    %64 = vector.load %arg4[%c4_70, %c0_71, %c0_72] : memref<9x128x128xbf16, #tpu.memory_space<vmem>>, vector<1x128x128xbf16>
    %65 = vector.shape_cast %64 : vector<1x128x128xbf16> to vector<128x128xbf16>
    %cst_73 = arith.constant dense<0.000000e+00> : vector<64x128xf32>
    %66 = tpu.matmul %60, %65, %cst_73 {dimension_numbers = #tpu.dot_dimension_numbers<[1], [0], [0], [1], [0, 0, 1, 1], [], []>} : vector<64x128xbf16>, vector<128x128xbf16>, vector<64x128xf32> -> vector<64x128xf32>
    %67 = arith.addf %63, %66 : vector<64x128xf32>
    %68 = arith.addf %54, %67 : vector<64x128xf32>
    %c0_74 = arith.constant 0 : index
    %c1_75 = arith.constant 1 : index
    %c2_76 = arith.constant 2 : index
    %c0_77 = arith.constant 0 : index
    %69 = vector.load %arg1[%c0_74, %c1_75, %c2_76, %c0_77] : memref<1x10x10x128xbf16, #tpu.memory_space<vmem>>, vector<1x8x8x128xbf16>
    %70 = vector.shape_cast %69 : vector<1x8x8x128xbf16> to vector<8x8x128xbf16>
    %71 = vector.shape_cast %70 : vector<8x8x128xbf16> to vector<64x128xbf16>
    %c0_78 = arith.constant 0 : index
    %c1_79 = arith.constant 1 : index
    %c2_80 = arith.constant 2 : index
    %c0_81 = arith.constant 0 : index
    %72 = vector.load %arg2[%c0_78, %c1_79, %c2_80, %c0_81] : memref<1x10x10x128xbf16, #tpu.memory_space<vmem>>, vector<1x8x8x128xbf16>
    %73 = vector.shape_cast %72 : vector<1x8x8x128xbf16> to vector<8x8x128xbf16>
    %74 = vector.shape_cast %73 : vector<8x8x128xbf16> to vector<64x128xbf16>
    %c5 = arith.constant 5 : index
    %c0_82 = arith.constant 0 : index
    %c0_83 = arith.constant 0 : index
    %75 = vector.load %arg3[%c5, %c0_82, %c0_83] : memref<9x128x128xbf16, #tpu.memory_space<vmem>>, vector<1x128x128xbf16>
    %76 = vector.shape_cast %75 : vector<1x128x128xbf16> to vector<128x128xbf16>
    %cst_84 = arith.constant dense<0.000000e+00> : vector<64x128xf32>
    %77 = tpu.matmul %71, %76, %cst_84 {dimension_numbers = #tpu.dot_dimension_numbers<[1], [0], [0], [1], [0, 0, 1, 1], [], []>} : vector<64x128xbf16>, vector<128x128xbf16>, vector<64x128xf32> -> vector<64x128xf32>
    %c5_85 = arith.constant 5 : index
    %c0_86 = arith.constant 0 : index
    %c0_87 = arith.constant 0 : index
    %78 = vector.load %arg4[%c5_85, %c0_86, %c0_87] : memref<9x128x128xbf16, #tpu.memory_space<vmem>>, vector<1x128x128xbf16>
    %79 = vector.shape_cast %78 : vector<1x128x128xbf16> to vector<128x128xbf16>
    %cst_88 = arith.constant dense<0.000000e+00> : vector<64x128xf32>
    %80 = tpu.matmul %74, %79, %cst_88 {dimension_numbers = #tpu.dot_dimension_numbers<[1], [0], [0], [1], [0, 0, 1, 1], [], []>} : vector<64x128xbf16>, vector<128x128xbf16>, vector<64x128xf32> -> vector<64x128xf32>
    %81 = arith.addf %77, %80 : vector<64x128xf32>
    %82 = arith.addf %68, %81 : vector<64x128xf32>
    %c0_89 = arith.constant 0 : index
    %c2_90 = arith.constant 2 : index
    %c0_91 = arith.constant 0 : index
    %c0_92 = arith.constant 0 : index
    %83 = vector.load %arg1[%c0_89, %c2_90, %c0_91, %c0_92] : memref<1x10x10x128xbf16, #tpu.memory_space<vmem>>, vector<1x8x8x128xbf16>
    %84 = vector.shape_cast %83 : vector<1x8x8x128xbf16> to vector<8x8x128xbf16>
    %85 = vector.shape_cast %84 : vector<8x8x128xbf16> to vector<64x128xbf16>
    %c0_93 = arith.constant 0 : index
    %c2_94 = arith.constant 2 : index
    %c0_95 = arith.constant 0 : index
    %c0_96 = arith.constant 0 : index
    %86 = vector.load %arg2[%c0_93, %c2_94, %c0_95, %c0_96] : memref<1x10x10x128xbf16, #tpu.memory_space<vmem>>, vector<1x8x8x128xbf16>
    %87 = vector.shape_cast %86 : vector<1x8x8x128xbf16> to vector<8x8x128xbf16>
    %88 = vector.shape_cast %87 : vector<8x8x128xbf16> to vector<64x128xbf16>
    %c6 = arith.constant 6 : index
    %c0_97 = arith.constant 0 : index
    %c0_98 = arith.constant 0 : index
    %89 = vector.load %arg3[%c6, %c0_97, %c0_98] : memref<9x128x128xbf16, #tpu.memory_space<vmem>>, vector<1x128x128xbf16>
    %90 = vector.shape_cast %89 : vector<1x128x128xbf16> to vector<128x128xbf16>
    %cst_99 = arith.constant dense<0.000000e+00> : vector<64x128xf32>
    %91 = tpu.matmul %85, %90, %cst_99 {dimension_numbers = #tpu.dot_dimension_numbers<[1], [0], [0], [1], [0, 0, 1, 1], [], []>} : vector<64x128xbf16>, vector<128x128xbf16>, vector<64x128xf32> -> vector<64x128xf32>
    %c6_100 = arith.constant 6 : index
    %c0_101 = arith.constant 0 : index
    %c0_102 = arith.constant 0 : index
    %92 = vector.load %arg4[%c6_100, %c0_101, %c0_102] : memref<9x128x128xbf16, #tpu.memory_space<vmem>>, vector<1x128x128xbf16>
    %93 = vector.shape_cast %92 : vector<1x128x128xbf16> to vector<128x128xbf16>
    %cst_103 = arith.constant dense<0.000000e+00> : vector<64x128xf32>
    %94 = tpu.matmul %88, %93, %cst_103 {dimension_numbers = #tpu.dot_dimension_numbers<[1], [0], [0], [1], [0, 0, 1, 1], [], []>} : vector<64x128xbf16>, vector<128x128xbf16>, vector<64x128xf32> -> vector<64x128xf32>
    %95 = arith.addf %91, %94 : vector<64x128xf32>
    %96 = arith.addf %82, %95 : vector<64x128xf32>
    %c0_104 = arith.constant 0 : index
    %c2_105 = arith.constant 2 : index
    %c1_106 = arith.constant 1 : index
    %c0_107 = arith.constant 0 : index
    %97 = vector.load %arg1[%c0_104, %c2_105, %c1_106, %c0_107] : memref<1x10x10x128xbf16, #tpu.memory_space<vmem>>, vector<1x8x8x128xbf16>
    %98 = vector.shape_cast %97 : vector<1x8x8x128xbf16> to vector<8x8x128xbf16>
    %99 = vector.shape_cast %98 : vector<8x8x128xbf16> to vector<64x128xbf16>
    %c0_108 = arith.constant 0 : index
    %c2_109 = arith.constant 2 : index
    %c1_110 = arith.constant 1 : index
    %c0_111 = arith.constant 0 : index
    %100 = vector.load %arg2[%c0_108, %c2_109, %c1_110, %c0_111] : memref<1x10x10x128xbf16, #tpu.memory_space<vmem>>, vector<1x8x8x128xbf16>
    %101 = vector.shape_cast %100 : vector<1x8x8x128xbf16> to vector<8x8x128xbf16>
    %102 = vector.shape_cast %101 : vector<8x8x128xbf16> to vector<64x128xbf16>
    %c7 = arith.constant 7 : index
    %c0_112 = arith.constant 0 : index
    %c0_113 = arith.constant 0 : index
    %103 = vector.load %arg3[%c7, %c0_112, %c0_113] : memref<9x128x128xbf16, #tpu.memory_space<vmem>>, vector<1x128x128xbf16>
    %104 = vector.shape_cast %103 : vector<1x128x128xbf16> to vector<128x128xbf16>
    %cst_114 = arith.constant dense<0.000000e+00> : vector<64x128xf32>
    %105 = tpu.matmul %99, %104, %cst_114 {dimension_numbers = #tpu.dot_dimension_numbers<[1], [0], [0], [1], [0, 0, 1, 1], [], []>} : vector<64x128xbf16>, vector<128x128xbf16>, vector<64x128xf32> -> vector<64x128xf32>
    %c7_115 = arith.constant 7 : index
    %c0_116 = arith.constant 0 : index
    %c0_117 = arith.constant 0 : index
    %106 = vector.load %arg4[%c7_115, %c0_116, %c0_117] : memref<9x128x128xbf16, #tpu.memory_space<vmem>>, vector<1x128x128xbf16>
    %107 = vector.shape_cast %106 : vector<1x128x128xbf16> to vector<128x128xbf16>
    %cst_118 = arith.constant dense<0.000000e+00> : vector<64x128xf32>
    %108 = tpu.matmul %102, %107, %cst_118 {dimension_numbers = #tpu.dot_dimension_numbers<[1], [0], [0], [1], [0, 0, 1, 1], [], []>} : vector<64x128xbf16>, vector<128x128xbf16>, vector<64x128xf32> -> vector<64x128xf32>
    %109 = arith.addf %105, %108 : vector<64x128xf32>
    %110 = arith.addf %96, %109 : vector<64x128xf32>
    %c0_119 = arith.constant 0 : index
    %c2_120 = arith.constant 2 : index
    %c2_121 = arith.constant 2 : index
    %c0_122 = arith.constant 0 : index
    %111 = vector.load %arg1[%c0_119, %c2_120, %c2_121, %c0_122] : memref<1x10x10x128xbf16, #tpu.memory_space<vmem>>, vector<1x8x8x128xbf16>
    %112 = vector.shape_cast %111 : vector<1x8x8x128xbf16> to vector<8x8x128xbf16>
    %113 = vector.shape_cast %112 : vector<8x8x128xbf16> to vector<64x128xbf16>
    %c0_123 = arith.constant 0 : index
    %c2_124 = arith.constant 2 : index
    %c2_125 = arith.constant 2 : index
    %c0_126 = arith.constant 0 : index
    %114 = vector.load %arg2[%c0_123, %c2_124, %c2_125, %c0_126] : memref<1x10x10x128xbf16, #tpu.memory_space<vmem>>, vector<1x8x8x128xbf16>
    %115 = vector.shape_cast %114 : vector<1x8x8x128xbf16> to vector<8x8x128xbf16>
    %116 = vector.shape_cast %115 : vector<8x8x128xbf16> to vector<64x128xbf16>
    %c8 = arith.constant 8 : index
    %c0_127 = arith.constant 0 : index
    %c0_128 = arith.constant 0 : index
    %117 = vector.load %arg3[%c8, %c0_127, %c0_128] : memref<9x128x128xbf16, #tpu.memory_space<vmem>>, vector<1x128x128xbf16>
    %118 = vector.shape_cast %117 : vector<1x128x128xbf16> to vector<128x128xbf16>
    %cst_129 = arith.constant dense<0.000000e+00> : vector<64x128xf32>
    %119 = tpu.matmul %113, %118, %cst_129 {dimension_numbers = #tpu.dot_dimension_numbers<[1], [0], [0], [1], [0, 0, 1, 1], [], []>} : vector<64x128xbf16>, vector<128x128xbf16>, vector<64x128xf32> -> vector<64x128xf32>
    %c8_130 = arith.constant 8 : index
    %c0_131 = arith.constant 0 : index
    %c0_132 = arith.constant 0 : index
    %120 = vector.load %arg4[%c8_130, %c0_131, %c0_132] : memref<9x128x128xbf16, #tpu.memory_space<vmem>>, vector<1x128x128xbf16>
    %121 = vector.shape_cast %120 : vector<1x128x128xbf16> to vector<128x128xbf16>
    %cst_133 = arith.constant dense<0.000000e+00> : vector<64x128xf32>
    %122 = tpu.matmul %116, %121, %cst_133 {dimension_numbers = #tpu.dot_dimension_numbers<[1], [0], [0], [1], [0, 0, 1, 1], [], []>} : vector<64x128xbf16>, vector<128x128xbf16>, vector<64x128xf32> -> vector<64x128xf32>
    %123 = arith.addf %119, %122 : vector<64x128xf32>
    %124 = arith.addf %110, %123 : vector<64x128xf32>
    %c0_134 = arith.constant 0 : index
    %c0_135 = arith.constant 0 : index
    %125 = vector.load %arg5[%c0_134, %c0_135] : memref<1x128xf32, #tpu.memory_space<vmem>>, vector<1x128xf32>
    %126 = vector.broadcast %125 : vector<1x128xf32> to vector<64x128xf32>
    %127 = arith.addf %124, %126 : vector<64x128xf32>
    %128 = arith.truncf %127 : vector<64x128xf32> to vector<64x128xbf16>
    %c0_136 = arith.constant 0 : index
    %c0_137 = arith.constant 0 : index
    %129 = vector.load %arg6[%c0_136, %c0_137] : memref<64x128xbf16, #tpu.memory_space<vmem>>, vector<64x128xbf16>
    tpu.vector_store %arg6[%c0_136, %c0_137], %128 {strides = array<i32>} : memref<64x128xbf16, #tpu.memory_space<vmem>>, vector<64x128xbf16>,
    %cst_138 = arith.constant dense<0.000000e+00> : vector<128xf32>
    %130 = vector.multi_reduction <add>, %127, %cst_138 [0] : vector<64x128xf32> to vector<128xf32>
    %131 = vector.shape_cast %130 : vector<128xf32> to vector<1x128xf32>
    %132 = arith.mulf %127, %127 : vector<64x128xf32>
    %cst_139 = arith.constant dense<0.000000e+00> : vector<128xf32>
    %133 = vector.multi_reduction <add>, %132, %cst_139 [0] : vector<64x128xf32> to vector<128xf32>
    %134 = vector.shape_cast %133 : vector<128xf32> to vector<1x128xf32>
    %135 = tpu.concatenate %131, %134 in 0 : vector<1x128xf32>, vector<1x128xf32> -> vector<2x128xf32>
    %136 = vector.shape_cast %135 : vector<2x128xf32> to vector<1x2x128xf32>
    %c0_140 = arith.constant 0 : index
    %c0_141 = arith.constant 0 : index
    %c0_142 = arith.constant 0 : index
    %137 = vector.load %arg7[%c0_140, %c0_141, %c0_142] : memref<1x2x128xf32, #tpu.memory_space<vmem>>, vector<1x2x128xf32>
    tpu.vector_store %arg7[%c0_140, %c0_141, %c0_142], %136 {strides = array<i32>} : memref<1x2x128xf32, #tpu.memory_space<vmem>>, vector<1x2x128xf32>,
    return
  }
  func.func @transform_0(%arg0: i32) -> (i32, i32, i32, i32) {
    %c0_i32 = arith.constant 0 : i32
    %c0_i32_0 = arith.constant 0 : i32
    %c0_i32_1 = arith.constant 0 : i32
    %c0_i32_2 = arith.constant 0 : i32
    return %arg0, %c0_i32, %c0_i32_0, %c0_i32_1 : i32, i32, i32, i32
  }
  func.func @transform_1(%arg0: i32) -> (i32, i32, i32, i32) {
    %c0_i32 = arith.constant 0 : i32
    %c0_i32_0 = arith.constant 0 : i32
    %c0_i32_1 = arith.constant 0 : i32
    %c0_i32_2 = arith.constant 0 : i32
    return %arg0, %c0_i32, %c0_i32_0, %c0_i32_1 : i32, i32, i32, i32
  }
  func.func @transform_2(%arg0: i32) -> (i32, i32, i32) {
    %c0_i32 = arith.constant 0 : i32
    %c0_i32_0 = arith.constant 0 : i32
    %c0_i32_1 = arith.constant 0 : i32
    %c0_i32_2 = arith.constant 0 : i32
    return %c0_i32, %c0_i32_0, %c0_i32_1 : i32, i32, i32
  }
  func.func @transform_3(%arg0: i32) -> (i32, i32, i32) {
    %c0_i32 = arith.constant 0 : i32
    %c0_i32_0 = arith.constant 0 : i32
    %c0_i32_1 = arith.constant 0 : i32
    %c0_i32_2 = arith.constant 0 : i32
    return %c0_i32, %c0_i32_0, %c0_i32_1 : i32, i32, i32
  }
  func.func @transform_4(%arg0: i32) -> (i32, i32) {
    %c0_i32 = arith.constant 0 : i32
    %c0_i32_0 = arith.constant 0 : i32
    %c0_i32_1 = arith.constant 0 : i32
    return %c0_i32, %c0_i32_0 : i32, i32
  }
  func.func @transform_5(%arg0: i32) -> (i32, i32) {
    %c0_i32 = arith.constant 0 : i32
    %c0_i32_0 = arith.constant 0 : i32
    return %arg0, %c0_i32 : i32, i32
  }
  func.func @transform_6(%arg0: i32) -> (i32, i32, i32) {
    %c0_i32 = arith.constant 0 : i32
    %c0_i32_0 = arith.constant 0 : i32
    %c0_i32_1 = arith.constant 0 : i32
    return %arg0, %c0_i32, %c0_i32_0 : i32, i32, i32
  }
}

module attributes {stable_mosaic.version = 11 : i64} {
  func.func @_bn_relu_kernel(%arg0: i32, %arg1: memref<128x128xbf16, #tpu.memory_space<vmem>>, %arg2: memref<1x128xf32, #tpu.memory_space<vmem>>, %arg3: memref<1x128xf32, #tpu.memory_space<vmem>>, %arg4: memref<128x128xf32, #tpu.memory_space<vmem>>) attributes {dimension_semantics = [#tpu.dimension_semantics<parallel>], iteration_bounds = array<i64: 1>, scalar_prefetch = 0 : i64, scratch_operands = 0 : i64, tpu.core_type = #tpu.core_type<tc>, window_params = [{transform_indices = @transform_0, window_bounds = array<i64: 128, 128>}, {pipeline_mode = #tpu.pipeline_mode<synchronous>, transform_indices = @transform_1, window_bounds = array<i64: 1, 128>}, {pipeline_mode = #tpu.pipeline_mode<synchronous>, transform_indices = @transform_2, window_bounds = array<i64: 1, 128>}, {transform_indices = @transform_3, window_bounds = array<i64: 128, 128>}]} {
    %c0 = arith.constant 0 : index
    %c0_0 = arith.constant 0 : index
    %0 = vector.load %arg1[%c0, %c0_0] : memref<128x128xbf16, #tpu.memory_space<vmem>>, vector<128x128xbf16>
    %1 = arith.extf %0 : vector<128x128xbf16> to vector<128x128xf32>
    %c0_1 = arith.constant 0 : index
    %c0_2 = arith.constant 0 : index
    %2 = vector.load %arg2[%c0_1, %c0_2] : memref<1x128xf32, #tpu.memory_space<vmem>>, vector<1x128xf32>
    %3 = vector.broadcast %2 : vector<1x128xf32> to vector<128x128xf32>
    %4 = arith.mulf %1, %3 : vector<128x128xf32>
    %c0_3 = arith.constant 0 : index
    %c0_4 = arith.constant 0 : index
    %5 = vector.load %arg3[%c0_3, %c0_4] : memref<1x128xf32, #tpu.memory_space<vmem>>, vector<1x128xf32>
    %6 = vector.broadcast %5 : vector<1x128xf32> to vector<128x128xf32>
    %7 = arith.addf %4, %6 : vector<128x128xf32>
    %cst = arith.constant 0.000000e+00 : f32
    %8 = vector.broadcast %cst : f32 to vector<128x128xf32>
    %9 = arith.maximumf %7, %8 : vector<128x128xf32>
    %c0_5 = arith.constant 0 : index
    %c0_6 = arith.constant 0 : index
    %10 = vector.load %arg4[%c0_5, %c0_6] : memref<128x128xf32, #tpu.memory_space<vmem>>, vector<128x128xf32>
    tpu.vector_store %arg4[%c0_5, %c0_6], %9 {strides = array<i32>} : memref<128x128xf32, #tpu.memory_space<vmem>>, vector<128x128xf32>,
    return
  }
  func.func @transform_0(%arg0: i32) -> (i32, i32) {
    %c0_i32 = arith.constant 0 : i32
    %c0_i32_0 = arith.constant 0 : i32
    return %arg0, %c0_i32 : i32, i32
  }
  func.func @transform_1(%arg0: i32) -> (i32, i32) {
    %c0_i32 = arith.constant 0 : i32
    %c0_i32_0 = arith.constant 0 : i32
    %c0_i32_1 = arith.constant 0 : i32
    return %c0_i32, %c0_i32_0 : i32, i32
  }
  func.func @transform_2(%arg0: i32) -> (i32, i32) {
    %c0_i32 = arith.constant 0 : i32
    %c0_i32_0 = arith.constant 0 : i32
    %c0_i32_1 = arith.constant 0 : i32
    return %c0_i32, %c0_i32_0 : i32, i32
  }
  func.func @transform_3(%arg0: i32) -> (i32, i32) {
    %c0_i32 = arith.constant 0 : i32
    %c0_i32_0 = arith.constant 0 : i32
    return %arg0, %c0_i32 : i32, i32
  }
}

</mosaic_0001>

<bundles_post_ra>
// kernel: downsample_block.5
= control target key start
LH: loop header
LB: loop body
LE: loop exit
PB: predicated region body
PF: predicated region fallthrough
CT: control target
= control target key end

     0   :  { %s422_s0 = inlined_call_operand.vmem [shape: bf16[128,128], index: 0, kind: input, shape index: {}]   ;;  %s423_s1 = inlined_call_operand.vmem [shape: f32[1,128], index: 1, kind: input, shape index: {}]   ;;  %s424_s2 = inlined_call_operand.vmem [shape: f32[1,128], index: 2, kind: input, shape index: {}]   ;;  %s425_s3 = inlined_call_operand.vmem [shape: bf16[128,128], index: 3, kind: output, shape index: {}]  }
   0x1   :  { %v227_v0 = vld [vmem:[%s422_s0] sm:$0xff]   ;;  %v298_v4 = vld [vmem:[%s422_s0 + $0x8] sm:$0xff]   ;;  %v299_v5 = vld [vmem:[%s422_s0 + $0x10] sm:$0xff]  }
   0x2   :  { %v338_v1 = vld [vmem:[%s423_s1] ss:$0 sm:$0xff]  ;;  %v228_v2 = vunpack.c.l.bf16 %v227_v0  ;;  %v229_v3 = vunpack.c.h.bf16 %v227_v0  ;;  %v300_v6 = vld [vmem:[%s422_s0 + $0x18] sm:$0xff]   ;;  %v232_v8 = vunpack.c.l.bf16 %v298_v4  ;;  %v233_v9 = vunpack.c.h.bf16 %v298_v4  ;;  %v302_v33 = vld [vmem:[%s422_s0 + $0x28] sm:$0xff]  }
   0x3   :  { %v352_v7 = vld [vmem:[%s424_s2] ss:$0 sm:$0xff]  ;;  %v236_v10 = vunpack.c.l.bf16 %v299_v5  ;;  %v237_v11 = vunpack.c.h.bf16 %v299_v5  ;;  %v240_v14 = vunpack.c.l.bf16 %v300_v6  ;;  %v241_v15 = vunpack.c.h.bf16 %v300_v6  ;;  %v303_v38 = vld [vmem:[%s422_s0 + $0x30] sm:$0xff]   ;;  %v304_v43 = vld [vmem:[%s422_s0 + $0x38] sm:$0xff]  }
   0x4   :  { %v53_v12 = vmul.f32 %v228_v2, %v338_v1  ;;  %v54_v13 = vmul.f32 %v229_v3, %v338_v1  ;;  %v55_v16 = vmul.f32 %v232_v8, %v338_v1  ;;  %v56_v17 = vmul.f32 %v233_v9, %v338_v1  ;;  %v301_v28 = vld [vmem:[%s422_s0 + $0x20] sm:$0xff]  }
   0x5   :  { %v57_v18 = vmul.f32 %v236_v10, %v338_v1  ;;  %v58_v19 = vmul.f32 %v237_v11, %v338_v1  ;;  %v59_v22 = vmul.f32 %v240_v14, %v338_v1  ;;  %v60_v23 = vmul.f32 %v241_v15, %v338_v1 }
   0x6   :  { %v76_v20 = vadd.f32 %v352_v7, %v53_v12  ;;  %v77_v21 = vadd.f32 %v352_v7, %v54_v13  ;;  %v78_v24 = vadd.f32 %v352_v7, %v55_v16  ;;  %v79_v25 = vadd.f32 %v352_v7, %v56_v17 }
   0x7   :  { %v80_v26 = vadd.f32 %v352_v7, %v57_v18  ;;  %v81_v27 = vadd.f32 %v352_v7, %v58_v19  ;;  %v82_v31 = vadd.f32 %v352_v7, %v59_v22  ;;  %v83_v32 = vadd.f32 %v352_v7, %v60_v23 }
   0x8   :  { %v92_v29 = vmax.f32 %v76_v20, 0.0  ;;  %v93_v30 = vmax.f32 %v77_v21, 0.0  ;;  %v94_v34 = vmax.f32 %v78_v24, 0.0  ;;  %v95_v35 = vmax.f32 %v79_v25, 0.0 }
   0x9   :  { %v96_v36 = vmax.f32 %v80_v26, 0.0  ;;  %v97_v37 = vmax.f32 %v81_v27, 0.0  ;;  %v98_v40 = vmax.f32 %v82_v31, 0.0  ;;  %v99_v41 = vmax.f32 %v83_v32, 0.0 }
   0xa   :  { %v261_v39 = vpack.c.bf16 %v93_v30, %v92_v29  ;;  %v244_v42 = vunpack.c.l.bf16 %v301_v28  ;;  %v266_v44 = vpack.c.bf16 %v95_v35, %v94_v34  ;;  %v245_v46 = vunpack.c.h.bf16 %v301_v28 }
   0xb   :  { %v271_v45 = vpack.c.bf16 %v97_v37, %v96_v36  ;;  %v248_v47 = vunpack.c.l.bf16 %v302_v33  ;;  %v276_v48 = vpack.c.bf16 %v99_v41, %v98_v40  ;;  %v249_v50 = vunpack.c.h.bf16 %v302_v33 }
   0xc   :  { %262 = vst [vmem:[%s425_s3] sm:$0xff] %v261_v39   ;;  %v61_v49 = vmul.f32 %v244_v42, %v338_v1  ;;  %v252_v51 = vunpack.c.l.bf16 %v303_v38  ;;  %305 = vst [vmem:[%s425_s3 + $0x8] sm:$0xff] %v266_v44   ;;  %v62_v52 = vmul.f32 %v245_v46, %v338_v1  ;;  %v253_v54 = vunpack.c.h.bf16 %v303_v38 }
   0xd   :  { %306 = vst [vmem:[%s425_s3 + $0x10] sm:$0xff] %v271_v45   ;;  %v63_v53 = vmul.f32 %v248_v47, %v338_v1  ;;  %v256_v55 = vunpack.c.l.bf16 %v304_v43  ;;  %307 = vst [vmem:[%s425_s3 + $0x18] sm:$0xff] %v276_v48   ;;  %v64_v57 = vmul.f32 %v249_v50, %v338_v1  ;;  %v257_v59 = vunpack.c.h.bf16 %v304_v43 }
   0xe   :  { %v84_v56 = vadd.f32 %v352_v7, %v61_v49  ;;  %v65_v58 = vmul.f32 %v252_v51, %v338_v1  ;;  %v85_v60 = vadd.f32 %v352_v7, %v62_v52  ;;  %v66_v62 = vmul.f32 %v253_v54, %v338_v1 }
   0xf   :  { %v86_v61 = vadd.f32 %v352_v7, %v63_v53  ;;  %v67_v63 = vmul.f32 %v256_v55, %v338_v1  ;;  %v87_v2 = vadd.f32 %v352_v7, %v64_v57  ;;  %v68_v4 = vmul.f32 %v257_v59, %v338_v1 }
  0x10   :  { %v100_v0 = vmax.f32 %v84_v56, 0.0  ;;  %v88_v3 = vadd.f32 %v352_v7, %v65_v58  ;;  %v101_v5 = vmax.f32 %v85_v60, 0.0  ;;  %v89_v8 = vadd.f32 %v352_v7, %v66_v62 }
  0x11   :  { %v102_v6 = vmax.f32 %v86_v61, 0.0  ;;  %v90_v9 = vadd.f32 %v352_v7, %v67_v63  ;;  %v103_v10 = vmax.f32 %v87_v2, 0.0  ;;  %v91_v12 = vadd.f32 %v352_v7, %v68_v4 }
  0x12   :  { %v104_v11 = vmax.f32 %v88_v3, 0.0  ;;  %v281_v13 = vpack.c.bf16 %v101_v5, %v100_v0  ;;  %v105_v14 = vmax.f32 %v89_v8, 0.0 }
  0x13   :  { %v106_v15 = vmax.f32 %v90_v9, 0.0  ;;  %v286_v16 = vpack.c.bf16 %v103_v10, %v102_v6  ;;  %v107_v17 = vmax.f32 %v91_v12, 0.0 }
  0x14   :  { %308 = vst [vmem:[%s425_s3 + $0x20] sm:$0xff] %v281_v13   ;;  %v291_v1 = vpack.c.bf16 %v105_v14, %v104_v11 }
  0x15   :  { %309 = vst [vmem:[%s425_s3 + $0x28] sm:$0xff] %v286_v16   ;;  %v296_v18 = vpack.c.bf16 %v107_v17, %v106_v15 }
  0x16   :  { %310 = vst [vmem:[%s425_s3 + $0x30] sm:$0xff] %v291_v1  }
  0x17   :  { %311 = vst [vmem:[%s425_s3 + $0x38] sm:$0xff] %v296_v18  }

// kernel: downsample_block.7
= control target key start
LH: loop header
LB: loop body
LE: loop exit
PB: predicated region body
PF: predicated region fallthrough
CT: control target
= control target key end

     0   :  { %s303_s0 = inlined_call_operand.vmem [shape: bf16[128,128], index: 0, kind: input, shape index: {}]   ;;  %s304_s1 = inlined_call_operand.vmem [shape: f32[1,128], index: 1, kind: input, shape index: {}]   ;;  %s305_s2 = inlined_call_operand.vmem [shape: f32[1,128], index: 2, kind: input, shape index: {}]   ;;  %s306_s3 = inlined_call_operand.vmem [shape: f32[128,128], index: 3, kind: output, shape index: {}]  }
   0x1   :  { %v131_v0 = vld [vmem:[%s303_s0] sm:$0xff]   ;;  %v162_v4 = vld [vmem:[%s303_s0 + $0x8] sm:$0xff]   ;;  %v163_v5 = vld [vmem:[%s303_s0 + $0x10] sm:$0xff]  }
   0x2   :  { %v195_v1 = vld [vmem:[%s304_s1] ss:$0 sm:$0xff]  ;;  %v132_v2 = vunpack.c.l.bf16 %v131_v0  ;;  %v133_v3 = vunpack.c.h.bf16 %v131_v0  ;;  %v164_v6 = vld [vmem:[%s303_s0 + $0x18] sm:$0xff]   ;;  %v136_v8 = vunpack.c.l.bf16 %v162_v4  ;;  %v137_v9 = vunpack.c.h.bf16 %v162_v4  ;;  %v166_v33 = vld [vmem:[%s303_s0 + $0x28] sm:$0xff]  }
   0x3   :  { %v209_v7 = vld [vmem:[%s305_s2] ss:$0 sm:$0xff]  ;;  %v140_v10 = vunpack.c.l.bf16 %v163_v5  ;;  %v141_v11 = vunpack.c.h.bf16 %v163_v5  ;;  %v144_v14 = vunpack.c.l.bf16 %v164_v6  ;;  %v145_v15 = vunpack.c.h.bf16 %v164_v6  ;;  %v167_v34 = vld [vmem:[%s303_s0 + $0x30] sm:$0xff]   ;;  %v168_v39 = vld [vmem:[%s303_s0 + $0x38] sm:$0xff]  }
   0x4   :  { %v53_v12 = vmul.f32 %v132_v2, %v195_v1  ;;  %v54_v13 = vmul.f32 %v133_v3, %v195_v1  ;;  %v55_v16 = vmul.f32 %v136_v8, %v195_v1  ;;  %v56_v17 = vmul.f32 %v137_v9, %v195_v1  ;;  %v165_v28 = vld [vmem:[%s303_s0 + $0x20] sm:$0xff]  }
   0x5   :  { %v57_v18 = vmul.f32 %v140_v10, %v195_v1  ;;  %v58_v19 = vmul.f32 %v141_v11, %v195_v1  ;;  %v59_v22 = vmul.f32 %v144_v14, %v195_v1  ;;  %v60_v23 = vmul.f32 %v145_v15, %v195_v1 }
   0x6   :  { %v76_v20 = vadd.f32 %v209_v7, %v53_v12  ;;  %v77_v21 = vadd.f32 %v209_v7, %v54_v13  ;;  %v78_v24 = vadd.f32 %v209_v7, %v55_v16  ;;  %v79_v25 = vadd.f32 %v209_v7, %v56_v17 }
   0x7   :  { %v80_v26 = vadd.f32 %v209_v7, %v57_v18  ;;  %v81_v27 = vadd.f32 %v209_v7, %v58_v19  ;;  %v82_v31 = vadd.f32 %v209_v7, %v59_v22  ;;  %v83_v32 = vadd.f32 %v209_v7, %v60_v23 }
   0x8   :  { %v92_v29 = vmax.f32 %v76_v20, 0.0  ;;  %v93_v30 = vmax.f32 %v77_v21, 0.0  ;;  %v94_v35 = vmax.f32 %v78_v24, 0.0  ;;  %v95_v36 = vmax.f32 %v79_v25, 0.0 }
   0x9   :  { %v96_v37 = vmax.f32 %v80_v26, 0.0  ;;  %v97_v38 = vmax.f32 %v81_v27, 0.0  ;;  %v98_v40 = vmax.f32 %v82_v31, 0.0  ;;  %v99_v41 = vmax.f32 %v83_v32, 0.0 }
   0xa   :  { %108 = vst [vmem:[%s306_s3] sm:$0xff] %v92_v29  ;;  %109 = vst [vmem:[%s306_s3 + $0x8] sm:$0xff] %v93_v30  ;;  %v148_v42 = vunpack.c.l.bf16 %v165_v28  ;;  %v149_v43 = vunpack.c.h.bf16 %v165_v28  ;;  %v152_v44 = vunpack.c.l.bf16 %v166_v33  ;;  %v153_v45 = vunpack.c.h.bf16 %v166_v33 }
   0xb   :  { %110 = vst [vmem:[%s306_s3 + $0x10] sm:$0xff] %v94_v35  ;;  %111 = vst [vmem:[%s306_s3 + $0x18] sm:$0xff] %v95_v36  ;;  %v156_v46 = vunpack.c.l.bf16 %v167_v34  ;;  %v157_v47 = vunpack.c.h.bf16 %v167_v34  ;;  %v160_v50 = vunpack.c.l.bf16 %v168_v39  ;;  %v161_v51 = vunpack.c.h.bf16 %v168_v39 }
   0xc   :  { %112 = vst [vmem:[%s306_s3 + $0x20] sm:$0xff] %v96_v37  ;;  %113 = vst [vmem:[%s306_s3 + $0x28] sm:$0xff] %v97_v38  ;;  %v61_v48 = vmul.f32 %v148_v42, %v195_v1  ;;  %v62_v49 = vmul.f32 %v149_v43, %v195_v1  ;;  %v63_v52 = vmul.f32 %v152_v44, %v195_v1 }
   0xd   :  { %114 = vst [vmem:[%s306_s3 + $0x30] sm:$0xff] %v98_v40  ;;  %115 = vst [vmem:[%s306_s3 + $0x38] sm:$0xff] %v99_v41  ;;  %v64_v53 = vmul.f32 %v153_v45, %v195_v1  ;;  %v65_v54 = vmul.f32 %v156_v46, %v195_v1  ;;  %v66_v55 = vmul.f32 %v157_v47, %v195_v1 }
   0xe   :  { %v84_v56 = vadd.f32 %v209_v7, %v61_v48  ;;  %v85_v57 = vadd.f32 %v209_v7, %v62_v49  ;;  %v67_v58 = vmul.f32 %v160_v50, %v195_v1  ;;  %v68_v59 = vmul.f32 %v161_v51, %v195_v1 }
   0xf   :  { %v86_v60 = vadd.f32 %v209_v7, %v63_v52  ;;  %v87_v61 = vadd.f32 %v209_v7, %v64_v53  ;;  %v88_v62 = vadd.f32 %v209_v7, %v65_v54  ;;  %v89_v63 = vadd.f32 %v209_v7, %v66_v55 }
  0x10   :  { %v100_v0 = vmax.f32 %v84_v56, 0.0  ;;  %v101_v2 = vmax.f32 %v85_v57, 0.0  ;;  %v90_v3 = vadd.f32 %v209_v7, %v67_v58  ;;  %v91_v4 = vadd.f32 %v209_v7, %v68_v59 }
  0x11   :  { %v102_v5 = vmax.f32 %v86_v60, 0.0  ;;  %v103_v6 = vmax.f32 %v87_v61, 0.0  ;;  %v104_v8 = vmax.f32 %v88_v62, 0.0  ;;  %v105_v9 = vmax.f32 %v89_v63, 0.0 }
  0x12   :  { %116 = vst [vmem:[%s306_s3 + $0x40] sm:$0xff] %v100_v0  ;;  %117 = vst [vmem:[%s306_s3 + $0x48] sm:$0xff] %v101_v2  ;;  %v106_v1 = vmax.f32 %v90_v3, 0.0  ;;  %v107_v10 = vmax.f32 %v91_v4, 0.0 }
  0x13   :  { %118 = vst [vmem:[%s306_s3 + $0x50] sm:$0xff] %v102_v5  ;;  %119 = vst [vmem:[%s306_s3 + $0x58] sm:$0xff] %v103_v6 }
  0x14   :  { %120 = vst [vmem:[%s306_s3 + $0x60] sm:$0xff] %v104_v8  ;;  %121 = vst [vmem:[%s306_s3 + $0x68] sm:$0xff] %v105_v9 }
  0x15   :  { %122 = vst [vmem:[%s306_s3 + $0x70] sm:$0xff] %v106_v1  ;;  %123 = vst [vmem:[%s306_s3 + $0x78] sm:$0xff] %v107_v10 }

// kernel: downsample_block.4
= control target key start
LH: loop header
LB: loop body
LE: loop exit
PB: predicated region body
PF: predicated region fallthrough
CT: control target
= control target key end

     0   :  { %s3300_s24 = smov 0   ;;  %s3697_s0 = inlined_call_operand.vmem [shape: bf16[2,9,9,128], index: 0, kind: input, shape index: {}]   ;;  %s3698_s1 = inlined_call_operand.vmem [shape: bf16[2,9,9,128], index: 1, kind: input, shape index: {}]   ;;  %s3699_s2 = inlined_call_operand.vmem [shape: bf16[2,9,9,128], index: 2, kind: input, shape index: {}]   ;;  %s3700_s3 = inlined_call_operand.vmem [shape: bf16[2,9,9,128], index: 3, kind: input, shape index: {}]   ;;  %s3701_s4 = inlined_call_operand.vmem [shape: bf16[9,128,128], index: 4, kind: input, shape index: {}]   ;;  %s3702_s5 = inlined_call_operand.vmem [shape: f32[1,128], index: 5, kind: input, shape index: {}]   ;;  %s3703_s6 = inlined_call_operand.vmem [shape: bf16[128,128], index: 6, kind: output, shape index: {0}]   ;;  %s3704_s7 = inlined_call_operand.vmem [shape: f32[2,2,128], index: 7, kind: output, shape index: {1}]  }
   0x1 LB: > { %s3306_s25 = sadd.s32 4294967295, %s3258_s24   ;;  %p2425_p0 = scmp.ge.s32.totalorder %s3258_s24, 1  ;;  %s3258_s24 = sphi %s3300_s24, %s18_s24  }
   0x2   : > { %p270_p1 = scmp.lt.s32.totalorder %s3258_s24, 3 }
   0x4   : > { %p271_p2 = pnand %p2425_p0, %p270_p1 }
   0x5   : > { %v3156_v0 = vld [vmem:[%s3701_s4 + $0x40] sm:$0xff] (!%p271_p2)   ;;  %p321_p3 = scmp.lt.s32.totalorder (!%p271_p2), %s3306_s25, 1  ;;  %v3158_v2 = vld [vmem:[%s3701_s4 + $0x48] sm:$0xff] (!%p271_p2)   ;;  %v3160_v4 = vld [vmem:[%s3701_s4 + $0x50] sm:$0xff] (!%p271_p2)   ;;  %vm691_vm0 = vsmask.f32 (!%p271_p2), 3328 }
   0x6   : > { %274 = sbr.rel (%p271_p2) target bundleno = 416 (0x1a0), region = 44  ;;  %v3157_v1 = vld [vmem:[%s3701_s4 + $0x100] sm:$0xff] (!%p271_p2)   ;;  %2851 = vmatprep.subr.bf16.mxu1 (!%p271_p2), %v3156_v0  ;;  %v3159_v3 = vld [vmem:[%s3701_s4 + $0x108] sm:$0xff] (!%p271_p2)   ;;  %v3161_v5 = vld [vmem:[%s3701_s4 + $0x110] sm:$0xff] (!%p271_p2)   ;;  %vm692_vm1 = vsmask.f32 (!%p271_p2), 7440 }
   0x7   : > { %2947 = vmatprep.subr.bf16.mxu0 (!%p271_p2), %v3157_v1  ;;  %2852 = vmatpush3.bf16.msra.mxu1 (!%p271_p2), %v3156_v0  ;;  %v3162_v6 = vld [vmem:[%s3701_s4 + $0x58] sm:$0xff] (!%p271_p2)   ;;  %v3164_v8 = vld [vmem:[%s3701_s4 + $0x60] sm:$0xff] (!%p271_p2)   ;;  %v3166_v10 = vld [vmem:[%s3701_s4 + $0x68] sm:$0xff] (!%p271_p2)   ;;  %s2430_s17 = sshll.u32 (!%p271_p2), %s3306_s25, 3  ;;  %vm2295_vm3 = vcmask (!%p271_p2), 1040384  }
   0x8   : > { %2948 = vmatpush3.bf16.msra.mxu0 (!%p271_p2), %v3157_v1  ;;  %2853 = vmatprep.subr.bf16.mxu1 (!%p271_p2), %v3158_v2  ;;  %v3163_v7 = vld [vmem:[%s3701_s4 + $0x118] sm:$0xff] (!%p271_p2)   ;;  %v3165_v9 = vld [vmem:[%s3701_s4 + $0x120] sm:$0xff] (!%p271_p2)   ;;  %v3167_v12 = vld [vmem:[%s3701_s4 + $0x128] sm:$0xff] (!%p271_p2)   ;;  %p342_p4 = scmp.lt.s32.totalorder (!%p271_p2), %s2430_s17, 15 }
   0x9   : > { %2949 = vmatprep.subr.bf16.mxu0 (!%p271_p2), %v3159_v3  ;;  %v3168_v14 = vld [vmem:[%s3701_s4 + $0x70] sm:$0xff] (!%p271_p2)   ;;  %v3170_v16 = vld [vmem:[%s3701_s4 + $0x78] sm:$0xff] (!%p271_p2)   ;;  %v3173_v18 = vld [vmem:[%s3701_s4] sm:$0xff] (!%p271_p2)  }
   0xa   : > { %v3169_v15 = vld [vmem:[%s3701_s4 + $0x130] sm:$0xff] (!%p271_p2)   ;;  %v3171_v17 = vld [vmem:[%s3701_s4 + $0x138] sm:$0xff] (!%p271_p2)   ;;  %v3175_v19 = vld [vmem:[%s3701_s4 + $0x140] sm:$0xff] (!%p271_p2)  }
   0xb   : > { %2854 = vmatpush3.bf16.msra.mxu1 (!%p271_p2), %v3158_v2  ;;  %v3178_v22 = vld [vmem:[%s3701_s4 + $0x8] sm:$0xff] (!%p271_p2)   ;;  %v3180_v26 = vld [vmem:[%s3701_s4 + $0x10] sm:$0xff] (!%p271_p2)   ;;  %v3182_v28 = vld [vmem:[%s3701_s4 + $0x18] sm:$0xff] (!%p271_p2)  }
   0xc   : > { %2950 = vmatpush3.bf16.msra.mxu0 (!%p271_p2), %v3159_v3  ;;  %2855 = vmatprep.subr.bf16.mxu1 (!%p271_p2), %v3160_v4  ;;  %v3179_v23 = vld [vmem:[%s3701_s4 + $0x148] sm:$0xff] (!%p271_p2)   ;;  %v3181_v27 = vld [vmem:[%s3701_s4 + $0x150] sm:$0xff] (!%p271_p2)   ;;  %v3183_v31 = vld [vmem:[%s3701_s4 + $0x158] sm:$0xff] (!%p271_p2)  }
   0xd   : > { %s3330_s15 = scalar_select %p321_p3, %s3306_s25, 1  ;;  %2951 = vmatprep.subr.bf16.mxu0 %v3161_v5  ;;  %v3184_v38 = vld [vmem:[%s3701_s4 + $0x20] sm:$0xff]   ;;  %v3186_v47 = vld [vmem:[%s3701_s4 + $0x28] sm:$0xff]   ;;  %vm3440_vm2 = vmor %vm691_vm0, %vm692_vm1 }
   0xe   : > { %v3185_v43 = vld [vmem:[%s3701_s4 + $0x160] sm:$0xff]   ;;  %v3187_v50 = vld [vmem:[%s3701_s4 + $0x168] sm:$0xff]   ;;  %v3189_v2 = vld [vmem:[%s3701_s4 + $0x30] sm:$0xff]   ;;  %s3708_s17 = smov (!%p342_p4, %s2430_s17), 15 }
   0xf   : > { %s3339_s20 = smul.u32 72, %s3330_s15  ;;  %2856 = vmatpush3.bf16.msra.mxu1 %v3160_v4  ;;  %s2431_s22 = sshll.u32 %s3708_s17, 2 }
  0x10   : > { %2952 = vmatpush3.bf16.msra.mxu0 %v3161_v5  ;;  %2857 = vmatprep.subr.bf16.mxu1 %v3162_v6  ;;  %s345_s26 = scalar_lea.vmem %s3703_s6, %s2431_s22  ;;  %s2432_s27 = sshll.u32 %s3330_s15, 1 }
  0x11   : > { %2953 = vmatprep.subr.bf16.mxu0 %v3163_v7  ;;  %s3351_s29 = scalar_lea.vmem %s3698_s1, %s3339_s20  ;;  %s3360_s11 = scalar_lea.vmem %s3700_s3, %s3339_s20 }
  0x12   : > { %v3172_v11 = vld [vmem:[%s3351_s29] ss:$8 sps:$4 sm:$0xff]   ;;  %v3176_v20 = vld [vmem:[%s3351_s29 + $0x10] ss:$8 sps:$4 sm:$0xff]   ;;  %s3405_s21 = scalar_lea.vmem %s3697_s0, %s3339_s20  ;;  %s3415_s28 = scalar_lea.vmem %s3699_s2, %s3339_s20 }
  0x13   : > { %2858 = vmatpush3.bf16.msra.mxu1 %v3162_v6  ;;  %2867 = vmatprep.mubr.bf16.mxu1 %v3172_v11  ;;  %v3174_v13 = vld [vmem:[%s3360_s11] ss:$8 sps:$4 sm:$0xff]   ;;  %v3177_v21 = vld [vmem:[%s3360_s11 + $0x10] ss:$8 sps:$4 sm:$0xff]   ;;  %v1301_v34 = vld [vmem:[%s3415_s28 + $0x4] sm:$0x1]  ;;  %s350_s20 = scalar_lea.vmem %s3704_s7, %s2432_s27 }
  0x14   : > { %2954 = vmatpush3.bf16.msra.mxu0 %v3163_v7  ;;  %2859 = vmatprep.subr.bf16.mxu1 %v3164_v8  ;;  %v3188_v24 = vld [vmem:[%s3351_s29 + $0x20] ss:$8 sps:$4 sm:$0xff]   ;;  %v3192_v29 = vld [vmem:[%s3351_s29 + $0x30] ss:$8 sps:$4 sm:$0xff]   ;;  %v1303_v39 = vld [vmem:[%s3415_s28 + $0xc] sm:$0x1] }
  0x15   : > { %2955 = vmatprep.subr.bf16.mxu0 %v3165_v9  ;;  %2963 = vmatprep.mubr.bf16.mxu0 %v3174_v13  ;;  %v3190_v25 = vld [vmem:[%s3360_s11 + $0x20] ss:$8 sps:$4 sm:$0xff]   ;;  %v3193_v30 = vld [vmem:[%s3360_s11 + $0x30] ss:$8 sps:$4 sm:$0xff]   ;;  %v1326_v40 = vshll.u32 %v1301_v34, 16  ;;  %v1340_v46 = vshll.u32 %v1303_v39, 16 }
  0x16   : > { %v3196_v32 = vld [vmem:[%s3405_s21] ss:$8 sps:$4 sm:$0xff]   ;;  %v1304_v56 = vld [vmem:[%s3415_s28 + $0x10] sm:$0xf]  ;;  %v1305_v57 = vld [vmem:[%s3415_s28 + $0x14] sm:$0x1] }
  0x17   : > { %2860 = vmatpush3.bf16.msra.mxu1 %v3164_v8  ;;  %v1300_v33 = vld [vmem:[%s3415_s28] sm:$0xf]  ;;  %v1302_v35 = vld [vmem:[%s3415_s28 + $0x8] sm:$0xf]  ;;  %v1328_v52 = vrot.slane %v1326_v40, 5  ;;  %v1342_v55 = vrot.slane %v1340_v46, 5 }
  0x18   : > { %2956 = vmatpush3.bf16.msra.mxu0 %v3165_v9  ;;  %2861 = vmatprep.subr.bf16.mxu1 %v3166_v10  ;;  %v1317_v36 = vshrl.u32 %v1300_v33, 16  ;;  %v1320_v37 = vshll.u32 %v1300_v33, 16  ;;  %v1331_v41 = vshrl.u32 %v1302_v35, 16  ;;  %v1334_v42 = vshll.u32 %v1302_v35, 16  ;;  %v1306_v59 = vld [vmem:[%s3415_s28 + $0x18] sm:$0xf] }
  0x19   : > { %2957 = vmatprep.subr.bf16.mxu0 %v3167_v12  ;;  %v1307_v60 = vld [vmem:[%s3415_s28 + $0x1c] sm:$0x1]  ;;  %v1345_v61 = vshrl.u32 %v1304_v56, 16  ;;  %v1348_v63 = vshll.u32 %v1304_v56, 16  ;;  %v1354_v0 = vshll.u32 %v1305_v57, 16  ;;  %v1359_v1 = vshrl.u32 %v1306_v59, 16 }
  0x1a   : > { %v1319_v44 = vrot.slane %v1317_v36, 4  ;;  %v1322_v45 = vrot.slane %v1320_v37, 5  ;;  %v1333_v48 = vrot.slane %v1331_v41, 4  ;;  %v1336_v49 = vrot.slane %v1334_v42, 5  ;;  %v3191_v6 = vld [vmem:[%s3701_s4 + $0x170] sm:$0xff]  }
  0x1b   : > { %2862 = vmatpush3.bf16.msra.mxu1 %v3166_v10  ;;  %v1347_v4 = vrot.slane %v1345_v61, 4  ;;  %v1362_v5 = vshll.u32 %v1306_v59, 16  ;;  %v1350_v8 = vrot.slane %v1348_v63, 5  ;;  %v1361_v9 = vrot.slane %v1359_v1, 4  ;;  %v3210_v37 = vld [vmem:[%s3405_s21 + $0x20] ss:$8 sps:$4 sm:$0xff]  }
  0x1c   : > { %2958 = vmatpush3.bf16.msra.mxu0 %v3167_v12  ;;  %2863 = vmatprep.subr.bf16.mxu1 %v3168_v14  ;;  %v1323_v51 = vor.u32 %v1322_v45, %v1319_v44  ;;  %v1337_v54 = vor.u32 %v1336_v49, %v1333_v48  ;;  %v1368_v10 = vshll.u32 %v1307_v60, 16  ;;  %v1356_v12 = vrot.slane %v1354_v0, 5  ;;  %v3213_v48 = vld [vmem:[%s3405_s21 + $0x30] ss:$8 sps:$4 sm:$0xff]  }
  0x1d   : > { %2959 = vmatprep.subr.bf16.mxu0 %v3169_v15  ;;  %v1364_v13 = vrot.slane %v1362_v5, 5  ;;  %v1312_v49 = vld [vmem:[%s3415_s28 + $0x30] sm:$0xf]  ;;  %v3204_v59 = vld [vmem:[%s3701_s4 + $0x98] sm:$0xff]  }
  0x1e   : > { %v1324_v58 = vrot.slane %v1323_v51, 4  ;;  %v1338_v62 = vrot.slane %v1337_v54, 4  ;;  %v1314_v51 = vld [vmem:[%s3415_s28 + $0x38] sm:$0xf]  ;;  %v1401_v56 = vshrl.u32 %v1312_v49, 16  ;;  %v1404_v57 = vshll.u32 %v1312_v49, 16 }
  0x1f   : > { %2864 = vmatpush3.bf16.msra.mxu1 %v3168_v14  ;;  %v3194_v14 = vld [vmem:[%s3701_s4 + $0x38] sm:$0xff]   ;;  %v1415_v61 = vshrl.u32 %v1314_v51, 16 }
  0x20   : > { %2960 = vmatpush3.bf16.msra.mxu0 %v3169_v15  ;;  %2865 = vmatprep.subr.bf16.mxu1 %v3170_v16  ;;  %v1329_v3 = vsel %vm3440_vm2, %v1324_v58, %v1328_v52  ;;  %v1343_v7 = vsel %vm3440_vm2, %v1338_v62, %v1342_v55  ;;  %v1351_v15 = vor.u32 %v1350_v8, %v1347_v4  ;;  %v3203_v52 = vld [vmem:[%s3701_s4 + $0x190] sm:$0xff]   ;;  %v1315_v55 = vld [vmem:[%s3415_s28 + $0x3c] sm:$0x1]  ;;  %v1418_v62 = vshll.u32 %v1314_v51, 16 }
  0x21   : > { %2961 = vmatprep.subr.bf16.mxu0 %v3171_v17  ;;  %v2573_v11 = vcombine.low %v1329_v3, %v1343_v7  ;;  %v1424_v63 = vshll.u32 %v1315_v55, 16  ;;  %v1403_v1 = vrot.slane %v1401_v56, 4  ;;  %v3205_v4 = vld [vmem:[%s3701_s4 + $0x198] sm:$0xff]  }
  0x22   : > { %v1420_v7 = vrot.slane %v1418_v62, 5 }
  0x23   : > { %2866 = vmatpush3.bf16.msra.mxu1 %v3170_v16  ;;  %v1365_v16 = vor.u32 %v1364_v13, %v1361_v9  ;;  %v1426_v8 = vrot.slane %v1424_v63, 5  ;;  %v3206_v13 = vld [vmem:[%s3701_s4 + $0xa0] sm:$0xff]  }
  0x24   : > { %2962 = vmatpush3.bf16.msra.mxu0 %v3171_v17  ;;  %2875 = vmatprep.subr.bf16.mxu1 %v3173_v18  ;;  %v1352_v17 = vrot.slane %v1351_v15, 4 }
  0x25   : > { %2971 = vmatprep.subr.bf16.mxu0 %v3175_v19 }
  0x26   : > { %2868 = vmatmul.mubr.bf16.vlgmr.msra.gmra.mrb[0].mxu1 %v3176_v20  ;;  %v1366_v20 = vrot.slane %v1365_v16, 4  ;;  %v677_v16 = vld [vmem:[%s3405_s21 + $0x8] sm:$0xf] }
  0x27   : > { %2876 = vmatpush3.bf16.msra.mxu1 %v3173_v18  ;;  %2964 = vmatmul.mubr.bf16.vlgmr.msra.gmra.mrb[0].mxu0 %v3177_v21  ;;  %v1370_v18 = vrot.slane %v1368_v10, 5  ;;  %v3197_v21 = vld [vmem:[%s3701_s4 + $0x80] sm:$0xff]  }
  0x28   : > { %2972 = vmatpush3.bf16.msra.mxu0 %v3175_v19  ;;  %2877 = vmatprep.subr.bf16.mxu1 %v3178_v22  ;;  %v3195_v19 = vld [vmem:[%s3701_s4 + $0x178] sm:$0xff]  }
  0x29   : > { %2973 = vmatprep.subr.bf16.mxu0 %v3179_v23  ;;  %2871 = vmatprep.mubr.bf16.mxu1 %v3188_v24  ;;  %v3198_v24 = vld [vmem:[%s3701_s4 + $0x180] sm:$0xff]  }
  0x2a   : > { %2967 = vmatprep.mubr.bf16.mxu0 %v3190_v25  ;;  %v3199_v25 = vld [vmem:[%s3405_s21 + $0x10] ss:$8 sps:$4 sm:$0xff]  }
  0x2b   : > { %2878 = vmatpush3.bf16.msra.mxu1 %v3178_v22  ;;  %v1357_v22 = vsel %vm3440_vm2, %v1352_v17, %v1356_v12  ;;  %v676_v12 = vld [vmem:[%s3405_s21 + $0x4] sm:$0x1]  ;;  %v678_v17 = vld [vmem:[%s3405_s21 + $0xc] sm:$0x1] }
  0x2c   : > { %2974 = vmatpush3.bf16.msra.mxu0 %v3179_v23  ;;  %2879 = vmatprep.subr.bf16.mxu1 %v3180_v26  ;;  %v1371_v23 = vsel %vm3440_vm2, %v1366_v20, %v1370_v18 }
  0x2d   : > { %2975 = vmatprep.subr.bf16.mxu0 %v3181_v27 }
  0x2e   : > { %2872 = vmatmul.mubr.bf16.gmra.mrb[4].mxu1 %v3192_v29  ;;  %v3201_v29 = vld [vmem:[%s3701_s4 + $0x188] sm:$0xff]  }
  0x2f   : > { %2880 = vmatpush3.bf16.msra.mxu1 %v3180_v26  ;;  %2968 = vmatmul.mubr.bf16.gmra.mrb[4].mxu0 %v3193_v30  ;;  %v3200_v26 = vld [vmem:[%s3701_s4 + $0x88] sm:$0xff]   ;;  %v1309_v30 = vld [vmem:[%s3415_s28 + $0x24] sm:$0x1] }
  0x30   : > { %2976 = vmatpush3.bf16.msra.mxu0 %v3181_v27  ;;  %2881 = vmatprep.subr.bf16.mxu1 %v3182_v28  ;;  %v1308_v27 = vld [vmem:[%s3415_s28 + $0x20] sm:$0xf]  ;;  %v1382_v35 = vshll.u32 %v1309_v30, 16 }
  0x31   : > { %2977 = vmatprep.subr.bf16.mxu0 %v3183_v31  ;;  %2891 = vmatprep.mubr.bf16.mxu1 %v3196_v32  ;;  %v1311_v32 = vld [vmem:[%s3415_s28 + $0x2c] sm:$0x1]  ;;  %v1373_v33 = vshrl.u32 %v1308_v27, 16  ;;  %v1376_v34 = vshll.u32 %v1308_v27, 16  ;;  %v718_v27 = vshll.u32 %v678_v17, 16 }
  0x32   : > { %2987 = vmatprep.mubr.bf16.mxu0 %v2573_v11  ;;  %v1396_v39 = vshll.u32 %v1311_v32, 16  ;;  %v1384_v44 = vrot.slane %v1382_v35, 5  ;;  %v675_v11 = vld [vmem:[%s3405_s21] sm:$0xf]  ;;  %v3208_v32 = vld [vmem:[%s3701_s4 + $0xa8] sm:$0xff]  }
  0x33   : > { %2882 = vmatpush3.bf16.msra.mxu1 %v3182_v28  ;;  %v2574_v28 = vcombine.low %v1357_v22, %v1371_v23  ;;  %v1375_v40 = vrot.slane %v1373_v33, 4  ;;  %v1378_v41 = vrot.slane %v1376_v34, 5  ;;  %v695_v18 = vshrl.u32 %v675_v11, 16  ;;  %v686_v17 = vld [vmem:[%s3405_s21 + $0x2c] sm:$0x1] }
  0x34   : > { %2978 = vmatpush3.bf16.msra.mxu0 %v3183_v31  ;;  %2883 = vmatprep.subr.bf16.mxu1 %v3184_v38  ;;  %v1310_v31 = vld [vmem:[%s3415_s28 + $0x28] sm:$0xf]  ;;  %v1398_v46 = vrot.slane %v1396_v39, 5  ;;  %v709_v22 = vshrl.u32 %v677_v16, 16  ;;  %v712_v23 = vshll.u32 %v677_v16, 16 }
  0x35   : > { %2979 = vmatprep.subr.bf16.mxu0 %v3185_v43  ;;  %v1387_v36 = vshrl.u32 %v1310_v31, 16  ;;  %v685_v16 = vld [vmem:[%s3405_s21 + $0x28] sm:$0xf] }
  0x36   : > { %v711_v30 = vrot.slane %v709_v22, 4  ;;  %v765_v22 = vshrl.u32 %v685_v16, 16 }
  0x37   : > { %2884 = vmatpush3.bf16.msra.mxu1 %v3184_v38  ;;  %v1390_v38 = vshll.u32 %v1310_v31, 16  ;;  %v1389_v42 = vrot.slane %v1387_v36, 4  ;;  %v714_v31 = vrot.slane %v712_v23, 5  ;;  %v720_v36 = vrot.slane %v718_v27, 5 }
  0x38   : > { %2980 = vmatpush3.bf16.msra.mxu0 %v3185_v43  ;;  %2885 = vmatprep.subr.bf16.mxu1 %v3186_v47  ;;  %v3202_v43 = vld [vmem:[%s3701_s4 + $0x90] sm:$0xff]   ;;  %v768_v23 = vshll.u32 %v685_v16, 16  ;;  %v2658_v16 = vld [vmem:[%s3405_s21 + $0xc] sm:$0x1] }
  0x39   : > { %2981 = vmatprep.subr.bf16.mxu0 %v3187_v50  ;;  %v1392_v45 = vrot.slane %v1390_v38, 5  ;;  %v3209_v38 = vld [vmem:[%s3701_s4 + $0x1a8] sm:$0xff]  }
  0x3b   : > { %2886 = vmatpush3.bf16.msra.mxu1 %v3186_v47  ;;  %v1379_v47 = vor.u32 %v1378_v41, %v1375_v40  ;;  %v1393_v54 = vor.u32 %v1392_v45, %v1389_v42  ;;  %v715_v40 = vor.u32 %v714_v31, %v711_v30  ;;  %v679_v41 = vld [vmem:[%s3405_s21 + $0x10] sm:$0xf]  ;;  %v770_v31 = vrot.slane %v768_v23, 5 }
  0x3c   : > { %2982 = vmatpush3.bf16.msra.mxu0 %v3187_v50  ;;  %2887 = vmatprep.subr.bf16.mxu1 %v3189_v2  ;;  %v1313_v50 = vld [vmem:[%s3415_s28 + $0x34] sm:$0x1]  ;;  %v723_v45 = vshrl.u32 %v679_v41, 16  ;;  %v687_v30 = vld [vmem:[%s3405_s21 + $0x30] sm:$0xf] }
  0x3d   : > { %2983 = vmatprep.subr.bf16.mxu0 %v3191_v6  ;;  %v1410_v58 = vshll.u32 %v1313_v50, 16  ;;  %v1380_v60 = vrot.slane %v1379_v47, 4  ;;  %v1394_v0 = vrot.slane %v1393_v54, 4  ;;  %v682_v47 = vld [vmem:[%s3405_s21 + $0x1c] sm:$0x1] }
  0x3f   : > { %2888 = vmatpush3.bf16.msra.mxu1 %v3189_v2  ;;  %v1406_v2 = vrot.slane %v1404_v57, 5  ;;  %v1412_v3 = vrot.slane %v1410_v58, 5  ;;  %v1385_v5 = vsel %vm3440_vm2, %v1380_v60, %v1384_v44  ;;  %v1399_v9 = vsel %vm3440_vm2, %v1394_v0, %v1398_v46  ;;  %v681_v44 = vld [vmem:[%s3405_s21 + $0x18] sm:$0xf]  ;;  %v3212_v60 = vld [vmem:[%s3701_s4 + $0x1b0] sm:$0xff]  }
  0x40   : > { %2984 = vmatpush3.bf16.msra.mxu0 %v3191_v6  ;;  %2889 = vmatprep.subr.bf16.mxu1 %v3194_v14  ;;  %v1417_v6 = vrot.slane %v1415_v61, 4  ;;  %v716_v46 = vrot.slane %v715_v40, 4  ;;  %v737_v50 = vshrl.u32 %v681_v44, 16  ;;  %v740_v54 = vshll.u32 %v681_v44, 16 }
  0x41   : > { %2985 = vmatprep.subr.bf16.mxu0 %v3195_v19  ;;  %v1407_v10 = vor.u32 %v1406_v2, %v1403_v1  ;;  %v746_v58 = vshll.u32 %v682_v47, 16 }
  0x42   : > { %v1421_v15 = vor.u32 %v1420_v7, %v1417_v6  ;;  %v721_v55 = vsel %vm3440_vm2, %v716_v46, %v720_v36  ;;  %v739_v57 = vrot.slane %v737_v50, 4  ;;  %v742_v63 = vrot.slane %v740_v54, 5  ;;  %v3215_v6 = vld [vmem:[%s3701_s4 + $0x1b8] sm:$0xff]   ;;  %v3216_v7 = vld [vmem:[%s3701_s4 + $0xc0] sm:$0xff]  }
  0x43   : > { %2890 = vmatpush3.bf16.msra.mxu1 %v3194_v14  ;;  %v2575_v14 = vcombine.low %v1385_v5, %v1399_v9  ;;  %v1408_v20 = vrot.slane %v1407_v10, 4  ;;  %v3218_v10 = vld [vmem:[%s3701_s4 + $0x1c0] sm:$0xff]   ;;  %v3224_v50 = vld [vmem:[%s3701_s4 + $0xd8] sm:$0xff]  }
  0x44   : > { %2986 = vmatpush3.bf16.msra.mxu0 %v3195_v19  ;;  %2899 = vmatprep.subr.bf16.mxu1 %v3197_v21  ;;  %v698_v19 = vshll.u32 %v675_v11, 16  ;;  %v743_v1 = vor.u32 %v742_v63, %v739_v57  ;;  %v3219_v11 = vld [vmem:[%s3405_s21 + $0x18] ss:$8 sps:$4 sm:$0xff]  }
  0x45   : > { %2995 = vmatprep.subr.bf16.mxu0 %v3198_v24 }
  0x46   : > { %2892 = vmatmul.mubr.bf16.vlgmr.msra.gmra.mrb[0].mxu1 %v3199_v25  ;;  %v697_v25 = vrot.slane %v695_v18, 4  ;;  %v744_v5 = vrot.slane %v743_v1, 4  ;;  %v3221_v18 = vld [vmem:[%s3701_s4 + $0x1c8] sm:$0xff]   ;;  %v3226_v1 = vld [vmem:[%s3701_s4 + $0xe0] sm:$0xff]  }
  0x47   : > { %2900 = vmatpush3.bf16.msra.mxu1 %v3197_v21  ;;  %2988 = vmatmul.mubr.bf16.vlgmr.msra.gmra.mrb[0].mxu0 %v2574_v28  ;;  %v704_v21 = vshll.u32 %v676_v12, 16  ;;  %v3207_v28 = vld [vmem:[%s3701_s4 + $0x1a0] sm:$0xff]  }
  0x48   : > { %2996 = vmatpush3.bf16.msra.mxu0 %v3198_v24  ;;  %2901 = vmatprep.subr.bf16.mxu1 %v3200_v26  ;;  %v1422_v24 = vrot.slane %v1421_v15, 4  ;;  %v683_v12 = vld [vmem:[%s3405_s21 + $0x20] sm:$0xf]  ;;  %v684_v15 = vld [vmem:[%s3405_s21 + $0x24] sm:$0x1] }
  0x49   : > { %2997 = vmatprep.subr.bf16.mxu0 %v3201_v29  ;;  %2895 = vmatprep.mubr.bf16.mxu1 %v3210_v37  ;;  %v706_v35 = vrot.slane %v704_v21, 5  ;;  %v3217_v37 = vld [vmem:[%s3405_s21 + $0x8] ss:$8 sps:$4 sm:$0xff]   ;;  %v760_v21 = vshll.u32 %v684_v15, 16 }
  0x4a   : > { %2991 = vmatprep.mubr.bf16.mxu0 %v2575_v14  ;;  %v1427_v33 = vsel %vm3440_vm2, %v1422_v24, %v1426_v8  ;;  %v3220_v14 = vld [vmem:[%s3701_s4 + $0xc8] sm:$0xff]   ;;  %v774_v24 = vshll.u32 %v686_v17, 16  ;;  %v2659_v17 = vld [vmem:[%s3405_s21 + $0x10] sm:$0xf] }
  0x4b   : > { %2902 = vmatpush3.bf16.msra.mxu1 %v3200_v26  ;;  %v700_v26 = vrot.slane %v698_v19, 5  ;;  %v751_v19 = vshrl.u32 %v683_v12, 16  ;;  %v2657_v15 = vld [vmem:[%s3405_s21 + $0x8] sm:$0xf]  ;;  %v1958_v23 = vshll.u32 %v2659_v17, 16 }
  0x4c   : > { %2998 = vmatpush3.bf16.msra.mxu0 %v3201_v29  ;;  %2903 = vmatprep.subr.bf16.mxu1 %v3202_v43  ;;  %v1413_v29 = vsel %vm3440_vm2, %v1408_v20, %v1412_v3  ;;  %v748_v3 = vrot.slane %v746_v58, 5  ;;  %v754_v20 = vshll.u32 %v683_v12, 16  ;;  %v3232_v58 = vld [vmem:[%s3405_s21 + $0x38] ss:$8 sps:$4 sm:$0xff]  }
  0x4d   : > { %2999 = vmatprep.subr.bf16.mxu0 %v3203_v52  ;;  %v701_v34 = vor.u32 %v700_v26, %v697_v25  ;;  %v2576_v39 = vcombine.low %v1413_v29, %v1427_v33  ;;  %v3230_v25 = vld [vmem:[%s3405_s21 + $0x28] ss:$8 sps:$4 sm:$0xff]   ;;  %v753_v26 = vrot.slane %v751_v19, 4  ;;  %v767_v29 = vrot.slane %v765_v22, 4  ;;  %v688_v33 = vld [vmem:[%s3405_s21 + $0x34] sm:$0x1] }
  0x4e   : > { %2896 = vmatmul.mubr.bf16.gmra.mrb[4].mxu1 %v3213_v48  ;;  %v726_v48 = vshll.u32 %v679_v41, 16  ;;  %v749_v9 = vsel %vm3440_vm2, %v744_v5, %v748_v3  ;;  %v756_v27 = vrot.slane %v754_v20, 5  ;;  %v788_v40 = vshll.u32 %v688_v33, 16  ;;  %v3223_v41 = vld [vmem:[%s3701_s4 + $0x1d0] sm:$0xff]   ;;  %v3227_v5 = vld [vmem:[%s3701_s4 + $0x1e0] sm:$0xff]   ;;  %v3234_v12 = vld [vmem:[%s3701_s4 + $0xf8] sm:$0xff]  }
  0x4f   : > { %2904 = vmatpush3.bf16.msra.mxu1 %v3202_v43  ;;  %v702_v42 = vrot.slane %v701_v34, 4  ;;  %v680_v43 = vld [vmem:[%s3405_s21 + $0x14] sm:$0x1]  ;;  %2992 = vmatmul.mubr.bf16.gmra.mrb[4].mxu0 %v2576_v39  ;;  %v689_v34 = vld [vmem:[%s3405_s21 + $0x38] sm:$0xf]  ;;  %v782_v39 = vshll.u32 %v687_v30, 16 }
  0x50   : > { %3000 = vmatpush3.bf16.msra.mxu0 %v3203_v52  ;;  %2905 = vmatprep.subr.bf16.mxu1 %v3204_v59  ;;  %v732_v49 = vshll.u32 %v680_v43, 16  ;;  %v725_v52 = vrot.slane %v723_v45, 4  ;;  %v728_v56 = vrot.slane %v726_v48, 5  ;;  %v757_v36 = vor.u32 %v756_v27, %v753_v26  ;;  %v2668_v33 = vld [vmem:[%s3405_s21 + $0x34] sm:$0x1] }
  0x51   : > { %3001 = vmatprep.subr.bf16.mxu0 %v3205_v4  ;;  %v707_v51 = vsel %vm3440_vm2, %v702_v42, %v706_v35  ;;  %3011 = vmatprep.mubr.bf16.mxu0 %v3217_v37  ;;  %v3222_v35 = vld [vmem:[%s3701_s4 + $0xd0] sm:$0xff]   ;;  %v690_v37 = vld [vmem:[%s3405_s21 + $0x3c] sm:$0x1]  ;;  %v771_v42 = vor.u32 %v770_v31, %v767_v29  ;;  %v793_v43 = vshrl.u32 %v689_v34, 16  ;;  %v796_v44 = vshll.u32 %v689_v34, 16 }
  0x52   : > { %v2489_v61 = vcombine.low %v707_v51, %v721_v55  ;;  %v734_v62 = vrot.slane %v732_v49, 5  ;;  %v729_v0 = vor.u32 %v728_v56, %v725_v52  ;;  %v802_v45 = vshll.u32 %v690_v37, 16  ;;  %v2667_v29 = vld [vmem:[%s3405_s21 + $0x30] sm:$0xf]  ;;  %v3239_v34 = vld [vmem:[%s3351_s29 + $0x18] ss:$8 sps:$4 sm:$0xff]  }
  0x53   : > { %2906 = vmatpush3.bf16.msra.mxu1 %v3204_v59  ;;  %v3211_v59 = vld [vmem:[%s3701_s4 + $0xb0] sm:$0xff]   ;;  %v758_v46 = vrot.slane %v757_v36, 4  ;;  %v784_v48 = vrot.slane %v782_v39, 5  ;;  %v790_v49 = vrot.slane %v788_v40, 5  ;;  %v772_v51 = vrot.slane %v771_v42, 4  ;;  %v3241_v39 = vld [vmem:[%s3701_s4 + $0x208] sm:$0xff]  }
  0x54   : > { %3002 = vmatpush3.bf16.msra.mxu0 %v3205_v4  ;;  %2907 = vmatprep.subr.bf16.mxu1 %v3206_v13  ;;  %v730_v2 = vrot.slane %v729_v0, 4  ;;  %v3214_v4 = vld [vmem:[%s3701_s4 + $0xb8] sm:$0xff]   ;;  %v795_v52 = vrot.slane %v793_v43, 4  ;;  %v798_v54 = vrot.slane %v796_v44, 5  ;;  %v804_v55 = vrot.slane %v802_v45, 5 }
  0x55   : > { %3003 = vmatprep.subr.bf16.mxu0 %v3207_v28  ;;  %2915 = vmatprep.mubr.bf16.mxu1 %v2489_v61  ;;  %v3225_v61 = vld [vmem:[%s3701_s4 + $0x1d8] sm:$0xff]   ;;  %v1941_v19 = vshrl.u32 %v2657_v15, 16  ;;  %v1944_v20 = vshll.u32 %v2657_v15, 16  ;;  %v1955_v22 = vshrl.u32 %v2659_v17, 16  ;;  %v2014_v42 = vshll.u32 %v2667_v29, 16  ;;  %v3248_v15 = vld [vmem:[%s3701_s4 + $0x220] sm:$0xff]  }
  0x56   : > { %v735_v8 = vsel %vm3440_vm2, %v730_v2, %v734_v62  ;;  %v2020_v43 = vshll.u32 %v2668_v33, 16  ;;  %v3242_v44 = vld [vmem:[%s3415_s28 + $0x20] ss:$8 sps:$4 sm:$0xff]  }
  0x57   : > { %2908 = vmatpush3.bf16.msra.mxu1 %v3206_v13  ;;  %v2490_v13 = vcombine.low %v735_v8, %v749_v9  ;;  %v3228_v8 = vld [vmem:[%s3701_s4 + $0xe8] sm:$0xff]   ;;  %v1943_v26 = vrot.slane %v1941_v19, 4  ;;  %v1946_v27 = vrot.slane %v1944_v20, 5  ;;  %v1957_v31 = vrot.slane %v1955_v22, 4 }
  0x58   : > { %3004 = vmatpush3.bf16.msra.mxu0 %v3207_v28  ;;  %2909 = vmatprep.subr.bf16.mxu1 %v3208_v32  ;;  %v762_v28 = vrot.slane %v760_v21, 5  ;;  %v3229_v9 = vld [vmem:[%s3701_s4 + $0x1e8] sm:$0xff]   ;;  %v1950_v21 = vshll.u32 %v2658_v16, 16 }
  0x59   : > { %3005 = vmatprep.subr.bf16.mxu0 %v3209_v38  ;;  %v3249_v20 = vld [vmem:[%s3701_s4 + $0x228] sm:$0xff]  }
  0x5a   : > { %v763_v56 = vsel %vm3440_vm2, %v758_v46, %v762_v28  ;;  %v2666_v28 = vld [vmem:[%s3405_s21 + $0x2c] sm:$0x1]  ;;  %v1952_v45 = vrot.slane %v1950_v21, 5  ;;  %v2670_v21 = vld [vmem:[%s3405_s21 + $0x3c] sm:$0x1] }
  0x5b   : > { %2910 = vmatpush3.bf16.msra.mxu1 %v3208_v32  ;;  %v776_v32 = vrot.slane %v774_v24, 5 }
  0x5c   : > { %3006 = vmatpush3.bf16.msra.mxu0 %v3209_v38  ;;  %2911 = vmatprep.subr.bf16.mxu1 %v3211_v59  ;;  %v779_v38 = vshrl.u32 %v687_v30, 16  ;;  %v3238_v30 = vld [vmem:[%s3415_s28 + $0x10] ss:$8 sps:$4 sm:$0xff]  }
  0x5d   : > { %3007 = vmatprep.subr.bf16.mxu0 %v3212_v60 }
  0x5e   : > { %v781_v47 = vrot.slane %v779_v38, 4  ;;  %v2006_v38 = vshll.u32 %v2666_v28, 16 }
  0x5f   : > { %2912 = vmatpush3.bf16.msra.mxu1 %v3211_v59  ;;  %v777_v59 = vsel %vm3440_vm2, %v772_v51, %v776_v32  ;;  %v1960_v32 = vrot.slane %v1958_v23, 5 }
  0x60   : > { %3008 = vmatpush3.bf16.msra.mxu0 %v3212_v60  ;;  %2913 = vmatprep.subr.bf16.mxu1 %v3214_v4  ;;  %v785_v57 = vor.u32 %v784_v48, %v781_v47  ;;  %v799_v60 = vor.u32 %v798_v54, %v795_v52  ;;  %v2491_v62 = vcombine.low %v763_v56, %v777_v59  ;;  %v2016_v54 = vrot.slane %v2014_v42, 5 }
  0x61   : > { %3009 = vmatprep.subr.bf16.mxu0 %v3215_v6  ;;  %v1961_v40 = vor.u32 %v1960_v32, %v1957_v31  ;;  %v2008_v56 = vrot.slane %v2006_v38, 5  ;;  %v2022_v59 = vrot.slane %v2020_v43, 5  ;;  %v2662_v31 = vld [vmem:[%s3405_s21 + $0x1c] sm:$0x1]  ;;  %v2664_v32 = vld [vmem:[%s3405_s21 + $0x24] sm:$0x1] }
  0x62   : > { %v786_v63 = vrot.slane %v785_v57, 4  ;;  %v800_v0 = vrot.slane %v799_v60, 4  ;;  %v3246_v57 = vld [vmem:[%s3701_s4 + $0x210] sm:$0xff]  }
  0x63   : > { %2914 = vmatpush3.bf16.msra.mxu1 %v3214_v4  ;;  %v3237_v4 = vld [vmem:[%s3351_s29 + $0x8] ss:$8 sps:$4 sm:$0xff]   ;;  %v1962_v51 = vrot.slane %v1961_v40, 4 }
  0x64   : > { %3010 = vmatpush3.bf16.msra.mxu0 %v3215_v6  ;;  %2923 = vmatprep.subr.bf16.mxu1 %v3216_v7  ;;  %v791_v2 = vsel %vm3440_vm2, %v786_v63, %v790_v49  ;;  %v805_v3 = vsel %vm3440_vm2, %v800_v0, %v804_v55  ;;  %v3243_v49 = vld [vmem:[%s3351_s29 + $0x28] ss:$8 sps:$4 sm:$0xff]  }
  0x65   : > { %3019 = vmatprep.subr.bf16.mxu0 %v3218_v10  ;;  %v2492_v6 = vcombine.low %v791_v2, %v805_v3  ;;  %v3247_v3 = vld [vmem:[%s3701_s4 + $0x218] sm:$0xff]  }
  0x66   : > { %2916 = vmatmul.mubr.bf16.vlgmr.msra.gmra.mrb[0].mxu1 %v2490_v13  ;;  %v3235_v13 = vld [vmem:[%s3701_s4 + $0x1f8] sm:$0xff]  }
  0x67   : > { %2924 = vmatpush3.bf16.msra.mxu1 %v3216_v7  ;;  %3012 = vmatmul.mubr.bf16.vlgmr.msra.gmra.mrb[0].mxu0 %v3219_v11  ;;  %v3236_v7 = vld [vmem:[%s3415_s28] ss:$8 sps:$4 sm:$0xff]   ;;  %v3233_v11 = vld [vmem:[%s3701_s4 + $0x1f0] sm:$0xff]  }
  0x68   : > { %3020 = vmatpush3.bf16.msra.mxu0 %v3218_v10  ;;  %2925 = vmatprep.subr.bf16.mxu1 %v3220_v14  ;;  %v3231_v10 = vld [vmem:[%s3701_s4 + $0xf0] sm:$0xff]  }
  0x69   : > { %3021 = vmatprep.subr.bf16.mxu0 %v3221_v18  ;;  %3015 = vmatprep.mubr.bf16.mxu0 %v3230_v25  ;;  %v2665_v25 = vld [vmem:[%s3405_s21 + $0x28] sm:$0xf] }
  0x6a   : > { %2919 = vmatprep.mubr.bf16.mxu1 %v2491_v62  ;;  %v1997_v36 = vshrl.u32 %v2665_v25, 16  ;;  %v2000_v37 = vshll.u32 %v2665_v25, 16 }
  0x6b   : > { %2926 = vmatpush3.bf16.msra.mxu1 %v3220_v14  ;;  %v3240_v14 = vld [vmem:[%s3701_s4 + $0x200] sm:$0xff]  }
  0x6c   : > { %3022 = vmatpush3.bf16.msra.mxu0 %v3221_v18  ;;  %2927 = vmatprep.subr.bf16.mxu1 %v3222_v35  ;;  %v2660_v18 = vld [vmem:[%s3405_s21 + $0x14] sm:$0x1]  ;;  %v1999_v47 = vrot.slane %v1997_v36, 4  ;;  %v2002_v48 = vrot.slane %v2000_v37, 5 }
  0x6d   : > { %3023 = vmatprep.subr.bf16.mxu0 %v3223_v41  ;;  %v1964_v24 = vshll.u32 %v2660_v18, 16  ;;  %v3250_v37 = vld [vmem:[%s3701_s4 + $0x230] sm:$0xff]  }
  0x6e   : > { %2920 = vmatmul.mubr.bf16.gmra.mrb[4].mxu1 %v2492_v6  ;;  %v2003_v55 = vor.u32 %v2002_v48, %v1999_v47  ;;  %v2671_v6 = vld [vmem:[%s3405_s21 + $0x40] sm:$0xf] }
  0x6f   : > { %2928 = vmatpush3.bf16.msra.mxu1 %v3222_v35  ;;  %3016 = vmatmul.mubr.bf16.gmra.mrb[4].mxu0 %v3232_v58  ;;  %v1947_v35 = vor.u32 %v1946_v27, %v1943_v26  ;;  %v1966_v46 = vrot.slane %v1964_v24, 5 }
  0x70   : > { %3024 = vmatpush3.bf16.msra.mxu0 %v3223_v41  ;;  %2929 = vmatprep.subr.bf16.mxu1 %v3224_v50  ;;  %v2011_v41 = vshrl.u32 %v2667_v29, 16  ;;  %v2004_v60 = vrot.slane %v2003_v55, 4 }
  0x71   : > { %3025 = vmatprep.subr.bf16.mxu0 %v3225_v61  ;;  %3035 = vmatprep.mubr.bf16.mxu0 %v3237_v4  ;;  %v1967_v63 = vsel %vm3440_vm2, %v1962_v51, %v1966_v46  ;;  %v3251_v46 = vld [vmem:[%s3701_s4 + $0x238] sm:$0xff]  }
  0x72   : > { %2939 = vmatprep.mubr.bf16.mxu1 %v3236_v7  ;;  %v2013_v52 = vrot.slane %v2011_v41, 4  ;;  %v2009_v2 = vsel %vm3440_vm2, %v2004_v60, %v2008_v56  ;;  %v1992_v41 = vshll.u32 %v2664_v32, 16 }
  0x73   : > { %2930 = vmatpush3.bf16.msra.mxu1 %v3224_v50  ;;  %v1948_v50 = vrot.slane %v1947_v35, 4 }
  0x74   : > { %3026 = vmatpush3.bf16.msra.mxu0 %v3225_v61  ;;  %2931 = vmatprep.subr.bf16.mxu1 %v3226_v1  ;;  %v2017_v58 = vor.u32 %v2016_v54, %v2013_v52  ;;  %v3244_v61 = vld [vmem:[%s3415_s28 + $0x30] ss:$8 sps:$4 sm:$0xff]  }
  0x75   : > { %3027 = vmatprep.subr.bf16.mxu0 %v3227_v5  ;;  %v1953_v62 = vsel %vm3440_vm2, %v1948_v50, %v1952_v45  ;;  %v1994_v50 = vrot.slane %v1992_v41, 5 }
  0x76   : > { %v2018_v0 = vrot.slane %v2017_v58, 4  ;;  %v2689_v7 = vcombine.low %v1953_v62, %v1967_v63 }
  0x77   : > { %2932 = vmatpush3.bf16.msra.mxu1 %v3226_v1  ;;  %v3245_v1 = vld [vmem:[%s3351_s29 + $0x38] ss:$8 sps:$4 sm:$0xff]  }
  0x78   : > { %3028 = vmatpush3.bf16.msra.mxu0 %v3227_v5  ;;  %2933 = vmatprep.subr.bf16.mxu1 %v3228_v8  ;;  %v2023_v4 = vsel %vm3440_vm2, %v2018_v0, %v2022_v59  ;;  %v2669_v5 = vld [vmem:[%s3405_s21 + $0x38] sm:$0xf] }
  0x79   : > { %3029 = vmatprep.subr.bf16.mxu0 %v3229_v9 }
  0x7b   : > { %2934 = vmatpush3.bf16.msra.mxu1 %v3228_v8  ;;  %v2661_v8 = vld [vmem:[%s3405_s21 + $0x18] sm:$0xf] }
  0x7c   : > { %3030 = vmatpush3.bf16.msra.mxu0 %v3229_v9  ;;  %2935 = vmatprep.subr.bf16.mxu1 %v3231_v10  ;;  %v2663_v9 = vld [vmem:[%s3405_s21 + $0x20] sm:$0xf]  ;;  %v1969_v16 = vshrl.u32 %v2661_v8, 16  ;;  %v1972_v17 = vshll.u32 %v2661_v8, 16 }
  0x7d   : > { %3031 = vmatprep.subr.bf16.mxu0 %v3233_v11  ;;  %v1983_v18 = vshrl.u32 %v2663_v9, 16  ;;  %v1986_v19 = vshll.u32 %v2663_v9, 16 }
  0x7e   : > { %v1971_v26 = vrot.slane %v1969_v16, 4  ;;  %v1974_v27 = vrot.slane %v1972_v17, 5 }
  0x7f   : > { %2936 = vmatpush3.bf16.msra.mxu1 %v3231_v10  ;;  %v2691_v10 = vcombine.low %v2009_v2, %v2023_v4  ;;  %v1985_v28 = vrot.slane %v1983_v18, 4  ;;  %v1988_v29 = vrot.slane %v1986_v19, 5 }
  0x80   : > { %3032 = vmatpush3.bf16.msra.mxu0 %v3233_v11  ;;  %2937 = vmatprep.subr.bf16.mxu1 %v3234_v12  ;;  %v2025_v11 = vshrl.u32 %v2669_v5, 16  ;;  %v1975_v38 = vor.u32 %v1974_v27, %v1971_v26 }
  0x81   : > { %3033 = vmatprep.subr.bf16.mxu0 %v3235_v13  ;;  %v1989_v40 = vor.u32 %v1988_v29, %v1985_v28 }
  0x82   : > { %v2027_v22 = vrot.slane %v2025_v11, 4  ;;  %v1976_v47 = vrot.slane %v1975_v38, 4 }
  0x83   : > { %2938 = vmatpush3.bf16.msra.mxu1 %v3234_v12  ;;  %v2028_v12 = vshll.u32 %v2669_v5, 16 }
  0x84   : > { %3034 = vmatpush3.bf16.msra.mxu0 %v3235_v13  ;;  %3067 = vmatprep.subr.bf16.mxu1 %v3240_v14  ;;  %v2039_v13 = vshrl.u32 %v2671_v6, 16 }
  0x85   : > { %3043 = vmatprep.subr.bf16.mxu0 %v3240_v14  ;;  %v2030_v23 = vrot.slane %v2028_v12, 5 }
  0x86   : > { %2940 = vmatmul.mubr.bf16.vlgmr.msra.gmra.mrb[0].mxu1 %v3238_v30  ;;  %v2041_v24 = vrot.slane %v2039_v13, 4  ;;  %v2672_v30 = vld [vmem:[%s3405_s21 + $0x44] sm:$0x1] }
  0x87   : > { %3036 = vmatmul.mubr.bf16.vlgmr.msra.gmra.mrb[0].mxu0 %v3239_v34  ;;  %3075 = vmatpush3.bf16.msra.mxu1 %v3240_v14  ;;  %v2031_v33 = vor.u32 %v2030_v23, %v2027_v22  ;;  %v2034_v34 = vshll.u32 %v2670_v21, 16  ;;  %v2048_v36 = vshll.u32 %v2672_v30, 16 }
  0x88   : > { %3044 = vmatpush3.bf16.msra.mxu0 %v3240_v14  ;;  %3068 = vmatprep.subr.bf16.mxu1 %v3241_v39  ;;  %v2042_v14 = vshll.u32 %v2671_v6, 16 }
  0x89   : > { %3045 = vmatprep.subr.bf16.mxu0 %v3241_v39  ;;  %2943 = vmatprep.mubr.bf16.mxu1 %v3242_v44  ;;  %v2032_v42 = vrot.slane %v2031_v33, 4  ;;  %v2036_v43 = vrot.slane %v2034_v34, 5  ;;  %v2050_v45 = vrot.slane %v2048_v36, 5 }
  0x8a   : > { %3039 = vmatprep.mubr.bf16.mxu0 %v3243_v49  ;;  %v2044_v25 = vrot.slane %v2042_v14, 5  ;;  %v1990_v49 = vrot.slane %v1989_v40, 4  ;;  %v2701_v14 = vld [vmem:[%s3702_s5] ss:$0 sm:$0xff] }
  0x8b   : > { %3076 = vmatpush3.bf16.msra.mxu1 %v3241_v39  ;;  %v2037_v51 = vsel %vm3440_vm2, %v2032_v42, %v2036_v43 }
  0x8c   : > { %3046 = vmatpush3.bf16.msra.mxu0 %v3241_v39  ;;  %3069 = vmatprep.subr.bf16.mxu1 %v3246_v57  ;;  %v2045_v35 = vor.u32 %v2044_v25, %v2041_v24  ;;  %v1978_v39 = vshll.u32 %v2662_v31, 16  ;;  %v1995_v55 = vsel %vm3440_vm2, %v1990_v49, %v1994_v50 }
  0x8d   : > { %3047 = vmatprep.subr.bf16.mxu0 %v3246_v57 }
  0x8e   : > { %2944 = vmatmul.mubr.bf16.gmra.mrb[4].mxu1 %v3244_v61  ;;  %v2046_v44 = vrot.slane %v2045_v35, 4  ;;  %v1980_v48 = vrot.slane %v1978_v39, 5 }
  0x8f   : > { %3040 = vmatmul.mubr.bf16.gmra.mrb[4].mxu0 %v3245_v1  ;;  %3077 = vmatpush3.bf16.msra.mxu1 %v3246_v57 }
  0x90   : > { %3048 = vmatpush3.bf16.msra.mxu0 %v3246_v57  ;;  %3070 = vmatprep.subr.bf16.mxu1 %v3247_v3  ;;  %v2051_v52 = vsel %vm3440_vm2, %v2046_v44, %v2050_v45  ;;  %v1981_v54 = vsel %vm3440_vm2, %v1976_v47, %v1980_v48 }
  0x91   : > { %3049 = vmatprep.subr.bf16.mxu0 %v3247_v3  ;;  %3059 = vmatprep.mubr.bf16.mxu0 %v2689_v7  ;;  %v2692_v56 = vcombine.low %v2037_v51, %v2051_v52  ;;  %v2690_v57 = vcombine.low %v1981_v54, %v1995_v55 }
  0x92   : > { %3063 = vmatprep.mubr.bf16.mxu1 %v2691_v10 }
  0x93   : > { %3078 = vmatpush3.bf16.msra.mxu1 %v3247_v3 }
  0x94   : > { %3050 = vmatpush3.bf16.msra.mxu0 %v3247_v3  ;;  %3071 = vmatprep.subr.bf16.mxu1 %v3248_v15 }
  0x95   : > { %3051 = vmatprep.subr.bf16.mxu0 %v3248_v15 }
  0x97   : > { %3079 = vmatpush3.bf16.msra.mxu1 %v3248_v15 }
  0x98   : > { %3052 = vmatpush3.bf16.msra.mxu0 %v3248_v15  ;;  %3072 = vmatprep.subr.bf16.mxu1 %v3249_v20 }
  0x99   : > { %3053 = vmatprep.subr.bf16.mxu0 %v3249_v20 }
  0x9b   : > { %3080 = vmatpush3.bf16.msra.mxu1 %v3249_v20 }
  0x9c   : > { %3054 = vmatpush3.bf16.msra.mxu0 %v3249_v20  ;;  %3073 = vmatprep.subr.bf16.mxu1 %v3250_v37 }
  0x9d   : > { %3055 = vmatprep.subr.bf16.mxu0 %v3250_v37 }
  0x9f   : > { %3081 = vmatpush3.bf16.msra.mxu1 %v3250_v37 }
  0xa0   : > { %3056 = vmatpush3.bf16.msra.mxu0 %v3250_v37  ;;  %3074 = vmatprep.subr.bf16.mxu1 %v3251_v46 }
  0xa1   : > { %3057 = vmatprep.subr.bf16.mxu0 %v3251_v46 }
  0xa3   : > { %3082 = vmatpush3.bf16.msra.mxu1 %v3251_v46 }
  0xa4   : > { %3058 = vmatpush3.bf16.msra.mxu0 %v3251_v46 }
  0xa6   : > { %3064 = vmatmul.mubr.bf16.vlgmr.msra.gmra.mrb[8].mxu1 %v2692_v56 }
  0xa7   : > { %3060 = vmatmul.mubr.bf16.vlgmr.msra.gmra.mrb[0].mxu0 %v2690_v57 }
 0x159   : > { %v2941_v58 = vpop.f32.mrb[0].mxu1 }
 0x15a   : > { %v1091_v59 = vpop.f32.mrb[1].mxu1 }
 0x15b   : > { %v2942_v60 = vpop.f32.mrb[2].mxu1 }
 0x15c   : > { %v1094_v61 = vpop.f32.mrb[3].mxu1 }
 0x161   : > { %v2945_v62 = vpop.f32.mrb[4].mxu1 }
 0x162   : > { %v3041_v63 = vpop.f32.mrb[4].mxu0  ;;  %v1107_v0 = vpop.f32.mrb[5].mxu1 }
 0x163   : > { %v3087_v1 = vadd.f32 %v3041_v63, %v2945_v62  ;;  %v1901_v2 = vpop.f32.mrb[5].mxu0  ;;  %v2946_v3 = vpop.f32.mrb[6].mxu1 }
 0x164   : > { %v3089_v53 = vadd.f32 %v1901_v2, %v1107_v0  ;;  %v3042_v4 = vpop.f32.mrb[6].mxu0  ;;  %v1110_v5 = vpop.f32.mrb[7].mxu1 }
 0x165   : > { %v3091_v6 = vadd.f32 %v3042_v4, %v2946_v3  ;;  %v1904_v7 = vpop.f32.mrb[7].mxu0 }
 0x166   : > { %v3093_v8 = vadd.f32 %v1904_v7, %v1110_v5 }
 0x179   : > { %v3065_v9 = vpop.f32.mrb[8].mxu1 }
 0x17a   : > { %v3061_v10 = vpop.f32.mrb[0].mxu0  ;;  %v3088_v11 = vadd.f32 %v3087_v1, %v3065_v9  ;;  %v2183_v12 = vpop.f32.mrb[9].mxu1 }
 0x17b   : > { %v3083_v13 = vadd.f32 %v3061_v10, %v2941_v58  ;;  %v2167_v15 = vpop.f32.mrb[1].mxu0  ;;  %v3090_v16 = vadd.f32 %v3089_v53, %v2183_v12  ;;  %v3066_v17 = vpop.f32.mrb[10].mxu1 }
 0x17c   : > { %v3084_v18 = vadd.f32 %v2167_v15, %v1091_v59  ;;  %v3062_v19 = vpop.f32.mrb[2].mxu0  ;;  %v3092_v20 = vadd.f32 %v3091_v6, %v3066_v17  ;;  %v2186_v21 = vpop.f32.mrb[11].mxu1  ;;  %v2219_v25 = vadd.f32 %v3088_v11, %v2701_v14 }
 0x17d   : > { %v3085_v22 = vadd.f32 %v3062_v19, %v2942_v60  ;;  %v2170_v23 = vpop.f32.mrb[3].mxu0  ;;  %v3094_v24 = vadd.f32 %v3093_v8, %v2186_v21  ;;  %v2215_v29 = vadd.f32 %v3083_v13, %v2701_v14  ;;  %v2217_v30 = vadd.f32 %v3090_v16, %v2701_v14 }
 0x17e   : > { %v2213_v26 = vadd.f32 %v3084_v18, %v2701_v14  ;;  %v2220_v27 = vadd.f32 %v3092_v20, %v2701_v14  ;;  %v3086_v28 = vadd.f32 %v2170_v23, %v1094_v61  ;;  %v2280_v54 = vmul.f32 %v2219_v25, %v2219_v25 }
 0x17f   : > { %v2216_v31 = vadd.f32 %v3085_v22, %v2701_v14  ;;  %v2218_v32 = vadd.f32 %v3094_v24, %v2701_v14  ;;  %v2276_v41 = vmul.f32 %v2215_v29, %v2215_v29  ;;  %v2278_v47 = vmul.f32 %v2217_v30, %v2217_v30 }
 0x180   : > { %v2738_v33 = vpack.c.bf16 %v2220_v27, %v2219_v25  ;;  %v2214_v34 = vadd.f32 %v3086_v28, %v2701_v14  ;;  %v2274_v37 = vmul.f32 %v2213_v26, %v2213_v26  ;;  %v2281_v57 = vmul.f32 %v2220_v27, %v2220_v27 }
 0x181   : > { %v2728_v35 = vpack.c.bf16 %v2216_v31, %v2215_v29  ;;  %v2733_v36 = vpack.c.bf16 %v2218_v32, %v2217_v30  ;;  %v2277_v44 = vmul.f32 %v2216_v31, %v2216_v31  ;;  %v2279_v51 = vmul.f32 %v2218_v32, %v2218_v32 }
 0x182   : > { %2742 = vst [vmem:[%s345_s26 + $0x18] sm:$0xff] %v2738_v33   ;;  %v2723_v38 = vpack.c.bf16 %v2214_v34, %v2213_v26  ;;  %v2261_v39 = vadd.f32 %v2214_v34, %v2213_v26  ;;  %v2275_v40 = vmul.f32 %v2214_v34, %v2214_v34 }
 0x183   : > { %2740 = vst [vmem:[%s345_s26 + $0x8] sm:$0xff] %v2728_v35   ;;  %2741 = vst [vmem:[%s345_s26 + $0x10] sm:$0xff] %v2733_v36  }
 0x184   : > { %2724 = vst [vmem:[%s345_s26] sm:$0xff] %v2723_v38   ;;  %v2262_v42 = vadd.f32 %v2261_v39, %v2215_v29  ;;  %v2282_v43 = vadd.f32 %v2275_v40, %v2274_v37 }
 0x186   : > { %v2283_v45 = vadd.f32 %v2282_v43, %v2276_v41  ;;  %v2263_v46 = vadd.f32 %v2262_v42, %v2216_v31 }
 0x188   : > { %v2264_v48 = vadd.f32 %v2263_v46, %v2217_v30  ;;  %v2284_v49 = vadd.f32 %v2283_v45, %v2277_v44 }
 0x18a   : > { %v2265_v50 = vadd.f32 %v2264_v48, %v2218_v32  ;;  %v2285_v52 = vadd.f32 %v2284_v49, %v2278_v47 }
 0x18c   : > { %v2266_v55 = vadd.f32 %v2265_v50, %v2219_v25  ;;  %v2286_v56 = vadd.f32 %v2285_v52, %v2279_v51 }
 0x18e   : > { %v2267_v58 = vadd.f32 %v2266_v55, %v2220_v27  ;;  %v2287_v59 = vadd.f32 %v2286_v56, %v2280_v54 }
 0x190   : > { %v2268_v60 = vrot.slane %v2267_v58, 4  ;;  %v2288_v61 = vadd.f32 %v2287_v59, %v2281_v57 }
 0x192   : > { %v2269_v62 = vadd.f32 %v2268_v60, %v2267_v58  ;;  %v2289_v63 = vrot.slane %v2288_v61, 4 }
 0x194   : > { %v2270_v0 = vrot.slane %v2269_v62, 2  ;;  %v2290_v1 = vadd.f32 %v2289_v63, %v2288_v61 }
 0x196   : > { %v2271_v2 = vadd.f32 %v2270_v0, %v2269_v62  ;;  %v2291_v3 = vrot.slane %v2290_v1, 2 }
 0x198   : > { %v2272_v53 = vrot.slane %v2271_v2, 1  ;;  %v2292_v4 = vadd.f32 %v2291_v3, %v2290_v1 }
 0x19a   : > { %v2293_v5 = vrot.slane %v2292_v4, 1  ;;  %v2273_v6 = vadd.f32 %v2272_v53, %v2271_v2 }
 0x19c   : > { %v2294_v7 = vadd.f32 %v2293_v5, %v2292_v4 }
 0x19e   : > { %v2296_v8 = vsel %vm2295_vm3, %v2273_v6, %v2294_v7 }
 0x19f   : > { %2297 = vst [vmem:[%s350_s20] sm:$0x3] %v2296_v8 }
 0x1a0 PF: > { %s18_s24 = sadd.s32 1, %s3258_s24  }
 0x1a1   : > { %p15_p5 = scmp.ge.s32.totalorder %s18_s24, 4  }
 0x1a3   :  { %17 = sbr.rel (!%p15_p5) target bundleno = 1 (0x1), region = 105 }

// kernel: downsample_block.6
= control target key start
LH: loop header
LB: loop body
LE: loop exit
PB: predicated region body
PF: predicated region fallthrough
CT: control target
= control target key end

     0   :  { %s6088_s21 = smov 0   ;;  %s7177_s0 = inlined_call_operand.vmem [shape: bf16[2,10,10,128], index: 0, kind: input, shape index: {}]   ;;  %s7178_s1 = inlined_call_operand.vmem [shape: bf16[2,10,10,128], index: 1, kind: input, shape index: {}]   ;;  %s7179_s2 = inlined_call_operand.vmem [shape: bf16[9,128,128], index: 2, kind: input, shape index: {}]   ;;  %s7180_s3 = inlined_call_operand.vmem [shape: bf16[9,128,128], index: 3, kind: input, shape index: {}]   ;;  %s7181_s4 = inlined_call_operand.vmem [shape: f32[1,128], index: 4, kind: input, shape index: {}]   ;;  %s7182_s5 = inlined_call_operand.vmem [shape: bf16[128,128], index: 5, kind: output, shape index: {0}]   ;;  %s7183_s6 = inlined_call_operand.vmem [shape: f32[2,2,128], index: 6, kind: output, shape index: {1}]  }
   0x1 LB: > { %s6094_s22 = sadd.s32 4294967295, %s6051_s21   ;;  %p4380_p0 = scmp.ge.s32.totalorder %s6051_s21, 1  ;;  %s6051_s21 = sphi %s6088_s21, %s17_s21  }
   0x2   : > { %p225_p1 = scmp.lt.s32.totalorder %s6051_s21, 3 }
   0x4   : > { %p226_p2 = pnand %p4380_p0, %p225_p1 }
   0x5   : > { %v5869_v0 = vld [vmem:[%s7180_s3] sm:$0xff] (!%p226_p2)   ;;  %v5871_v2 = vld [vmem:[%s7180_s3 + $0x8] sm:$0xff] (!%p226_p2)   ;;  %p264_p3 = scmp.lt.s32.totalorder (!%p226_p2), %s6094_s22, 1  ;;  %v5873_v4 = vld [vmem:[%s7180_s3 + $0x10] sm:$0xff] (!%p226_p2)   ;;  %vm623_vm0 = vsmask.f32 (!%p226_p2), 3328 }
   0x6   : > { %229 = sbr.rel (%p226_p2) target bundleno = 545 (0x221), region = 40  ;;  %v5870_v1 = vld [vmem:[%s7179_s2 + $0x100] sm:$0xff] (!%p226_p2)   ;;  %5292 = vmatprep.subr.bf16.mxu1 (!%p226_p2), %v5869_v0  ;;  %v5872_v3 = vld [vmem:[%s7179_s2 + $0x108] sm:$0xff] (!%p226_p2)   ;;  %v5874_v5 = vld [vmem:[%s7179_s2 + $0x110] sm:$0xff] (!%p226_p2)   ;;  %vm624_vm1 = vsmask.f32 (!%p226_p2), 7440 }
   0x7   : > { %5508 = vmatprep.subr.bf16.mxu0 (!%p226_p2), %v5870_v1  ;;  %5293 = vmatpush3.bf16.msra.mxu1 (!%p226_p2), %v5869_v0  ;;  %v5875_v6 = vld [vmem:[%s7180_s3 + $0x18] sm:$0xff] (!%p226_p2)   ;;  %v5877_v8 = vld [vmem:[%s7180_s3 + $0x20] sm:$0xff] (!%p226_p2)   ;;  %v5879_v10 = vld [vmem:[%s7180_s3 + $0x28] sm:$0xff] (!%p226_p2)   ;;  %vm1190_vm3 = vcmask (!%p226_p2), 1042432   ;;  %vm1191_vm4 = vcmask (!%p226_p2), 1046532   ;;  %vm4274_vm6 = vcmask (!%p226_p2), 1040384  }
   0x8   : > { %5509 = vmatpush3.bf16.msra.mxu0 (!%p226_p2), %v5870_v1  ;;  %5294 = vmatprep.subr.bf16.mxu1 (!%p226_p2), %v5871_v2  ;;  %v5876_v7 = vld [vmem:[%s7179_s2 + $0x118] sm:$0xff] (!%p226_p2)   ;;  %v5878_v9 = vld [vmem:[%s7179_s2 + $0x120] sm:$0xff] (!%p226_p2)   ;;  %v5880_v12 = vld [vmem:[%s7179_s2 + $0x128] sm:$0xff] (!%p226_p2)  }
   0x9   : > { %5510 = vmatprep.subr.bf16.mxu0 (!%p226_p2), %v5872_v3  ;;  %v5881_v18 = vld [vmem:[%s7180_s3 + $0x30] sm:$0xff] (!%p226_p2)   ;;  %v5883_v27 = vld [vmem:[%s7180_s3 + $0x38] sm:$0xff] (!%p226_p2)   ;;  %vm6174_vm2 = vmor (!%p226_p2), %vm623_vm0, %vm624_vm1 }
   0xa   : > { %v5882_v23 = vld [vmem:[%s7179_s2 + $0x130] sm:$0xff] (!%p226_p2)   ;;  %v5884_v30 = vld [vmem:[%s7179_s2 + $0x138] sm:$0xff] (!%p226_p2)   ;;  %v5886_v50 = vld [vmem:[%s7179_s2] sm:$0xff] (!%p226_p2)  }
   0xb   : > { %5295 = vmatpush3.bf16.msra.mxu1 (!%p226_p2), %v5871_v2  ;;  %v5887_v55 = vld [vmem:[%s7180_s3 + $0x140] sm:$0xff] (!%p226_p2)   ;;  %v5889_v63 = vld [vmem:[%s7179_s2 + $0x8] sm:$0xff] (!%p226_p2)   ;;  %vm6266_vm5 = vmor (!%p226_p2), %vm1190_vm3, %vm1191_vm4 }
   0xc   : > { %5511 = vmatpush3.bf16.msra.mxu0 (!%p226_p2), %v5872_v3  ;;  %5296 = vmatprep.subr.bf16.mxu1 (!%p226_p2), %v5873_v4  ;;  %v5890_v3 = vld [vmem:[%s7180_s3 + $0x148] sm:$0xff] (!%p226_p2)  }
   0xd   : > { %s6118_s11 = scalar_select %p264_p3, %s6094_s22, 1  ;;  %5512 = vmatprep.subr.bf16.mxu0 %v5874_v5 }
   0xf   : > { %5297 = vmatpush3.bf16.msra.mxu1 %v5873_v4  ;;  %s5860_s16 = smul.u32 80, %s6118_s11  ;;  %s4385_s12 = sshll.u32 %s6118_s11, 1 }
  0x10   : > { %5513 = vmatpush3.bf16.msra.mxu0 %v5874_v5  ;;  %5298 = vmatprep.subr.bf16.mxu1 %v5875_v6  ;;  %v5891_v5 = vld [vmem:[%s7179_s2 + $0x10] sm:$0xff]   ;;  %s283_s15 = scalar_lea.vmem %s7183_s6, %s4385_s12 }
  0x11   : > { %5514 = vmatprep.subr.bf16.mxu0 %v5876_v7  ;;  %s6136_s25 = scalar_lea.vmem %s7178_s1, %s5860_s16  ;;  %s6144_s30 = scalar_lea.vmem %s7177_s0, %s5860_s16 }
  0x12   : > { %v5885_v11 = vld [vmem:[%s6136_s25] ss:$8 sps:$4 sm:$0xff]   ;;  %v6152_v14 = vld [vmem:[%s6144_s30 + $0xc] sm:$0x1]  ;;  %v4612_v15 = vld [vmem:[%s6144_s30 + $0x10] sm:$0xf] }
  0x13   : > { %5299 = vmatpush3.bf16.msra.mxu1 %v5875_v6  ;;  %5308 = vmatprep.mubr.bf16.mxu1 %v5885_v11  ;;  %v4610_v13 = vld [vmem:[%s6144_s30 + $0x8] sm:$0xf]  ;;  %v6159_v19 = vld [vmem:[%s6144_s30 + $0x14] sm:$0x1]  ;;  %v1941_v20 = vshll.u32 %v6152_v14, 16  ;;  %v1946_v21 = vshrl.u32 %v4612_v15, 16 }
  0x14   : > { %5515 = vmatpush3.bf16.msra.mxu0 %v5876_v7  ;;  %5300 = vmatprep.subr.bf16.mxu1 %v5877_v8  ;;  %v1932_v16 = vshrl.u32 %v4610_v13, 16  ;;  %v1935_v17 = vshll.u32 %v4610_v13, 16  ;;  %v1949_v22 = vshll.u32 %v4612_v15, 16  ;;  %v1955_v26 = vshll.u32 %v6159_v19, 16  ;;  %v4614_v36 = vld [vmem:[%s6144_s30 + $0x18] sm:$0xf] }
  0x15   : > { %5516 = vmatprep.subr.bf16.mxu0 %v5878_v9  ;;  %v1948_v28 = vrot.slane %v1946_v21, 4  ;;  %v1943_v32 = vrot.slane %v1941_v20, 5  ;;  %v6180_v37 = vld [vmem:[%s6144_s30 + $0x1c] sm:$0x1]  ;;  %v4616_v39 = vld [vmem:[%s6144_s30 + $0x20] sm:$0xf] }
  0x16   : > { %v1934_v24 = vrot.slane %v1932_v16, 4  ;;  %v1937_v25 = vrot.slane %v1935_v17, 5  ;;  %v1951_v29 = vrot.slane %v1949_v22, 5  ;;  %v1957_v35 = vrot.slane %v1955_v26, 5  ;;  %v6184_v40 = vld [vmem:[%s6144_s30 + $0x24] sm:$0x1] }
  0x17   : > { %5301 = vmatpush3.bf16.msra.mxu1 %v5877_v8  ;;  %v1960_v41 = vshrl.u32 %v4614_v36, 16  ;;  %v1963_v43 = vshll.u32 %v4614_v36, 16  ;;  %v1969_v44 = vshll.u32 %v6180_v37, 16  ;;  %v1974_v45 = vshrl.u32 %v4616_v39, 16  ;;  %v5888_v56 = vld [vmem:[%s6136_s25 + $0x10] ss:$8 sps:$4 sm:$0xff]  }
  0x18   : > { %5517 = vmatpush3.bf16.msra.mxu0 %v5878_v9  ;;  %5302 = vmatprep.subr.bf16.mxu1 %v5879_v10  ;;  %v1938_v31 = vor.u32 %v1937_v25, %v1934_v24  ;;  %v1952_v34 = vor.u32 %v1951_v29, %v1948_v28  ;;  %v1977_v48 = vshll.u32 %v4616_v39, 16  ;;  %v1983_v49 = vshll.u32 %v6184_v40, 16  ;;  %v5892_v6 = vld [vmem:[%s7180_s3 + $0x150] sm:$0xff]   ;;  %v5899_v7 = vld [vmem:[%s6136_s25 + $0x20] ss:$8 sps:$4 sm:$0xff]   ;;  %v5893_v8 = vld [vmem:[%s7179_s2 + $0x18] sm:$0xff]  }
  0x19   : > { %5518 = vmatprep.subr.bf16.mxu0 %v5880_v12  ;;  %v1962_v47 = vrot.slane %v1960_v41, 4  ;;  %v1965_v52 = vrot.slane %v1963_v43, 5  ;;  %v1976_v53 = vrot.slane %v1974_v45, 4  ;;  %v1971_v59 = vrot.slane %v1969_v44, 5  ;;  %v4618_v9 = vld [vmem:[%s6144_s30 + $0x28] sm:$0xf] }
  0x1a   : > { %v1939_v38 = vrot.slane %v1938_v31, 4  ;;  %v1953_v42 = vrot.slane %v1952_v34, 4  ;;  %v1979_v57 = vrot.slane %v1977_v48, 5  ;;  %v1985_v60 = vrot.slane %v1983_v49, 5  ;;  %v4620_v11 = vld [vmem:[%s6144_s30 + $0x30] sm:$0xf] }
  0x1b   : > { %5303 = vmatpush3.bf16.msra.mxu1 %v5879_v10  ;;  %v1966_v58 = vor.u32 %v1965_v52, %v1962_v47  ;;  %v6221_v10 = vld [vmem:[%s6144_s30 + $0x2c] sm:$0x1]  ;;  %v1988_v13 = vshrl.u32 %v4618_v9, 16  ;;  %v1991_v15 = vshll.u32 %v4618_v9, 16  ;;  %v2002_v17 = vshrl.u32 %v4620_v11, 16  ;;  %v5894_v21 = vld [vmem:[%s7180_s3 + $0x158] sm:$0xff]  }
  0x1c   : > { %5519 = vmatpush3.bf16.msra.mxu0 %v5880_v12  ;;  %5304 = vmatprep.subr.bf16.mxu1 %v5881_v18  ;;  %v1944_v46 = vsel %vm6174_vm2, %v1939_v38, %v1943_v32  ;;  %v1958_v51 = vsel %vm6174_vm2, %v1953_v42, %v1957_v35  ;;  %v1980_v61 = vor.u32 %v1979_v57, %v1976_v53  ;;  %v6225_v12 = vld [vmem:[%s6144_s30 + $0x34] sm:$0x1]  ;;  %v1997_v16 = vshll.u32 %v6221_v10, 16  ;;  %v5895_v22 = vld [vmem:[%s7179_s2 + $0x20] sm:$0xff]   ;;  %v4622_v31 = vld [vmem:[%s6144_s30 + $0x38] sm:$0xf] }
  0x1d   : > { %5520 = vmatprep.subr.bf16.mxu0 %v5882_v23  ;;  %v4686_v54 = vcombine.low %v1944_v46, %v1958_v51  ;;  %v1967_v62 = vrot.slane %v1966_v58, 4  ;;  %v2011_v20 = vshll.u32 %v6225_v12, 16  ;;  %v1993_v24 = vrot.slane %v1991_v15, 5  ;;  %v6238_v34 = vld [vmem:[%s6144_s30 + $0x3c] sm:$0x1]  ;;  %v5896_v38 = vld [vmem:[%s7180_s3 + $0x160] sm:$0xff]  }
  0x1e   : > { %v1981_v0 = vrot.slane %v1980_v61, 4  ;;  %v1999_v25 = vrot.slane %v1997_v16, 5  ;;  %v2004_v26 = vrot.slane %v2002_v17, 4  ;;  %v4624_v35 = vld [vmem:[%s6144_s30 + $0x40] sm:$0xf]  ;;  %v2016_v41 = vshrl.u32 %v4622_v31, 16 }
  0x1f   : > { %5305 = vmatpush3.bf16.msra.mxu1 %v5881_v18  ;;  %5524 = vmatprep.mubr.bf16.mxu0 %v4686_v54  ;;  %v1972_v1 = vsel %vm6174_vm2, %v1967_v62, %v1971_v59  ;;  %v2005_v18 = vshll.u32 %v4620_v11, 16  ;;  %v2013_v28 = vrot.slane %v2011_v20, 5  ;;  %v6242_v36 = vld [vmem:[%s6144_s30 + $0x44] sm:$0x1]  ;;  %v2019_v42 = vshll.u32 %v4622_v31, 16  ;;  %v5897_v48 = vld [vmem:[%s7179_s2 + $0x28] sm:$0xff]  }
  0x20   : > { %5521 = vmatpush3.bf16.msra.mxu0 %v5882_v23  ;;  %5306 = vmatprep.subr.bf16.mxu1 %v5883_v27  ;;  %v1986_v2 = vsel %vm6174_vm2, %v1981_v0, %v1985_v60  ;;  %v1990_v23 = vrot.slane %v1988_v13, 4  ;;  %v2025_v43 = vshll.u32 %v6238_v34, 16  ;;  %v2030_v45 = vshrl.u32 %v4624_v35, 16  ;;  %v5898_v57 = vld [vmem:[%s7180_s3 + $0x168] sm:$0xff]   ;;  %v5900_v58 = vld [vmem:[%s7179_s2 + $0x30] sm:$0xff]   ;;  %v5903_v16 = vld [vmem:[%s7179_s2 + $0x38] sm:$0xff]  }
  0x21   : > { %5522 = vmatprep.subr.bf16.mxu0 %v5884_v30  ;;  %v4687_v4 = vcombine.low %v1972_v1, %v1986_v2  ;;  %v2033_v46 = vshll.u32 %v4624_v35, 16  ;;  %v2039_v47 = vshll.u32 %v6242_v36, 16  ;;  %v2021_v51 = vrot.slane %v2019_v42, 5  ;;  %v5905_v61 = vld [vmem:[%s6144_s30] ss:$8 sps:$4 sm:$0xff]   ;;  %v5901_v9 = vld [vmem:[%s7180_s3 + $0x170] sm:$0xff]  }
  0x22   : > { %v1994_v29 = vor.u32 %v1993_v24, %v1990_v23  ;;  %v2027_v52 = vrot.slane %v2025_v43, 5  ;;  %v2032_v54 = vrot.slane %v2030_v45, 4  ;;  %v4629_v2 = vld [vmem:[%s6136_s25 + $0x14] sm:$0x1]  ;;  %v4716_v23 = vld [vmem:[%s6136_s25 + $0x18] sm:$0xe] }
  0x23   : > { %5307 = vmatpush3.bf16.msra.mxu1 %v5883_v27  ;;  %v2007_v27 = vrot.slane %v2005_v18, 5  ;;  %v5907_v35 = vld [vmem:[%s7179_s2 + $0x140] sm:$0xff]   ;;  %v5910_v43 = vld [vmem:[%s7179_s2 + $0x148] sm:$0xff]   ;;  %v6035_v1 = vld [vmem:[%s7180_s3 + $0x138] sm:$0xff]  }
  0x24   : > { %5523 = vmatpush3.bf16.msra.mxu0 %v5884_v30  ;;  %5316 = vmatprep.subr.bf16.mxu1 %v5886_v50  ;;  %v5902_v30 = vld [vmem:[%s6136_s25 + $0x30] ss:$8 sps:$4 sm:$0xff]   ;;  %v1995_v39 = vrot.slane %v1994_v29, 4  ;;  %v5906_v29 = vld [vmem:[%s7180_s3 + $0x40] sm:$0xff]  }
  0x25   : > { %5532 = vmatprep.subr.bf16.mxu0 %v5887_v55  ;;  %v2008_v32 = vor.u32 %v2007_v27, %v2004_v26  ;;  %v4724_v26 = vrot.slane %v4716_v23, 9  ;;  %v5919_v45 = vld [vmem:[%s6144_s30 + $0x20] ss:$8 sps:$4 sm:$0xff]  }
  0x26   : > { %5309 = vmatmul.mubr.bf16.vlgmr.msra.gmra.mrb[0].mxu1 %v5888_v56  ;;  %v2000_v49 = vsel %vm6174_vm2, %v1995_v39, %v1999_v25  ;;  %v2041_v56 = vrot.slane %v2039_v47, 5  ;;  %v4717_v25 = vld [vmem:[%s6136_s25 + $0x20] sm:$0xe]  ;;  %v4637_v47 = vld [vmem:[%s6136_s25 + $0x34] sm:$0x1] }
  0x27   : > { %5317 = vmatpush3.bf16.msra.mxu1 %v5886_v50  ;;  %5525 = vmatmul.mubr.bf16.vlgmr.msra.gmra.mrb[0].mxu0 %v4687_v4  ;;  %v2009_v44 = vrot.slane %v2008_v32, 4  ;;  %v2018_v50 = vrot.slane %v2016_v41, 4  ;;  %v5908_v32 = vld [vmem:[%s6144_s30 + $0x10] ss:$8 sps:$4 sm:$0xff]   ;;  %v5909_v41 = vld [vmem:[%s7180_s3 + $0x48] sm:$0xff]  }
  0x28   : > { %5318 = vmatprep.subr.bf16.mxu1 %v5889_v63  ;;  %5533 = vmatpush3.bf16.msra.mxu0 %v5887_v55  ;;  %v2035_v55 = vrot.slane %v2033_v46, 5  ;;  %v4635_v46 = vld [vmem:[%s6136_s25 + $0x2c] sm:$0x1] }
  0x29   : > { %5534 = vmatprep.subr.bf16.mxu0 %v5890_v3  ;;  %5312 = vmatprep.mubr.bf16.mxu1 %v5899_v7  ;;  %v2014_v53 = vsel %vm6174_vm2, %v2009_v44, %v2013_v28  ;;  %v2022_v60 = vor.u32 %v2021_v51, %v2018_v50  ;;  %v5904_v28 = vld [vmem:[%s7180_s3 + $0x178] sm:$0xff]   ;;  %v5911_v44 = vld [vmem:[%s7180_s3 + $0x50] sm:$0xff]   ;;  %v2569_v51 = vrot.slane %v4635_v46, 5 }
  0x2a   : > { %v4688_v59 = vcombine.low %v2000_v49, %v2014_v53  ;;  %v2036_v62 = vor.u32 %v2035_v55, %v2032_v54  ;;  %v4718_v49 = vld [vmem:[%s6136_s25 + $0x28] sm:$0xe]  ;;  %v4719_v50 = vld [vmem:[%s6136_s25 + $0x30] sm:$0xe]  ;;  %v5913_v55 = vld [vmem:[%s7180_s3 + $0x58] sm:$0xff]  }
  0x2b   : > { %5319 = vmatpush3.bf16.msra.mxu1 %v5889_v63  ;;  %v4627_v63 = vld [vmem:[%s6136_s25 + $0xc] sm:$0x1]  ;;  %v2023_v0 = vrot.slane %v2022_v60, 4  ;;  %v4726_v53 = vrot.slane %v4718_v49, 9  ;;  %v4727_v54 = vrot.slane %v4719_v50, 9 }
  0x2c   : > { %5320 = vmatprep.subr.bf16.mxu1 %v5891_v5  ;;  %5535 = vmatpush3.bf16.msra.mxu0 %v5890_v3  ;;  %v4714_v3 = vld [vmem:[%s6136_s25 + $0x8] sm:$0xe]  ;;  %v2553_v4 = vrot.slane %v4627_v63, 5  ;;  %v4641_v60 = vld [vmem:[%s6136_s25 + $0x44] sm:$0x1] }
  0x2d   : > { %5536 = vmatprep.subr.bf16.mxu0 %v5892_v6  ;;  %5528 = vmatprep.mubr.bf16.mxu0 %v4688_v59  ;;  %v4722_v7 = vrot.slane %v4714_v3, 9  ;;  %v2028_v11 = vsel %vm6174_vm2, %v2023_v0, %v2027_v52  ;;  %v2573_v52 = vrot.slane %v4637_v47, 5  ;;  %v4639_v59 = vld [vmem:[%s6136_s25 + $0x3c] sm:$0x1]  ;;  %v4720_v63 = vld [vmem:[%s6136_s25 + $0x38] sm:$0xe] }
  0x2e   : > { %5313 = vmatmul.mubr.bf16.gmra.mrb[4].mxu1 %v5902_v30  ;;  %v4725_v30 = vrot.slane %v4717_v25, 9  ;;  %v4721_v0 = vld [vmem:[%s6136_s25 + $0x40] sm:$0xe]  ;;  %v2581_v3 = vrot.slane %v4641_v60, 5  ;;  %v5917_v25 = vld [vmem:[%s7180_s3 + $0x68] sm:$0xff]  }
  0x2f   : > { %5321 = vmatpush3.bf16.msra.mxu1 %v5891_v5  ;;  %v2037_v5 = vrot.slane %v2036_v62, 4  ;;  %5332 = vmatprep.mubr.bf16.mxu1 %v5905_v61  ;;  %v2554_v17 = vsel %vm6266_vm5, %v4722_v7, %v2553_v4  ;;  %v5914_v61 = vld [vmem:[%s7179_s2 + $0x158] sm:$0xff]   ;;  %v4728_v4 = vrot.slane %v4720_v63, 9  ;;  %v2497_v7 = vrot.slane %v6152_v14, 5  ;;  %v742_v46 = vld [vmem:[%s6136_s25 + $0x10] sm:$0xf] }
  0x30   : > { %5322 = vmatprep.subr.bf16.mxu1 %v5893_v8  ;;  %5537 = vmatpush3.bf16.msra.mxu0 %v5892_v6  ;;  %v4715_v6 = vld [vmem:[%s6136_s25 + $0x10] sm:$0xe]  ;;  %v6376_v49 = vld [vmem:[%s6136_s25 + $0x14] sm:$0x1]  ;;  %v744_v50 = vld [vmem:[%s6136_s25 + $0x18] sm:$0xf] }
  0x31   : > { %5538 = vmatprep.subr.bf16.mxu0 %v5894_v21  ;;  %v4723_v13 = vrot.slane %v4715_v6, 9  ;;  %v2042_v15 = vsel %vm6174_vm2, %v2037_v5, %v2041_v56  ;;  %v2570_v56 = vsel %vm6266_vm5, %v4726_v53, %v2569_v51  ;;  %v4729_v5 = vrot.slane %v4721_v0, 9  ;;  %v5915_v6 = vld [vmem:[%s7180_s3 + $0x60] sm:$0xff]   ;;  %v5921_v63 = vld [vmem:[%s7179_s2 + $0x170] sm:$0xff]  }
  0x32   : > { %v4689_v18 = vcombine.low %v2028_v11, %v2042_v15  ;;  %v6348_v15 = vld [vmem:[%s6136_s25 + $0x4] sm:$0x1]  ;;  %v783_v51 = vshrl.u32 %v742_v46, 16  ;;  %v797_v60 = vshrl.u32 %v744_v50, 16 }
  0x33   : > { %5323 = vmatpush3.bf16.msra.mxu1 %v5893_v8  ;;  %v2557_v8 = vrot.slane %v4629_v2, 5  ;;  %v2577_v2 = vrot.slane %v4639_v59, 5  ;;  %v2582_v11 = vsel %vm6266_vm5, %v4729_v5, %v2581_v3  ;;  %v764_v14 = vshll.u32 %v6348_v15, 16  ;;  %v5923_v5 = vld [vmem:[%s7180_s3 + $0x78] sm:$0xff]  }
  0x34   : > { %5324 = vmatprep.subr.bf16.mxu1 %v5895_v22  ;;  %5539 = vmatpush3.bf16.msra.mxu0 %v5894_v21  ;;  %v4631_v21 = vld [vmem:[%s6136_s25 + $0x1c] sm:$0x1]  ;;  %v785_v59 = vrot.slane %v783_v51, 4 }
  0x35   : > { %5540 = vmatprep.subr.bf16.mxu0 %v5896_v38  ;;  %v2558_v20 = vsel %vm6266_vm5, %v4723_v13, %v2557_v8  ;;  %v2561_v27 = vrot.slane %v4631_v21, 5  ;;  %5529 = vmatmul.mubr.bf16.gmra.mrb[4].mxu0 %v4689_v18  ;;  %v2501_v8 = vrot.slane %v6159_v19, 5  ;;  %v738_v13 = vld [vmem:[%s6136_s25] sm:$0xf]  ;;  %v6352_v18 = vld [vmem:[%s6136_s25 + $0xc] sm:$0x1] }
  0x36   : > { %v4762_v24 = vcombine.low %v2554_v17, %v2558_v20  ;;  %v740_v17 = vld [vmem:[%s6136_s25 + $0x8] sm:$0xf]  ;;  %v755_v20 = vshrl.u32 %v738_v13, 16  ;;  %v758_v21 = vshll.u32 %v738_v13, 16  ;;  %v778_v23 = vshll.u32 %v6352_v18, 16 }
  0x37   : > { %5325 = vmatpush3.bf16.msra.mxu1 %v5895_v22  ;;  %v4633_v22 = vld [vmem:[%s6136_s25 + $0x24] sm:$0x1]  ;;  %v769_v19 = vshrl.u32 %v740_v17, 16 }
  0x38   : > { %5326 = vmatprep.subr.bf16.mxu1 %v5897_v48  ;;  %5541 = vmatpush3.bf16.msra.mxu0 %v5896_v38  ;;  %v2565_v31 = vrot.slane %v4633_v22, 5  ;;  %v2562_v38 = vsel %vm6266_vm5, %v4724_v26, %v2561_v27  ;;  %v772_v22 = vshll.u32 %v740_v17, 16  ;;  %v757_v26 = vrot.slane %v755_v20, 4  ;;  %v5924_v17 = vld [vmem:[%s7179_s2 + $0x178] sm:$0xff]   ;;  %v5925_v20 = vld [vmem:[%s7179_s2 + $0x40] sm:$0xff]  }
  0x39   : > { %5542 = vmatprep.subr.bf16.mxu0 %v5898_v57  ;;  %5548 = vmatprep.mubr.bf16.mxu0 %v4762_v24  ;;  %v5916_v24 = vld [vmem:[%s7179_s2 + $0x160] sm:$0xff]   ;;  %v760_v27 = vrot.slane %v758_v21, 5 }
  0x3a   : > { %v2566_v39 = vsel %vm6266_vm5, %v4725_v30, %v2565_v31  ;;  %v771_v30 = vrot.slane %v769_v19, 4  ;;  %v774_v31 = vrot.slane %v772_v22, 5 }
  0x3b   : > { %5327 = vmatpush3.bf16.msra.mxu1 %v5897_v48  ;;  %v4763_v42 = vcombine.low %v2562_v38, %v2566_v39  ;;  %v5912_v48 = vld [vmem:[%s7179_s2 + $0x150] sm:$0xff]   ;;  %v761_v39 = vor.u32 %v760_v27, %v757_v26 }
  0x3c   : > { %5328 = vmatprep.subr.bf16.mxu1 %v5900_v58  ;;  %5543 = vmatpush3.bf16.msra.mxu0 %v5898_v57  ;;  %v2574_v57 = vsel %vm6266_vm5, %v4727_v54, %v2573_v52  ;;  %v5920_v38 = vld [vmem:[%s7180_s3 + $0x70] sm:$0xff]   ;;  %v6382_v54 = vld [vmem:[%s6136_s25 + $0x1c] sm:$0x1] }
  0x3d   : > { %5544 = vmatprep.subr.bf16.mxu0 %v5901_v9  ;;  %v4764_v62 = vcombine.low %v2570_v56, %v2574_v57  ;;  %v762_v47 = vrot.slane %v761_v39, 4  ;;  %v792_v56 = vshll.u32 %v6376_v49, 16  ;;  %v748_v39 = vld [vmem:[%s6136_s25 + $0x28] sm:$0xf] }
  0x3f   : > { %5329 = vmatpush3.bf16.msra.mxu1 %v5900_v58  ;;  %v5922_v58 = vld [vmem:[%s6144_s30 + $0x30] ss:$8 sps:$4 sm:$0xff]   ;;  %v794_v3 = vrot.slane %v792_v56, 5 }
  0x40   : > { %5330 = vmatprep.subr.bf16.mxu1 %v5903_v16  ;;  %5545 = vmatpush3.bf16.msra.mxu0 %v5901_v9  ;;  %v2578_v9 = vsel %vm6266_vm5, %v4728_v4, %v2577_v2  ;;  %v800_v4 = vshll.u32 %v744_v50, 16 }
  0x41   : > { %5546 = vmatprep.subr.bf16.mxu0 %v5904_v28 }
  0x42   : > { %v802_v13 = vrot.slane %v800_v4, 5  ;;  %v752_v4 = vld [vmem:[%s6136_s25 + $0x38] sm:$0xf] }
  0x43   : > { %5331 = vmatpush3.bf16.msra.mxu1 %v5903_v16  ;;  %v4765_v16 = vcombine.low %v2578_v9, %v2582_v11 }
  0x44   : > { %5340 = vmatprep.subr.bf16.mxu1 %v5906_v29  ;;  %5547 = vmatpush3.bf16.msra.mxu0 %v5904_v28  ;;  %v2505_v28 = vrot.slane %v6180_v37, 5  ;;  %v4699_v37 = vld [vmem:[%s6144_s30 + $0x10] sm:$0xe] }
  0x45   : > { %5556 = vmatprep.subr.bf16.mxu0 %v5907_v35 }
  0x46   : > { %5333 = vmatmul.mubr.bf16.vlgmr.msra.gmra.mrb[0].mxu1 %v5908_v32  ;;  %v4698_v32 = vld [vmem:[%s6144_s30 + $0x8] sm:$0xe] }
  0x47   : > { %5341 = vmatpush3.bf16.msra.mxu1 %v5906_v29  ;;  %5549 = vmatmul.mubr.bf16.vlgmr.msra.gmra.mrb[0].mxu0 %v4763_v42  ;;  %v2509_v29 = vrot.slane %v6184_v40, 5  ;;  %v4706_v42 = vrot.slane %v4698_v32, 9  ;;  %v5926_v40 = vld [vmem:[%s7180_s3 + $0x180] sm:$0xff]   ;;  %v5927_v32 = vld [vmem:[%s7179_s2 + $0x48] sm:$0xff]  }
  0x48   : > { %5342 = vmatprep.subr.bf16.mxu1 %v5909_v41  ;;  %5336 = vmatprep.mubr.bf16.mxu1 %v5919_v45  ;;  %v4707_v45 = vrot.slane %v4699_v37, 9 }
  0x49   : > { %5557 = vmatpush3.bf16.msra.mxu0 %v5907_v35  ;;  %5552 = vmatprep.mubr.bf16.mxu0 %v4764_v62  ;;  %v5918_v35 = vld [vmem:[%s7179_s2 + $0x168] sm:$0xff]   ;;  %v4701_v62 = vld [vmem:[%s6144_s30 + $0x20] sm:$0xe] }
  0x4a   : > { %5558 = vmatprep.subr.bf16.mxu0 %v5910_v43  ;;  %v2502_v53 = vsel %vm6266_vm5, %v4707_v45, %v2501_v8  ;;  %v806_v8 = vshll.u32 %v6382_v54, 16  ;;  %v828_v45 = vshll.u32 %v748_v39, 16 }
  0x4b   : > { %5343 = vmatpush3.bf16.msra.mxu1 %v5909_v41  ;;  %v766_v41 = vrot.slane %v764_v14, 5  ;;  %v2513_v14 = vrot.slane %v6221_v10, 5 }
  0x4c   : > { %5344 = vmatprep.subr.bf16.mxu1 %v5911_v44 }
  0x4d   : > { %5559 = vmatpush3.bf16.msra.mxu0 %v5910_v43  ;;  %v775_v43 = vor.u32 %v774_v31, %v771_v30  ;;  %v767_v57 = vsel %vm6174_vm2, %v762_v47, %v766_v41  ;;  %v2521_v30 = vrot.slane %v6238_v34, 5  ;;  %v6430_v41 = vld [vmem:[%s6136_s25 + $0x2c] sm:$0x1] }
  0x4e   : > { %5560 = vmatprep.subr.bf16.mxu0 %v5912_v48  ;;  %5337 = vmatmul.mubr.bf16.gmra.mrb[4].mxu1 %v5922_v58  ;;  %v5928_v47 = vld [vmem:[%s7180_s3 + $0x188] sm:$0xff]  }
  0x4f   : > { %5345 = vmatpush3.bf16.msra.mxu1 %v5911_v44  ;;  %5553 = vmatmul.mubr.bf16.gmra.mrb[4].mxu0 %v4765_v16  ;;  %v780_v44 = vrot.slane %v778_v23, 5  ;;  %v776_v52 = vrot.slane %v775_v43, 4  ;;  %v4709_v16 = vrot.slane %v4701_v62, 9  ;;  %v808_v23 = vrot.slane %v806_v8, 5  ;;  %v6460_v8 = vld [vmem:[%s6136_s25 + $0x3c] sm:$0x1] }
  0x50   : > { %5346 = vmatprep.subr.bf16.mxu1 %v5913_v55 }
  0x51   : > { %5561 = vmatpush3.bf16.msra.mxu0 %v5912_v48  ;;  %v2498_v48 = vsel %vm6266_vm5, %v4706_v42, %v2497_v7  ;;  %v781_v0 = vsel %vm6174_vm2, %v776_v52, %v780_v44  ;;  %v799_v7 = vrot.slane %v797_v60, 4  ;;  %v825_v44 = vshrl.u32 %v748_v39, 16  ;;  %v5931_v60 = vld [vmem:[%s7179_s2 + $0x58] sm:$0xff]  }
  0x52   : > { %5562 = vmatprep.subr.bf16.mxu0 %v5914_v61  ;;  %v4774_v58 = vcombine.low %v2498_v48, %v2502_v53  ;;  %v5929_v48 = vld [vmem:[%s7179_s2 + $0x50] sm:$0xff]  }
  0x53   : > { %5347 = vmatpush3.bf16.msra.mxu1 %v5913_v55  ;;  %v786_v55 = vshll.u32 %v742_v46, 16  ;;  %v803_v22 = vor.u32 %v802_v13, %v799_v7  ;;  %v834_v46 = vshll.u32 %v6430_v41, 16  ;;  %v827_v53 = vrot.slane %v825_v44, 4 }
  0x54   : > { %5348 = vmatprep.subr.bf16.mxu1 %v5915_v6  ;;  %5572 = vmatprep.mubr.bf16.mxu0 %v4774_v58  ;;  %v4703_v58 = vld [vmem:[%s6144_s30 + $0x30] sm:$0xe] }
  0x55   : > { %5563 = vmatpush3.bf16.msra.mxu0 %v5914_v61  ;;  %v4700_v61 = vld [vmem:[%s6144_s30 + $0x18] sm:$0xe]  ;;  %v788_v2 = vrot.slane %v786_v55, 5  ;;  %v804_v27 = vrot.slane %v803_v22, 4  ;;  %v830_v55 = vrot.slane %v828_v45, 5  ;;  %v836_v56 = vrot.slane %v834_v46, 5 }
  0x56   : > { %5564 = vmatprep.subr.bf16.mxu0 %v5916_v24  ;;  %v4708_v9 = vrot.slane %v4700_v61, 9  ;;  %v853_v22 = vshrl.u32 %v752_v4, 16  ;;  %v6482_v45 = vld [vmem:[%s6144_s30 + $0x4] sm:$0x1]  ;;  %v609_v46 = vld [vmem:[%s6144_s30 + $0x8] sm:$0xf] }
  0x57   : > { %5349 = vmatpush3.bf16.msra.mxu1 %v5915_v6  ;;  %v4442_v6 = vcombine.low %v767_v57, %v781_v0  ;;  %v789_v11 = vor.u32 %v788_v2, %v785_v59  ;;  %v4702_v57 = vld [vmem:[%s6144_s30 + $0x28] sm:$0xe]  ;;  %v5930_v59 = vld [vmem:[%s7180_s3 + $0x190] sm:$0xff]   ;;  %v831_v0 = vor.u32 %v830_v55, %v827_v53 }
  0x58   : > { %5350 = vmatprep.subr.bf16.mxu1 %v5917_v25  ;;  %v2506_v21 = vsel %vm6266_vm5, %v4708_v9, %v2505_v28  ;;  %v2517_v28 = vrot.slane %v6225_v12, 5  ;;  %v2525_v12 = vrot.slane %v6242_v36, 5  ;;  %v4710_v62 = vrot.slane %v4702_v57, 9  ;;  %v750_v2 = vld [vmem:[%s6136_s25 + $0x30] sm:$0xf] }
  0x59   : > { %5565 = vmatpush3.bf16.msra.mxu0 %v5916_v24  ;;  %5356 = vmatprep.mubr.bf16.mxu1 %v4442_v6  ;;  %v790_v19 = vrot.slane %v789_v11, 4  ;;  %v2510_v24 = vsel %vm6266_vm5, %v4709_v16, %v2509_v29  ;;  %v809_v29 = vsel %vm6174_vm2, %v804_v27, %v808_v23  ;;  %v839_v9 = vshrl.u32 %v750_v2, 16  ;;  %v4704_v11 = vld [vmem:[%s6144_s30 + $0x38] sm:$0xe] }
  0x5a   : > { %5566 = vmatprep.subr.bf16.mxu0 %v5918_v35  ;;  %v2514_v6 = vsel %vm6266_vm5, %v4710_v62, %v2513_v14  ;;  %v832_v13 = vrot.slane %v831_v0, 4  ;;  %v856_v23 = vshll.u32 %v752_v4, 16  ;;  %v5932_v14 = vld [vmem:[%s7180_s3 + $0x198] sm:$0xff]   ;;  %v862_v27 = vshll.u32 %v6460_v8, 16 }
  0x5b   : > { %5351 = vmatpush3.bf16.msra.mxu1 %v5917_v25  ;;  %v4775_v25 = vcombine.low %v2506_v21, %v2510_v24  ;;  %v795_v26 = vsel %vm6174_vm2, %v790_v19, %v794_v3  ;;  %v6450_v3 = vld [vmem:[%s6136_s25 + $0x34] sm:$0x1]  ;;  %v4705_v21 = vld [vmem:[%s6144_s30 + $0x40] sm:$0xe]  ;;  %v841_v10 = vrot.slane %v839_v9, 4  ;;  %v641_v57 = vshrl.u32 %v609_v46, 16 }
  0x5c   : > { %5352 = vmatprep.subr.bf16.mxu1 %v5920_v38  ;;  %v4443_v31 = vcombine.low %v795_v26, %v809_v29  ;;  %v837_v24 = vsel %vm6174_vm2, %v832_v13, %v836_v56  ;;  %v855_v29 = vrot.slane %v853_v22, 4  ;;  %v864_v39 = vrot.slane %v862_v27, 5 }
  0x5d   : > { %5567 = vmatpush3.bf16.msra.mxu0 %v5918_v35  ;;  %v746_v35 = vld [vmem:[%s6136_s25 + $0x20] sm:$0xf]  ;;  %v636_v56 = vshll.u32 %v6482_v45, 16  ;;  %v643_v62 = vrot.slane %v641_v57, 4  ;;  %v1255_v57 = vrot.slane %v6352_v18, 5  ;;  %v5955_v18 = vld [vmem:[%s7180_s3 + $0xb0] sm:$0xff]  }
  0x5e   : > { %5568 = vmatprep.subr.bf16.mxu0 %v5921_v63  ;;  %v811_v37 = vshrl.u32 %v746_v35, 16  ;;  %v814_v42 = vshll.u32 %v746_v35, 16 }
  0x5f   : > { %5353 = vmatpush3.bf16.msra.mxu1 %v5920_v38  ;;  %v6426_v38 = vld [vmem:[%s6136_s25 + $0x24] sm:$0x1]  ;;  %v638_v4 = vrot.slane %v636_v56, 5  ;;  %v5945_v56 = vld [vmem:[%s7180_s3 + $0x88] sm:$0xff]  }
  0x60   : > { %5354 = vmatprep.subr.bf16.mxu1 %v5923_v5  ;;  %v820_v43 = vshll.u32 %v6426_v38, 16  ;;  %v813_v50 = vrot.slane %v811_v37, 4  ;;  %v816_v51 = vrot.slane %v814_v42, 5  ;;  %v4713_v37 = vrot.slane %v4705_v21, 9  ;;  %v607_v42 = vld [vmem:[%s6144_s30] sm:$0xf] }
  0x61   : > { %5569 = vmatpush3.bf16.msra.mxu0 %v5921_v63  ;;  %v4711_v63 = vrot.slane %v4703_v58, 9 }
  0x62   : > { %5570 = vmatprep.subr.bf16.mxu0 %v5924_v17  ;;  %v822_v52 = vrot.slane %v820_v43, 5  ;;  %v817_v61 = vor.u32 %v816_v51, %v813_v50  ;;  %v2526_v34 = vsel %vm6266_vm5, %v4713_v37, %v2525_v12  ;;  %v627_v51 = vshrl.u32 %v607_v42, 16 }
  0x63   : > { %5355 = vmatpush3.bf16.msra.mxu1 %v5923_v5  ;;  %v2518_v7 = vsel %vm6266_vm5, %v4711_v63, %v2517_v28  ;;  %v5933_v28 = vld [vmem:[%s7179_s2 + $0x60] sm:$0xff]   ;;  %v644_v12 = vshll.u32 %v609_v46, 16 }
  0x64   : > { %5364 = vmatprep.subr.bf16.mxu1 %v5925_v20  ;;  %v818_v5 = vrot.slane %v817_v61, 4  ;;  %v4776_v16 = vcombine.low %v2514_v6, %v2518_v7  ;;  %v629_v58 = vrot.slane %v627_v51, 4  ;;  %v5942_v6 = vld [vmem:[%s6136_s25 + $0x10] ss:$8 sps:$4 sm:$0xff]   ;;  %v5941_v46 = vld [vmem:[%s7180_s3 + $0x80] sm:$0xff]  }
  0x65   : > { %5571 = vmatpush3.bf16.msra.mxu0 %v5924_v17  ;;  %v842_v17 = vshll.u32 %v750_v2, 16  ;;  %v5937_v7 = vld [vmem:[%s7179_s2 + $0x70] sm:$0xff]  }
  0x66   : > { %5357 = vmatmul.mubr.bf16.vlgmr.msra.gmra.mrb[0].mxu1 %v4443_v31  ;;  %5580 = vmatprep.subr.bf16.mxu0 %v5926_v40  ;;  %v823_v19 = vsel %vm6174_vm2, %v818_v5, %v822_v52  ;;  %v858_v31 = vrot.slane %v856_v23, 5  ;;  %v630_v52 = vshll.u32 %v607_v42, 16  ;;  %v646_v5 = vrot.slane %v644_v12, 5  ;;  %v617_v12 = vld [vmem:[%s6144_s30 + $0x28] sm:$0xf] }
  0x67   : > { %5365 = vmatpush3.bf16.msra.mxu1 %v5925_v20  ;;  %v848_v20 = vshll.u32 %v6450_v3, 16  ;;  %v1251_v42 = vrot.slane %v6348_v15, 5  ;;  %v1228_v15 = vld [vmem:[%s6136_s25 + $0x18] sm:$0xe] }
  0x68   : > { %5366 = vmatprep.subr.bf16.mxu1 %v5927_v32  ;;  %5573 = vmatmul.mubr.bf16.vlgmr.msra.gmra.mrb[0].mxu0 %v4775_v25  ;;  %v844_v25 = vrot.slane %v842_v17, 5  ;;  %v859_v43 = vor.u32 %v858_v31, %v855_v29  ;;  %v6513_v17 = vld [vmem:[%s6144_s30 + $0x14] sm:$0x1] }
  0x69   : > { %5581 = vmatpush3.bf16.msra.mxu0 %v5926_v40  ;;  %v850_v26 = vrot.slane %v848_v20, 5  ;;  %v4444_v40 = vcombine.low %v823_v19, %v837_v24  ;;  %5576 = vmatprep.mubr.bf16.mxu0 %v4776_v16  ;;  %v647_v16 = vor.u32 %v646_v5, %v643_v62  ;;  %v613_v20 = vld [vmem:[%s6144_s30 + $0x18] sm:$0xf]  ;;  %v6517_v19 = vld [vmem:[%s6144_s30 + $0x1c] sm:$0x1]  ;;  %v664_v22 = vshll.u32 %v6513_v17, 16 }
  0x6a   : > { %5582 = vmatprep.subr.bf16.mxu0 %v5928_v47  ;;  %v845_v35 = vor.u32 %v844_v25, %v841_v10  ;;  %v860_v53 = vrot.slane %v859_v43, 4  ;;  %v669_v23 = vshrl.u32 %v613_v20, 16  ;;  %v5938_v24 = vld [vmem:[%s7180_s3 + $0x1b0] sm:$0xff]   ;;  %v5940_v43 = vld [vmem:[%s7180_s3 + $0x1b8] sm:$0xff]   ;;  %v5946_v5 = vld [vmem:[%s7179_s2 + $0x188] sm:$0xff]  }
  0x6b   : > { %5367 = vmatpush3.bf16.msra.mxu1 %v5927_v32  ;;  %v4712_v32 = vrot.slane %v4704_v11, 9  ;;  %5360 = vmatprep.mubr.bf16.mxu1 %v4444_v40  ;;  %v611_v11 = vld [vmem:[%s6144_s30 + $0x10] sm:$0xf]  ;;  %v5939_v40 = vld [vmem:[%s7179_s2 + $0x78] sm:$0xff]  }
  0x6c   : > { %5368 = vmatprep.subr.bf16.mxu1 %v5929_v48  ;;  %v846_v50 = vrot.slane %v845_v35, 4  ;;  %v865_v61 = vsel %vm6174_vm2, %v860_v53, %v864_v39  ;;  %v655_v21 = vshrl.u32 %v611_v11, 16  ;;  %v658_v10 = vshll.u32 %v611_v11, 16 }
  0x6d   : > { %5583 = vmatpush3.bf16.msra.mxu0 %v5928_v47  ;;  %v2522_v44 = vsel %vm6266_vm5, %v4712_v32, %v2521_v30  ;;  %v6486_v47 = vld [vmem:[%s6144_s30 + $0xc] sm:$0x1]  ;;  %v671_v31 = vrot.slane %v669_v23, 4  ;;  %v666_v39 = vrot.slane %v664_v22, 5  ;;  %v5956_v23 = vld [vmem:[%s6136_s25 + $0x30] ss:$8 sps:$4 sm:$0xff]  }
  0x6e   : > { %5584 = vmatprep.subr.bf16.mxu0 %v5930_v59  ;;  %v5935_v30 = vld [vmem:[%s7179_s2 + $0x68] sm:$0xff]   ;;  %v4777_v55 = vcombine.low %v2522_v44, %v2526_v34  ;;  %v851_v36 = vsel %vm6174_vm2, %v846_v50, %v850_v26  ;;  %v650_v63 = vshll.u32 %v6486_v47, 16  ;;  %v648_v26 = vrot.slane %v647_v16, 4 }
  0x6f   : > { %5369 = vmatpush3.bf16.msra.mxu1 %v5929_v48  ;;  %v5934_v48 = vld [vmem:[%s7180_s3 + $0x1a0] sm:$0xff]   ;;  %v4445_v0 = vcombine.low %v851_v36, %v865_v61  ;;  %v657_v27 = vrot.slane %v655_v21, 4  ;;  %v660_v29 = vrot.slane %v658_v10, 5  ;;  %v5948_v21 = vld [vmem:[%s7179_s2 + $0x190] sm:$0xff]   ;;  %v5949_v10 = vld [vmem:[%s7180_s3 + $0x98] sm:$0xff]  }
  0x70   : > { %5370 = vmatprep.subr.bf16.mxu1 %v5931_v60  ;;  %5577 = vmatmul.mubr.bf16.gmra.mrb[4].mxu0 %v4777_v55  ;;  %v652_v9 = vrot.slane %v650_v63, 5  ;;  %v5944_v36 = vld [vmem:[%s6136_s25 + $0x20] ss:$8 sps:$4 sm:$0xff]  }
  0x71   : > { %5585 = vmatpush3.bf16.msra.mxu0 %v5930_v59  ;;  %v632_v59 = vrot.slane %v630_v52, 5  ;;  %5361 = vmatmul.mubr.bf16.gmra.mrb[4].mxu1 %v4445_v0  ;;  %v5943_v52 = vld [vmem:[%s7179_s2 + $0x180] sm:$0xff]   ;;  %v697_v0 = vshrl.u32 %v617_v12, 16 }
  0x72   : > { %5586 = vmatprep.subr.bf16.mxu0 %v5932_v14  ;;  %5596 = vmatprep.mubr.bf16.mxu0 %v5942_v6  ;;  %v653_v35 = vsel %vm6174_vm2, %v648_v26, %v652_v9  ;;  %v5947_v6 = vld [vmem:[%s7180_s3 + $0x90] sm:$0xff]  }
  0x73   : > { %5371 = vmatpush3.bf16.msra.mxu1 %v5931_v60  ;;  %v5936_v60 = vld [vmem:[%s7180_s3 + $0x1a8] sm:$0xff]   ;;  %v633_v2 = vor.u32 %v632_v59, %v629_v58  ;;  %v615_v58 = vld [vmem:[%s6144_s30 + $0x20] sm:$0xf]  ;;  %v6552_v59 = vld [vmem:[%s6144_s30 + $0x24] sm:$0x1] }
  0x74   : > { %5372 = vmatprep.subr.bf16.mxu1 %v5933_v28  ;;  %v683_v61 = vshrl.u32 %v615_v58, 16  ;;  %v686_v62 = vshll.u32 %v615_v58, 16  ;;  %v692_v63 = vshll.u32 %v6552_v59, 16  ;;  %v1225_v58 = vld [vmem:[%s6136_s25] sm:$0xe] }
  0x75   : > { %5587 = vmatpush3.bf16.msra.mxu0 %v5932_v14  ;;  %v634_v13 = vrot.slane %v633_v2, 4  ;;  %v672_v14 = vshll.u32 %v613_v20, 16  ;;  %v700_v2 = vshll.u32 %v617_v12, 16  ;;  %v5952_v12 = vld [vmem:[%s7179_s2 + $0x1a0] sm:$0xff]  }
  0x76   : > { %5588 = vmatprep.subr.bf16.mxu0 %v5934_v48  ;;  %v688_v9 = vrot.slane %v686_v62, 5  ;;  %v694_v11 = vrot.slane %v692_v63, 5 }
  0x77   : > { %5373 = vmatpush3.bf16.msra.mxu1 %v5933_v28  ;;  %v639_v25 = vsel %vm6174_vm2, %v634_v13, %v638_v4  ;;  %v678_v28 = vshll.u32 %v6517_v19, 16  ;;  %v674_v32 = vrot.slane %v672_v14, 5  ;;  %v699_v13 = vrot.slane %v697_v0, 4 }
  0x78   : > { %5374 = vmatprep.subr.bf16.mxu1 %v5935_v30  ;;  %v4454_v44 = vcombine.low %v639_v25, %v653_v35  ;;  %v702_v16 = vrot.slane %v700_v2, 5  ;;  %v6575_v25 = vld [vmem:[%s6144_s30 + $0x34] sm:$0x1]  ;;  %v4474_v0 = vrot.slane %v1225_v58, 9  ;;  %v1199_v58 = vrot.slane %v6486_v47, 5 }
  0x79   : > { %5589 = vmatpush3.bf16.msra.mxu0 %v5934_v48  ;;  %v680_v37 = vrot.slane %v678_v28, 5  ;;  %v661_v48 = vor.u32 %v660_v29, %v657_v27  ;;  %v675_v50 = vor.u32 %v674_v32, %v671_v31  ;;  %v621_v27 = vld [vmem:[%s6144_s30 + $0x38] sm:$0xf]  ;;  %v6579_v28 = vld [vmem:[%s6144_s30 + $0x3c] sm:$0x1]  ;;  %v720_v32 = vshll.u32 %v6575_v25, 16 }
  0x7a   : > { %5590 = vmatprep.subr.bf16.mxu0 %v5936_v60  ;;  %5380 = vmatprep.mubr.bf16.mxu1 %v4454_v44  ;;  %v703_v14 = vor.u32 %v702_v16, %v699_v13  ;;  %v725_v35 = vshrl.u32 %v621_v27, 16  ;;  %v728_v44 = vshll.u32 %v621_v27, 16  ;;  %v1227_v16 = vld [vmem:[%s6136_s25 + $0x10] sm:$0xe]  ;;  %v5960_v27 = vld [vmem:[%s7179_s2 + $0x1b8] sm:$0xff]  }
  0x7b   : > { %5375 = vmatpush3.bf16.msra.mxu1 %v5935_v30  ;;  %v662_v34 = vrot.slane %v661_v48, 4  ;;  %v676_v51 = vrot.slane %v675_v50, 4  ;;  %v5951_v48 = vld [vmem:[%s7180_s3 + $0xa0] sm:$0xff]   ;;  %v4874_v47 = vld [vmem:[%s6136_s25 + $0x10] sm:$0xf] }
  0x7c   : > { %5376 = vmatprep.subr.bf16.mxu1 %v5937_v7  ;;  %v704_v29 = vrot.slane %v703_v14, 4 }
  0x7d   : > { %5591 = vmatpush3.bf16.msra.mxu0 %v5936_v60  ;;  %v667_v30 = vsel %vm6174_vm2, %v662_v34, %v666_v39  ;;  %v681_v53 = vsel %vm6174_vm2, %v676_v51, %v680_v37  ;;  %v6556_v60 = vld [vmem:[%s6144_s30 + $0x2c] sm:$0x1]  ;;  %v5950_v39 = vld [vmem:[%s7179_s2 + $0x198] sm:$0xff]   ;;  %v727_v51 = vrot.slane %v725_v35, 4  ;;  %v1230_v35 = vld [vmem:[%s6136_s25 + $0x28] sm:$0xe] }
  0x7e   : > { %5592 = vmatprep.subr.bf16.mxu0 %v5938_v24  ;;  %v4455_v55 = vcombine.low %v667_v30, %v681_v53  ;;  %v706_v4 = vshll.u32 %v6556_v60, 16  ;;  %v1259_v30 = vrot.slane %v6376_v49, 5  ;;  %v1226_v49 = vld [vmem:[%s6136_s25 + $0x8] sm:$0xe] }
  0x7f   : > { %5377 = vmatpush3.bf16.msra.mxu1 %v5937_v7  ;;  %v685_v7 = vrot.slane %v683_v61, 4  ;;  %v5953_v61 = vld [vmem:[%s7180_s3 + $0xa8] sm:$0xff]  }
  0x80   : > { %5378 = vmatprep.subr.bf16.mxu1 %v5939_v40  ;;  %v708_v20 = vrot.slane %v706_v4, 5  ;;  %v4475_v4 = vrot.slane %v1226_v49, 9 }
  0x81   : > { %5593 = vmatpush3.bf16.msra.mxu0 %v5938_v24  ;;  %v689_v22 = vor.u32 %v688_v9, %v685_v7  ;;  %v619_v24 = vld [vmem:[%s6144_s30 + $0x30] sm:$0xf]  ;;  %v1263_v9 = vrot.slane %v6382_v54, 5  ;;  %v5954_v54 = vld [vmem:[%s7179_s2 + $0x1a8] sm:$0xff]  }
  0x82   : > { %5594 = vmatprep.subr.bf16.mxu0 %v5940_v43  ;;  %v714_v31 = vshll.u32 %v619_v24, 16  ;;  %v709_v50 = vsel %vm6174_vm2, %v704_v29, %v708_v20  ;;  %v5962_v7 = vld [vmem:[%s6144_s30 + $0x10] ss:$8 sps:$4 sm:$0xff]   ;;  %v1256_v13 = vsel %vm6266_vm5, %v4475_v4, %v1255_v57  ;;  %v4477_v57 = vrot.slane %v1228_v15, 9  ;;  %v6683_v4 = vld [vmem:[%s6136_s25 + $0x14] sm:$0x1] }
  0x83   : > { %5379 = vmatpush3.bf16.msra.mxu1 %v5939_v40  ;;  %v690_v26 = vrot.slane %v689_v22, 4  ;;  %v711_v40 = vshrl.u32 %v619_v24, 16  ;;  %v5957_v24 = vld [vmem:[%s7179_s2 + $0x1b0] sm:$0xff]   ;;  %v1267_v29 = vrot.slane %v6426_v38, 5 }
  0x84   : > { %5388 = vmatprep.subr.bf16.mxu1 %v5941_v46  ;;  %v716_v34 = vrot.slane %v714_v31, 5  ;;  %v1271_v31 = vrot.slane %v6430_v41, 5 }
  0x85   : > { %5595 = vmatpush3.bf16.msra.mxu0 %v5940_v43  ;;  %v695_v37 = vsel %vm6174_vm2, %v690_v26, %v694_v11  ;;  %v713_v43 = vrot.slane %v711_v40, 4  ;;  %v5959_v26 = vld [vmem:[%s7180_s3 + $0xb8] sm:$0xff]   ;;  %v5961_v40 = vld [vmem:[%s7179_s2 + $0x80] sm:$0xff]  }
  0x86   : > { %5381 = vmatmul.mubr.bf16.vlgmr.msra.gmra.mrb[0].mxu1 %v4455_v55  ;;  %5604 = vmatprep.subr.bf16.mxu0 %v5943_v52  ;;  %v4456_v53 = vcombine.low %v695_v37, %v709_v50  ;;  %v722_v55 = vrot.slane %v720_v32, 5  ;;  %v1229_v32 = vld [vmem:[%s6136_s25 + $0x20] sm:$0xe] }
  0x87   : > { %5389 = vmatpush3.bf16.msra.mxu1 %v5941_v46  ;;  %v734_v46 = vshll.u32 %v6579_v28, 16  ;;  %v4478_v37 = vrot.slane %v1229_v32, 9  ;;  %v5964_v50 = vld [vmem:[%s6144_s30 + $0x20] ss:$8 sps:$4 sm:$0xff]  }
  0x88   : > { %5390 = vmatprep.subr.bf16.mxu1 %v5945_v56  ;;  %5597 = vmatmul.mubr.bf16.vlgmr.msra.gmra.mrb[0].mxu0 %v5944_v36  ;;  %v717_v36 = vor.u32 %v716_v34, %v713_v43  ;;  %v4479_v43 = vrot.slane %v1230_v35, 9 }
  0x89   : > { %5605 = vmatpush3.bf16.msra.mxu0 %v5943_v52  ;;  %5600 = vmatprep.mubr.bf16.mxu0 %v5956_v23  ;;  %v5958_v52 = vld [vmem:[%s6136_s25 + $0x40] ss:$8 sps:$4 sm:$0xff]   ;;  %v736_v63 = vrot.slane %v734_v46, 5  ;;  %v1264_v23 = vsel %vm6266_vm5, %v4477_v57, %v1263_v9  ;;  %v1268_v38 = vsel %vm6266_vm5, %v4478_v37, %v1267_v29  ;;  %v1275_v46 = vrot.slane %v6450_v3, 5  ;;  %v5967_v3 = vld [vmem:[%s7179_s2 + $0x90] sm:$0xff]  }
  0x8a   : > { %5606 = vmatprep.subr.bf16.mxu0 %v5946_v5  ;;  %5384 = vmatprep.mubr.bf16.mxu1 %v4456_v53  ;;  %v718_v2 = vrot.slane %v717_v36, 4  ;;  %v1272_v41 = vsel %vm6266_vm5, %v4479_v43, %v1271_v31  ;;  %v1195_v36 = vrot.slane %v6482_v45, 5  ;;  %v5969_v45 = vld [vmem:[%s7179_s2 + $0x98] sm:$0xff]   ;;  %v4880_v43 = vld [vmem:[%s6136_s25 + $0x28] sm:$0xf] }
  0x8b   : > { %5391 = vmatpush3.bf16.msra.mxu1 %v5945_v56  ;;  %v730_v56 = vrot.slane %v728_v44, 5  ;;  %v5965_v44 = vld [vmem:[%s7179_s2 + $0x88] sm:$0xff]   ;;  %v4516_v34 = vcombine.low %v1268_v38, %v1272_v41  ;;  %v4876_v9 = vld [vmem:[%s6136_s25 + $0x18] sm:$0xf]  ;;  %v5972_v38 = vld [vmem:[%s7180_s3 + $0x1e0] sm:$0xff]  }
  0x8c   : > { %5392 = vmatprep.subr.bf16.mxu1 %v5947_v6  ;;  %v723_v11 = vsel %vm6174_vm2, %v718_v2, %v722_v55  ;;  %v3376_v15 = vshrl.u32 %v4876_v9, 16  ;;  %v1169_v31 = vld [vmem:[%s6144_s30 + $0x18] sm:$0xe] }
  0x8d   : > { %5607 = vmatpush3.bf16.msra.mxu0 %v5946_v5  ;;  %v731_v62 = vor.u32 %v730_v56, %v727_v51  ;;  %v1231_v51 = vld [vmem:[%s6136_s25 + $0x30] sm:$0xe]  ;;  %v4469_v37 = vrot.slane %v1169_v31, 9 }
  0x8e   : > { %5608 = vmatprep.subr.bf16.mxu0 %v5948_v21  ;;  %v4480_v53 = vrot.slane %v1231_v51, 9 }
  0x8f   : > { %5393 = vmatpush3.bf16.msra.mxu1 %v5947_v6  ;;  %v732_v5 = vrot.slane %v731_v62, 4  ;;  %v1252_v6 = vsel %vm6266_vm5, %v4474_v0, %v1251_v42  ;;  %v1167_v62 = vld [vmem:[%s6144_s30 + $0x8] sm:$0xe] }
  0x90   : > { %5394 = vmatprep.subr.bf16.mxu1 %v5949_v10  ;;  %5601 = vmatmul.mubr.bf16.gmra.mrb[4].mxu0 %v5958_v52  ;;  %v1232_v52 = vld [vmem:[%s6136_s25 + $0x38] sm:$0xe]  ;;  %v4467_v2 = vrot.slane %v1167_v62, 9 }
  0x91   : > { %5609 = vmatpush3.bf16.msra.mxu0 %v5948_v21  ;;  %v737_v20 = vsel %vm6174_vm2, %v732_v5, %v736_v63  ;;  %v4514_v21 = vcombine.low %v1252_v6, %v1256_v13  ;;  %5620 = vmatprep.mubr.bf16.mxu0 %v5962_v7  ;;  %v4481_v55 = vrot.slane %v1232_v52, 9  ;;  %v5968_v63 = vld [vmem:[%s7180_s3 + $0x1d0] sm:$0xff]   ;;  %v5978_v5 = vld [vmem:[%s6144_s30 + $0x40] ss:$8 sps:$4 sm:$0xff]   ;;  %v3362_v13 = vshrl.u32 %v4874_v47, 16 }
  0x92   : > { %5610 = vmatprep.subr.bf16.mxu0 %v5950_v39  ;;  %v4457_v42 = vcombine.low %v723_v11, %v737_v20  ;;  %v1200_v7 = vsel %vm6266_vm5, %v4467_v2, %v1199_v58  ;;  %v6692_v11 = vld [vmem:[%s6136_s25 + $0x1c] sm:$0x1]  ;;  %v6726_v52 = vld [vmem:[%s6136_s25 + $0x2c] sm:$0x1] }
  0x93   : > { %5395 = vmatpush3.bf16.msra.mxu1 %v5949_v10  ;;  %v4476_v10 = vrot.slane %v1227_v16, 9  ;;  %v3365_v16 = vshll.u32 %v4874_v47, 16  ;;  %v3385_v57 = vshll.u32 %v6692_v11, 16  ;;  %v5977_v47 = vld [vmem:[%s7180_s3 + $0x1f0] sm:$0xff]  }
  0x94   : > { %5396 = vmatprep.subr.bf16.mxu1 %v5951_v48  ;;  %5385 = vmatmul.mubr.bf16.gmra.mrb[4].mxu1 %v4457_v42 }
  0x95   : > { %5611 = vmatpush3.bf16.msra.mxu0 %v5950_v39  ;;  %v1260_v22 = vsel %vm6266_vm5, %v4476_v10, %v1259_v30  ;;  %5404 = vmatprep.mubr.bf16.mxu1 %v4514_v21  ;;  %v5963_v39 = vld [vmem:[%s7180_s3 + $0x1c0] sm:$0xff]   ;;  %v5966_v30 = vld [vmem:[%s7180_s3 + $0x1c8] sm:$0xff]   ;;  %v3371_v21 = vshll.u32 %v6683_v4, 16  ;;  %v3379_v10 = vshll.u32 %v4876_v9, 16  ;;  %v3367_v42 = vrot.slane %v3365_v16, 5 }
  0x96   : > { %5612 = vmatprep.subr.bf16.mxu0 %v5952_v12  ;;  %v4515_v14 = vcombine.low %v1260_v22, %v1264_v23  ;;  %v1203_v22 = vrot.slane %v6513_v17, 5  ;;  %v5971_v23 = vld [vmem:[%s7179_s2 + $0xa0] sm:$0xff]  }
  0x97   : > { %5397 = vmatpush3.bf16.msra.mxu1 %v5951_v48  ;;  %v1279_v48 = vrot.slane %v6460_v8, 5  ;;  %v1276_v8 = vsel %vm6266_vm5, %v4480_v53, %v1275_v46  ;;  %v3373_v29 = vrot.slane %v3371_v21, 5  ;;  %v4878_v17 = vld [vmem:[%s6136_s25 + $0x20] sm:$0xf]  ;;  %v1171_v21 = vld [vmem:[%s6144_s30 + $0x28] sm:$0xe] }
  0x98   : > { %5398 = vmatprep.subr.bf16.mxu1 %v5953_v61 }
  0x99   : > { %5613 = vmatpush3.bf16.msra.mxu0 %v5952_v12  ;;  %v1280_v56 = vsel %vm6266_vm5, %v4481_v55, %v1279_v48  ;;  %v5976_v12 = vld [vmem:[%s6144_s30 + $0x30] ss:$8 sps:$4 sm:$0xff]   ;;  %v6719_v48 = vld [vmem:[%s6136_s25 + $0x24] sm:$0x1] }
  0x9a   : > { %5614 = vmatprep.subr.bf16.mxu0 %v5954_v54  ;;  %v4517_v49 = vcombine.low %v1276_v8, %v1280_v56 }
  0x9b   : > { %5399 = vmatpush3.bf16.msra.mxu1 %v5953_v61  ;;  %v1166_v61 = vld [vmem:[%s6144_s30] sm:$0xe] }
  0x9c   : > { %5400 = vmatprep.subr.bf16.mxu1 %v5955_v18  ;;  %v4466_v0 = vrot.slane %v1166_v61, 9  ;;  %v5974_v61 = vld [vmem:[%s7180_s3 + $0x1e8] sm:$0xff]  }
  0x9d   : > { %5615 = vmatpush3.bf16.msra.mxu0 %v5954_v54  ;;  %v5970_v54 = vld [vmem:[%s7180_s3 + $0x1d8] sm:$0xff]  }
  0x9e   : > { %5616 = vmatprep.subr.bf16.mxu0 %v5957_v24  ;;  %v1196_v6 = vsel %vm6266_vm5, %v4466_v0, %v1195_v36  ;;  %v3399_v36 = vshll.u32 %v6719_v48, 16  ;;  %v5975_v0 = vld [vmem:[%s7179_s2 + $0xb0] sm:$0xff]  }
  0x9f   : > { %5401 = vmatpush3.bf16.msra.mxu1 %v5955_v18  ;;  %v4526_v20 = vcombine.low %v1196_v6, %v1200_v7  ;;  %v3364_v18 = vrot.slane %v3362_v13, 4  ;;  %v1211_v6 = vrot.slane %v6552_v59, 5  ;;  %v5980_v59 = vld [vmem:[%s7180_s3 + $0x1f8] sm:$0xff]  }
  0xa0   : > { %5402 = vmatprep.subr.bf16.mxu1 %v5959_v26  ;;  %v3401_v7 = vrot.slane %v3399_v36, 5 }
  0xa1   : > { %5617 = vmatpush3.bf16.msra.mxu0 %v5957_v24  ;;  %v3381_v24 = vrot.slane %v3379_v10, 5  ;;  %v1219_v10 = vrot.slane %v6575_v25, 5 }
  0xa2   : > { %5618 = vmatprep.subr.bf16.mxu0 %v5960_v27 }
  0xa3   : > { %5403 = vmatpush3.bf16.msra.mxu1 %v5959_v26  ;;  %v1168_v26 = vld [vmem:[%s6144_s30 + $0x10] sm:$0xe] }
  0xa4   : > { %5412 = vmatprep.subr.bf16.mxu1 %v5961_v40  ;;  %v4468_v32 = vrot.slane %v1168_v26, 9 }
  0xa5   : > { %5619 = vmatpush3.bf16.msra.mxu0 %v5960_v27  ;;  %v1207_v27 = vrot.slane %v6517_v19, 5  ;;  %v5973_v19 = vld [vmem:[%s7179_s2 + $0xa8] sm:$0xff]  }
  0xa6   : > { %5405 = vmatmul.mubr.bf16.vlgmr.msra.gmra.mrb[0].mxu1 %v4515_v14  ;;  %5628 = vmatprep.subr.bf16.mxu0 %v5963_v39  ;;  %v3378_v14 = vrot.slane %v3376_v15, 4  ;;  %v6716_v46 = vsel %vm6266_vm5, %v4468_v32, %v1203_v22  ;;  %v1215_v15 = vrot.slane %v6556_v60, 5  ;;  %v6761_v22 = vld [vmem:[%s6136_s25 + $0x34] sm:$0x1]  ;;  %v1223_v60 = vrot.slane %v6579_v28, 5  ;;  %v5982_v32 = vld [vmem:[%s7179_s2 + $0x1c0] sm:$0xff]  }
  0xa7   : > { %5413 = vmatpush3.bf16.msra.mxu1 %v5961_v40  ;;  %5408 = vmatprep.mubr.bf16.mxu1 %v4516_v34  ;;  %v3368_v40 = vor.u32 %v3367_v42, %v3364_v18  ;;  %v6723_v51 = vsel %vm6266_vm5, %v4469_v37, %v1207_v27  ;;  %v4471_v18 = vrot.slane %v1171_v21, 9  ;;  %v5981_v42 = vld [vmem:[%s7180_s3 + $0xc0] sm:$0xff]  }
  0xa8   : > { %5414 = vmatprep.subr.bf16.mxu1 %v5965_v44  ;;  %5621 = vmatmul.mubr.bf16.vlgmr.msra.gmra.mrb[0].mxu0 %v5964_v50  ;;  %v3382_v35 = vor.u32 %v3381_v24, %v3378_v14  ;;  %v3393_v50 = vshll.u32 %v4878_v17, 16  ;;  %v4527_v55 = vcombine.low %v6716_v46, %v6723_v51  ;;  %v4884_v14 = vld [vmem:[%s6136_s25 + $0x38] sm:$0xf]  ;;  %v6770_v24 = vld [vmem:[%s6136_s25 + $0x3c] sm:$0x1] }
  0xa9   : > { %5629 = vmatpush3.bf16.msra.mxu0 %v5963_v39  ;;  %5624 = vmatprep.mubr.bf16.mxu0 %v5976_v12  ;;  %v3387_v39 = vrot.slane %v3385_v57, 5  ;;  %v3369_v41 = vrot.slane %v3368_v40, 4  ;;  %v3407_v12 = vshll.u32 %v4880_v43, 16  ;;  %v4882_v57 = vld [vmem:[%s6136_s25 + $0x30] sm:$0xf]  ;;  %v3432_v28 = vshrl.u32 %v4884_v14, 16 }
  0xaa   : > { %5630 = vmatprep.subr.bf16.mxu0 %v5966_v30  ;;  %v3383_v34 = vrot.slane %v3382_v35, 4  ;;  %v3395_v8 = vrot.slane %v3393_v50, 5  ;;  %v3418_v26 = vshrl.u32 %v4882_v57, 16  ;;  %v3421_v27 = vshll.u32 %v4882_v57, 16 }
  0xab   : > { %5415 = vmatpush3.bf16.msra.mxu1 %v5965_v44  ;;  %v3390_v44 = vshrl.u32 %v4878_v17, 16  ;;  %v3374_v53 = vsel %vm6174_vm2, %v3369_v41, %v3373_v29  ;;  %v3427_v29 = vshll.u32 %v6761_v22, 16  ;;  %v3435_v31 = vshll.u32 %v4884_v14, 16  ;;  %v1172_v41 = vld [vmem:[%s6144_s30 + $0x30] sm:$0xe] }
  0xac   : > { %5416 = vmatprep.subr.bf16.mxu1 %v5967_v3  ;;  %v3388_v56 = vsel %vm6174_vm2, %v3383_v34, %v3387_v39  ;;  %v1216_v17 = vsel %vm6266_vm5, %v4471_v18, %v1215_v15  ;;  %v3420_v35 = vrot.slane %v3418_v26, 4  ;;  %v3423_v39 = vrot.slane %v3421_v27, 5  ;;  %v5986_v15 = vld [vmem:[%s7179_s2 + $0x1d0] sm:$0xff]  }
  0xad   : > { %5631 = vmatpush3.bf16.msra.mxu0 %v5966_v30  ;;  %v3404_v30 = vshrl.u32 %v4880_v43, 16  ;;  %v4922_v62 = vcombine.low %v3374_v53, %v3388_v56  ;;  %v3441_v37 = vshll.u32 %v6770_v24, 16  ;;  %v5983_v43 = vld [vmem:[%s7180_s3 + $0xc8] sm:$0xff]   ;;  %v1173_v53 = vld [vmem:[%s6144_s30 + $0x38] sm:$0xe] }
  0xae   : > { %5409 = vmatmul.mubr.bf16.gmra.mrb[4].mxu1 %v4517_v49  ;;  %5632 = vmatprep.subr.bf16.mxu0 %v5968_v63  ;;  %v3413_v49 = vshll.u32 %v6726_v52, 16  ;;  %v3424_v34 = vor.u32 %v3423_v39, %v3420_v35  ;;  %v4858_v14 = vld [vmem:[%s6144_s30 + $0x10] sm:$0xf]  ;;  %v6822_v26 = vld [vmem:[%s6144_s30 + $0x14] sm:$0x1] }
  0xaf   : > { %5417 = vmatpush3.bf16.msra.mxu1 %v5967_v3  ;;  %5428 = vmatprep.mubr.bf16.mxu1 %v4526_v20  ;;  %v3392_v3 = vrot.slane %v3390_v44, 4  ;;  %v3406_v58 = vrot.slane %v3404_v30, 4  ;;  %v1170_v20 = vld [vmem:[%s6144_s30 + $0x20] sm:$0xe]  ;;  %v3429_v44 = vrot.slane %v3427_v29, 5  ;;  %v3443_v30 = vrot.slane %v3441_v37, 5 }
  0xb0   : > { %5418 = vmatprep.subr.bf16.mxu1 %v5969_v45  ;;  %5625 = vmatmul.mubr.bf16.gmra.mrb[4].mxu0 %v5978_v5  ;;  %v5979_v5 = vld [vmem:[%s7179_s2 + $0xb8] sm:$0xff]   ;;  %v3415_v9 = vrot.slane %v3413_v49, 5 }
  0xb1   : > { %5633 = vmatpush3.bf16.msra.mxu0 %v5968_v63  ;;  %v3409_v63 = vrot.slane %v3407_v12, 5  ;;  %v3396_v2 = vor.u32 %v3395_v8, %v3392_v3  ;;  %5644 = vmatprep.mubr.bf16.mxu0 %v4922_v62  ;;  %v4472_v3 = vrot.slane %v1172_v41, 9  ;;  %v4886_v8 = vld [vmem:[%s6136_s25 + $0x40] sm:$0xf]  ;;  %v6788_v12 = vld [vmem:[%s6136_s25 + $0x44] sm:$0x1] }
  0xb2   : > { %5634 = vmatprep.subr.bf16.mxu0 %v5970_v54  ;;  %v3446_v62 = vshrl.u32 %v4886_v8, 16  ;;  %v6826_v29 = vld [vmem:[%s6144_s30 + $0x1c] sm:$0x1]  ;;  %v5989_v41 = vld [vmem:[%s7180_s3 + $0xe0] sm:$0xff]  }
  0xb3   : > { %5419 = vmatpush3.bf16.msra.mxu1 %v5969_v45  ;;  %v3410_v45 = vor.u32 %v3409_v63, %v3406_v58  ;;  %v3397_v13 = vrot.slane %v3396_v2, 4  ;;  %v4473_v58 = vrot.slane %v1173_v53, 9  ;;  %v3425_v63 = vrot.slane %v3424_v34, 4 }
  0xb4   : > { %5420 = vmatprep.subr.bf16.mxu1 %v5971_v23  ;;  %v1220_v49 = vsel %vm6266_vm5, %v4472_v3, %v1219_v10  ;;  %v3449_v2 = vshll.u32 %v4886_v8, 16  ;;  %v3448_v51 = vrot.slane %v3446_v62, 4  ;;  %v5990_v62 = vld [vmem:[%s7179_s2 + $0x1e0] sm:$0xff]  }
  0xb5   : > { %5635 = vmatpush3.bf16.msra.mxu0 %v5970_v54  ;;  %v3411_v16 = vrot.slane %v3410_v45, 4  ;;  %v4470_v54 = vrot.slane %v1170_v20, 9  ;;  %v3402_v25 = vsel %vm6174_vm2, %v3397_v13, %v3401_v7  ;;  %v3455_v45 = vshll.u32 %v6788_v12, 16 }
  0xb6   : > { %5636 = vmatprep.subr.bf16.mxu0 %v5972_v38  ;;  %v1224_v46 = vsel %vm6266_vm5, %v4473_v58, %v1223_v60  ;;  %v3430_v7 = vsel %vm6174_vm2, %v3425_v63, %v3429_v44  ;;  %v5997_v60 = vld [vmem:[%s6136_s25 + $0x8] ss:$8 sps:$4 sm:$0xff]   ;;  %v4862_v58 = vld [vmem:[%s6144_s30 + $0x20] sm:$0xf] }
  0xb7   : > { %5421 = vmatpush3.bf16.msra.mxu1 %v5971_v23  ;;  %v3416_v23 = vsel %vm6174_vm2, %v3411_v16, %v3415_v9  ;;  %v1212_v40 = vsel %vm6266_vm5, %v4470_v54, %v1211_v6  ;;  %v5985_v6 = vld [vmem:[%s7180_s3 + $0xd0] sm:$0xff]   ;;  %v3451_v9 = vrot.slane %v3449_v2, 5  ;;  %v3457_v18 = vrot.slane %v3455_v45, 5  ;;  %v5991_v45 = vld [vmem:[%s7180_s3 + $0xe8] sm:$0xff]  }
  0xb8   : > { %5422 = vmatprep.subr.bf16.mxu1 %v5973_v19  ;;  %v4923_v50 = vcombine.low %v3402_v25, %v3416_v23  ;;  %v4528_v56 = vcombine.low %v1212_v40, %v1216_v17  ;;  %v4860_v40 = vld [vmem:[%s6144_s30 + $0x18] sm:$0xf]  ;;  %v3243_v17 = vshll.u32 %v6822_v26, 16  ;;  %v3265_v2 = vshll.u32 %v4862_v58, 16 }
  0xb9   : > { %5637 = vmatpush3.bf16.msra.mxu0 %v5972_v38  ;;  %v3434_v38 = vrot.slane %v3432_v28, 4  ;;  %v3452_v54 = vor.u32 %v3451_v9, %v3448_v51  ;;  %v3234_v28 = vshrl.u32 %v4858_v14, 16  ;;  %v3248_v35 = vshrl.u32 %v4860_v40, 16 }
  0xba   : > { %5638 = vmatprep.subr.bf16.mxu0 %v5974_v61  ;;  %v3251_v39 = vshll.u32 %v4860_v40, 16  ;;  %v3245_v3 = vrot.slane %v3243_v17, 5  ;;  %v3855_v9 = vrot.slane %v6683_v4, 5  ;;  %v5996_v40 = vld [vmem:[%s7179_s2 + $0x1f8] sm:$0xff]   ;;  %v4866_v17 = vld [vmem:[%s6144_s30 + $0x30] sm:$0xf] }
  0xbb   : > { %5423 = vmatpush3.bf16.msra.mxu1 %v5973_v19  ;;  %v3437_v19 = vrot.slane %v3435_v31, 5  ;;  %v3453_v25 = vrot.slane %v3452_v54, 4  ;;  %v3237_v31 = vshll.u32 %v4858_v14, 16 }
  0xbc   : > { %5424 = vmatprep.subr.bf16.mxu1 %v5975_v0  ;;  %v3253_v34 = vrot.slane %v3251_v39, 5  ;;  %v6883_v39 = vld [vmem:[%s6144_s30 + $0x34] sm:$0x1] }
  0xbd   : > { %5639 = vmatpush3.bf16.msra.mxu0 %v5974_v61  ;;  %v3438_v36 = vor.u32 %v3437_v19, %v3434_v38  ;;  %v4888_v61 = vld [vmem:[%s6136_s25 + $0x48] sm:$0xf]  ;;  %v3239_v44 = vrot.slane %v3237_v31, 5  ;;  %v3257_v38 = vshll.u32 %v6826_v29, 16  ;;  %v5988_v19 = vld [vmem:[%s7179_s2 + $0x1d8] sm:$0xff]  }
  0xbe   : > { %5640 = vmatprep.subr.bf16.mxu0 %v5977_v47  ;;  %v3463_v20 = vshll.u32 %v4888_v61, 16 }
  0xbf   : > { %5425 = vmatpush3.bf16.msra.mxu1 %v5975_v0  ;;  %v6797_v0 = vld [vmem:[%s6136_s25 + $0x4c] sm:$0x1] }
  0xc0   : > { %5426 = vmatprep.subr.bf16.mxu1 %v5979_v5  ;;  %v3469_v21 = vshll.u32 %v6797_v0, 16  ;;  %v3465_v57 = vrot.slane %v3463_v20, 5 }
  0xc1   : > { %5641 = vmatpush3.bf16.msra.mxu0 %v5977_v47  ;;  %v5984_v47 = vld [vmem:[%s7179_s2 + $0x1c8] sm:$0xff]  }
  0xc2   : > { %5642 = vmatprep.subr.bf16.mxu0 %v5980_v59  ;;  %v3471_v23 = vrot.slane %v3469_v21, 5  ;;  %v3267_v21 = vrot.slane %v3265_v2, 5 }
  0xc3   : > { %5427 = vmatpush3.bf16.msra.mxu1 %v5979_v5  ;;  %v3439_v5 = vrot.slane %v3438_v36, 4  ;;  %v3259_v36 = vrot.slane %v3257_v38, 5  ;;  %v3293_v38 = vshll.u32 %v4866_v17, 16 }
  0xc4   : > { %5436 = vmatprep.subr.bf16.mxu1 %v5981_v42 }
  0xc5   : > { %5643 = vmatpush3.bf16.msra.mxu0 %v5980_v59  ;;  %v3444_v13 = vsel %vm6174_vm2, %v3439_v5, %v3443_v30  ;;  %v4529_v59 = vcombine.low %v1220_v49, %v1224_v46  ;;  %v3262_v49 = vshrl.u32 %v4862_v58, 16  ;;  %v6849_v5 = vld [vmem:[%s6144_s30 + $0x24] sm:$0x1]  ;;  %v3295_v58 = vrot.slane %v3293_v38, 5 }
  0xc6   : > { %5429 = vmatmul.mubr.bf16.vlgmr.msra.gmra.mrb[0].mxu1 %v4527_v55  ;;  %v3460_v55 = vshrl.u32 %v4888_v61, 16  ;;  %5652 = vmatprep.subr.bf16.mxu0 %v5982_v32  ;;  %v4924_v10 = vcombine.low %v3430_v7, %v3444_v13  ;;  %v4864_v61 = vld [vmem:[%s6144_s30 + $0x28] sm:$0xf]  ;;  %v3271_v54 = vshll.u32 %v6849_v5, 16 }
  0xc7   : > { %5437 = vmatpush3.bf16.msra.mxu1 %v5981_v42  ;;  %5432 = vmatprep.mubr.bf16.mxu1 %v4528_v56  ;;  %v5987_v42 = vld [vmem:[%s7180_s3 + $0xd8] sm:$0xff]   ;;  %v3276_v46 = vshrl.u32 %v4864_v61, 16  ;;  %v3279_v51 = vshll.u32 %v4864_v61, 16  ;;  %v3264_v7 = vrot.slane %v3262_v49, 4  ;;  %v5992_v13 = vld [vmem:[%s7179_s2 + $0x1e8] sm:$0xff]  }
  0xc8   : > { %5438 = vmatprep.subr.bf16.mxu1 %v5983_v43  ;;  %v3462_v16 = vrot.slane %v3460_v55, 4  ;;  %5645 = vmatmul.mubr.bf16.vlgmr.msra.gmra.mrb[0].mxu0 %v4923_v50  ;;  %v3250_v50 = vrot.slane %v3248_v35, 4  ;;  %v3273_v14 = vrot.slane %v3271_v54, 5  ;;  %v3863_v35 = vrot.slane %v6719_v48, 5  ;;  %v6009_v48 = vld [vmem:[%s7179_s2 + $0xe8] sm:$0xff]  }
  0xc9   : > { %5653 = vmatpush3.bf16.msra.mxu0 %v5982_v32  ;;  %5648 = vmatprep.mubr.bf16.mxu0 %v4924_v10  ;;  %v3458_v32 = vsel %vm6174_vm2, %v3453_v25, %v3457_v18  ;;  %v3281_v10 = vrot.slane %v3279_v51, 5  ;;  %v6905_v51 = vld [vmem:[%s6144_s30 + $0x44] sm:$0x1] }
  0xca   : > { %5654 = vmatprep.subr.bf16.mxu0 %v5984_v47  ;;  %v3466_v27 = vor.u32 %v3465_v57, %v3462_v16  ;;  %v3254_v56 = vor.u32 %v3253_v34, %v3250_v50  ;;  %v5993_v16 = vld [vmem:[%s7180_s3 + $0xf0] sm:$0xff]   ;;  %v5995_v57 = vld [vmem:[%s7180_s3 + $0xf8] sm:$0xff]  }
  0xcb   : > { %5439 = vmatpush3.bf16.msra.mxu1 %v5983_v43  ;;  %v3236_v43 = vrot.slane %v3234_v28, 4  ;;  %v6000_v50 = vld [vmem:[%s6136_s25 + $0x18] ss:$8 sps:$4 sm:$0xff]  }
  0xcc   : > { %5440 = vmatprep.subr.bf16.mxu1 %v5985_v6  ;;  %v3467_v37 = vrot.slane %v3466_v27, 4 }
  0xcd   : > { %5655 = vmatpush3.bf16.msra.mxu0 %v5984_v47  ;;  %v3240_v53 = vor.u32 %v3239_v44, %v3236_v43  ;;  %v3255_v47 = vrot.slane %v3254_v56, 4  ;;  %v6887_v43 = vld [vmem:[%s6144_s30 + $0x3c] sm:$0x1]  ;;  %v3290_v44 = vshrl.u32 %v4866_v17, 16  ;;  %v6011_v56 = vld [vmem:[%s6136_s25 + $0x28] ss:$8 sps:$4 sm:$0xff]  }
  0xce   : > { %5433 = vmatmul.mubr.bf16.gmra.mrb[4].mxu1 %v4529_v59  ;;  %5656 = vmatprep.subr.bf16.mxu0 %v5986_v15  ;;  %v3472_v30 = vsel %vm6174_vm2, %v3467_v37, %v3471_v23  ;;  %v3859_v23 = vrot.slane %v6692_v11, 5  ;;  %v4868_v37 = vld [vmem:[%s6144_s30 + $0x38] sm:$0xf]  ;;  %v6004_v17 = vld [vmem:[%s7180_s3 + $0x210] sm:$0xff]  }
  0xcf   : > { %5441 = vmatpush3.bf16.msra.mxu1 %v5985_v6  ;;  %5452 = vmatprep.mubr.bf16.mxu1 %v5997_v60  ;;  %v4925_v8 = vcombine.low %v3458_v32, %v3472_v30  ;;  %v3241_v63 = vrot.slane %v3240_v53, 4  ;;  %v6854_v6 = vld [vmem:[%s6144_s30 + $0x2c] sm:$0x1]  ;;  %v3260_v20 = vsel %vm6174_vm2, %v3255_v47, %v3259_v36  ;;  %v3268_v60 = vor.u32 %v3267_v21, %v3264_v7  ;;  %v5998_v32 = vld [vmem:[%s7179_s2 + $0xc0] sm:$0xff]  }
  0xd0   : > { %5442 = vmatprep.subr.bf16.mxu1 %v5987_v42  ;;  %v3285_v18 = vshll.u32 %v6854_v6, 16  ;;  %v3307_v53 = vshll.u32 %v4868_v37, 16  ;;  %v3292_v36 = vrot.slane %v3290_v44, 4  ;;  %v6002_v7 = vld [vmem:[%s7180_s3 + $0x208] sm:$0xff]  }
  0xd1   : > { %5657 = vmatpush3.bf16.msra.mxu0 %v5986_v15  ;;  %v3246_v55 = vsel %vm6174_vm2, %v3241_v63, %v3245_v3  ;;  %v3278_v15 = vrot.slane %v3276_v46, 4  ;;  %v3269_v28 = vrot.slane %v3268_v60, 4  ;;  %v3313_v3 = vshll.u32 %v6887_v43, 16  ;;  %v4870_v46 = vld [vmem:[%s6144_s30 + $0x40] sm:$0xf] }
  0xd2   : > { %5658 = vmatprep.subr.bf16.mxu0 %v5988_v19  ;;  %5649 = vmatmul.mubr.bf16.gmra.mrb[4].mxu0 %v4925_v8  ;;  %v4934_v59 = vcombine.low %v3246_v55, %v3260_v20  ;;  %v3287_v27 = vrot.slane %v3285_v18, 5  ;;  %v5999_v8 = vld [vmem:[%s7180_s3 + $0x200] sm:$0xff]   ;;  %v3309_v49 = vrot.slane %v3307_v53, 5  ;;  %v3296_v47 = vor.u32 %v3295_v58, %v3292_v36  ;;  %v4872_v55 = vld [vmem:[%s6144_s30 + $0x48] sm:$0xf]  ;;  %v6006_v58 = vld [vmem:[%s7180_s3 + $0x218] sm:$0xff]  }
  0xd3   : > { %5443 = vmatpush3.bf16.msra.mxu1 %v5987_v42  ;;  %v5994_v42 = vld [vmem:[%s7179_s2 + $0x1f0] sm:$0xff]   ;;  %v3282_v25 = vor.u32 %v3281_v10, %v3278_v15  ;;  %v3274_v34 = vsel %vm6174_vm2, %v3269_v28, %v3273_v14  ;;  %v3315_v2 = vrot.slane %v3313_v3, 5  ;;  %v6915_v20 = vld [vmem:[%s6144_s30 + $0x4c] sm:$0x1]  ;;  %v3318_v21 = vshrl.u32 %v4870_v46, 16 }
  0xd4   : > { %5444 = vmatprep.subr.bf16.mxu1 %v5989_v41  ;;  %5668 = vmatprep.mubr.bf16.mxu0 %v4934_v59  ;;  %v3321_v15 = vshll.u32 %v4870_v46, 16  ;;  %v3327_v10 = vshll.u32 %v6905_v51, 16  ;;  %v3297_v59 = vrot.slane %v3296_v47, 4  ;;  %v3332_v54 = vshrl.u32 %v4872_v55, 16  ;;  %v6014_v60 = vld [vmem:[%s6136_s25 + $0x38] ss:$8 sps:$4 sm:$0xff]  }
  0xd5   : > { %5659 = vmatpush3.bf16.msra.mxu0 %v5988_v19  ;;  %v3283_v31 = vrot.slane %v3282_v25, 4  ;;  %v3299_v19 = vshll.u32 %v6883_v39, 16  ;;  %v3335_v18 = vshll.u32 %v4872_v55, 16  ;;  %v3320_v25 = vrot.slane %v3318_v21, 4  ;;  %v4963_v53 = vld [vmem:[%s6136_s25 + $0x18] sm:$0xe] }
  0xd6   : > { %5660 = vmatprep.subr.bf16.mxu0 %v5990_v62  ;;  %v3323_v14 = vrot.slane %v3321_v15, 5  ;;  %v4971_v36 = vrot.slane %v4963_v53, 9  ;;  %v3875_v21 = vrot.slane %v6770_v24, 5  ;;  %v4966_v15 = vld [vmem:[%s6136_s25 + $0x30] sm:$0xe] }
  0xd7   : > { %5445 = vmatpush3.bf16.msra.mxu1 %v5989_v41  ;;  %v3304_v41 = vshrl.u32 %v4868_v37, 16  ;;  %v3288_v30 = vsel %vm6174_vm2, %v3283_v31, %v3287_v27  ;;  %v3301_v63 = vrot.slane %v3299_v19, 5  ;;  %v3329_v27 = vrot.slane %v3327_v10, 5  ;;  %v4967_v10 = vld [vmem:[%s6136_s25 + $0x38] sm:$0xe] }
  0xd8   : > { %5446 = vmatprep.subr.bf16.mxu1 %v5991_v45  ;;  %v3334_v31 = vrot.slane %v3332_v54, 4  ;;  %v3324_v44 = vor.u32 %v3323_v14, %v3320_v25  ;;  %v6015_v54 = vld [vmem:[%s7179_s2 + $0xf8] sm:$0xff]   ;;  %v4975_v24 = vrot.slane %v4967_v10, 9  ;;  %v6037_v14 = vld [vmem:[%s6136_s25 + $0xc] sm:$0x1] }
  0xd9   : > { %5661 = vmatpush3.bf16.msra.mxu0 %v5990_v62  ;;  %v3306_v61 = vrot.slane %v3304_v41, 4  ;;  %v6001_v62 = vld [vmem:[%s7179_s2 + $0xc8] sm:$0xff]   ;;  %v3302_v28 = vsel %vm6174_vm2, %v3297_v59, %v3301_v63  ;;  %v6013_v59 = vld [vmem:[%s7180_s3 + $0x230] sm:$0xff]  }
  0xda   : > { %5662 = vmatprep.subr.bf16.mxu0 %v5992_v13  ;;  %v6017_v41 = vld [vmem:[%s6144_s30 + $0x8] ss:$8 sps:$4 sm:$0xff]  }
  0xdb   : > { %5447 = vmatpush3.bf16.msra.mxu1 %v5991_v45  ;;  %v4935_v45 = vcombine.low %v3274_v34, %v3288_v30  ;;  %v3325_v34 = vrot.slane %v3324_v44, 4  ;;  %v4962_v30 = vld [vmem:[%s6136_s25 + $0x10] sm:$0xe]  ;;  %v3883_v44 = vrot.slane %v6797_v0, 5 }
  0xdc   : > { %5448 = vmatprep.subr.bf16.mxu1 %v5993_v16 }
  0xdd   : > { %5663 = vmatpush3.bf16.msra.mxu0 %v5992_v13  ;;  %v6003_v13 = vld [vmem:[%s7179_s2 + $0xd0] sm:$0xff]  }
  0xde   : > { %5664 = vmatprep.subr.bf16.mxu0 %v5994_v42 }
  0xdf   : > { %5449 = vmatpush3.bf16.msra.mxu1 %v5993_v16  ;;  %v3310_v16 = vor.u32 %v3309_v49, %v3306_v61  ;;  %v3330_v61 = vsel %vm6174_vm2, %v3325_v34, %v3329_v27  ;;  %v3860_v49 = vsel %vm6266_vm5, %v4971_v36, %v3859_v23  ;;  %v2069_v27 = vshll.u32 %v6037_v14, 16  ;;  %v4950_v14 = vld [vmem:[%s6144_s30 + $0x30] sm:$0xe] }
  0xe0   : > { %5450 = vmatprep.subr.bf16.mxu1 %v5995_v57 }
  0xe1   : > { %5665 = vmatpush3.bf16.msra.mxu0 %v5994_v42  ;;  %v3341_v42 = vshll.u32 %v6915_v20, 16  ;;  %v7018_v34 = vrot.slane %v2069_v27, 5  ;;  %v6024_v27 = vld [vmem:[%s7179_s2 + $0x210] sm:$0xff]  }
  0xe2   : > { %5666 = vmatprep.subr.bf16.mxu0 %v5996_v40 }
  0xe3   : > { %5451 = vmatpush3.bf16.msra.mxu1 %v5995_v57  ;;  %v3311_v57 = vrot.slane %v3310_v16, 4  ;;  %v3871_v16 = vrot.slane %v6761_v22, 5  ;;  %v4974_v22 = vrot.slane %v4966_v15, 9 }
  0xe4   : > { %5460 = vmatprep.subr.bf16.mxu1 %v5998_v32 }
  0xe5   : > { %5667 = vmatpush3.bf16.msra.mxu0 %v5996_v40  ;;  %v3337_v40 = vrot.slane %v3335_v18, 5  ;;  %v3316_v37 = vsel %vm6174_vm2, %v3311_v57, %v3315_v2  ;;  %v4964_v2 = vld [vmem:[%s6136_s25 + $0x20] sm:$0xe]  ;;  %v6990_v18 = vsel %vm6266_vm5, %v4974_v22, %v3871_v16  ;;  %v6016_v57 = vld [vmem:[%s7180_s3 + $0x238] sm:$0xff]  }
  0xe6   : > { %5453 = vmatmul.mubr.bf16.vlgmr.msra.gmra.mrb[0].mxu1 %v6000_v50  ;;  %5676 = vmatprep.subr.bf16.mxu0 %v5999_v8  ;;  %v4936_v38 = vcombine.low %v3302_v28, %v3316_v37  ;;  %v6005_v50 = vld [vmem:[%s7179_s2 + $0xd8] sm:$0xff]   ;;  %v4972_v46 = vrot.slane %v4964_v2, 9  ;;  %v3879_v37 = vrot.slane %v6788_v12, 5  ;;  %v6031_v12 = vld [vmem:[%s6144_s30 + $0x28] ss:$8 sps:$4 sm:$0xff]  }
  0xe7   : > { %5461 = vmatpush3.bf16.msra.mxu1 %v5998_v32  ;;  %5456 = vmatprep.mubr.bf16.mxu1 %v6011_v56  ;;  %v3343_v32 = vrot.slane %v3341_v42, 5  ;;  %v3338_v19 = vor.u32 %v3337_v40, %v3334_v31  ;;  %v4970_v56 = vrot.slane %v4962_v30, 9  ;;  %v6994_v42 = vsel %vm6266_vm5, %v4975_v24, %v3875_v21  ;;  %v6020_v28 = vld [vmem:[%s6144_s30 + $0x18] ss:$8 sps:$4 sm:$0xff]   ;;  %v4626_v40 = vld [vmem:[%s6136_s25 + $0x8] sm:$0xf] }
  0xe8   : > { %5462 = vmatprep.subr.bf16.mxu1 %v6001_v62  ;;  %5669 = vmatmul.mubr.bf16.vlgmr.msra.gmra.mrb[0].mxu0 %v4935_v45  ;;  %v4965_v45 = vld [vmem:[%s6136_s25 + $0x28] sm:$0xe]  ;;  %v6958_v4 = vsel %vm6266_vm5, %v4972_v46, %v3863_v35  ;;  %v5012_v25 = vcombine.low %v6990_v18, %v6994_v42  ;;  %v4968_v31 = vld [vmem:[%s6136_s25 + $0x40] sm:$0xe]  ;;  %v3807_v46 = vrot.slane %v6849_v5, 5  ;;  %v6026_v18 = vld [vmem:[%s7179_s2 + $0x218] sm:$0xff]  }
  0xe9   : > { %5677 = vmatpush3.bf16.msra.mxu0 %v5999_v8  ;;  %5672 = vmatprep.mubr.bf16.mxu0 %v4936_v38  ;;  %v3339_v3 = vrot.slane %v3338_v19, 4  ;;  %v3867_v8 = vrot.slane %v6726_v52, 5  ;;  %v3856_v52 = vsel %vm6266_vm5, %v4970_v56, %v3855_v9  ;;  %v4973_v55 = vrot.slane %v4965_v45, 9  ;;  %v6008_v9 = vld [vmem:[%s7180_s3 + $0x220] sm:$0xff]   ;;  %v6010_v35 = vld [vmem:[%s7180_s3 + $0x228] sm:$0xff]  }
  0xea   : > { %5678 = vmatprep.subr.bf16.mxu0 %v6002_v7  ;;  %v4628_v38 = vld [vmem:[%s6136_s25 + $0x10] sm:$0xf]  ;;  %v2060_v19 = vshrl.u32 %v4626_v40, 16  ;;  %v4976_v0 = vrot.slane %v4968_v31, 9  ;;  %v4948_v45 = vld [vmem:[%s6144_s30 + $0x20] sm:$0xe] }
  0xeb   : > { %5463 = vmatpush3.bf16.msra.mxu1 %v6001_v62  ;;  %v6007_v62 = vld [vmem:[%s7179_s2 + $0xe0] sm:$0xff]   ;;  %v3344_v63 = vsel %vm6174_vm2, %v3339_v3, %v3343_v32  ;;  %v6962_v11 = vsel %vm6266_vm5, %v4973_v55, %v3867_v8  ;;  %v2074_v30 = vshrl.u32 %v4628_v38, 16  ;;  %v2077_v53 = vshll.u32 %v4628_v38, 16  ;;  %v6038_v3 = vld [vmem:[%s6136_s25 + $0x14] sm:$0x1]  ;;  %v6022_v55 = vld [vmem:[%s7179_s2 + $0x208] sm:$0xff]  }
  0xec   : > { %5464 = vmatprep.subr.bf16.mxu1 %v6003_v13  ;;  %v4937_v47 = vcombine.low %v3330_v61, %v3344_v63  ;;  %v5011_v23 = vcombine.low %v6958_v4, %v6962_v11  ;;  %v6019_v32 = vld [vmem:[%s7179_s2 + $0x200] sm:$0xff]   ;;  %v2083_v56 = vshll.u32 %v6038_v3, 16  ;;  %v2062_v36 = vrot.slane %v2060_v19, 4  ;;  %v4946_v63 = vld [vmem:[%s6144_s30 + $0x10] sm:$0xe] }
  0xed   : > { %5679 = vmatpush3.bf16.msra.mxu0 %v6002_v7  ;;  %v5010_v7 = vcombine.low %v3856_v52, %v3860_v49  ;;  %v2076_v61 = vrot.slane %v2074_v30, 4  ;;  %v4947_v52 = vld [vmem:[%s6144_s30 + $0x18] sm:$0xe]  ;;  %v4956_v15 = vrot.slane %v4948_v45, 9  ;;  %v4632_v24 = vld [vmem:[%s6136_s25 + $0x20] sm:$0xf] }
  0xee   : > { %5457 = vmatmul.mubr.bf16.gmra.mrb[4].mxu1 %v6014_v60  ;;  %5680 = vmatprep.subr.bf16.mxu0 %v6004_v17  ;;  %v6018_v60 = vld [vmem:[%s7180_s3 + $0x100] sm:$0xff]   ;;  %v4955_v16 = vrot.slane %v4947_v52, 9  ;;  %v4630_v21 = vld [vmem:[%s6136_s25 + $0x18] sm:$0xf]  ;;  %v2105_v38 = vshll.u32 %v4632_v24, 16 }
  0xef   : > { %5465 = vmatpush3.bf16.msra.mxu1 %v6003_v13  ;;  %5476 = vmatprep.mubr.bf16.mxu1 %v6017_v41  ;;  %v6012_v13 = vld [vmem:[%s7179_s2 + $0xf0] sm:$0xff]   ;;  %v2063_v41 = vshll.u32 %v4626_v40, 16  ;;  %v2088_v11 = vshrl.u32 %v4630_v21, 16  ;;  %v6027_v42 = vld [vmem:[%s7180_s3 + $0x120] sm:$0xff]  }
  0xf0   : > { %5466 = vmatprep.subr.bf16.mxu1 %v6005_v50  ;;  %5673 = vmatmul.mubr.bf16.gmra.mrb[4].mxu0 %v4937_v47  ;;  %v4949_v47 = vld [vmem:[%s6144_s30 + $0x28] sm:$0xe]  ;;  %v4636_v19 = vld [vmem:[%s6136_s25 + $0x30] sm:$0xf] }
  0xf1   : > { %5681 = vmatpush3.bf16.msra.mxu0 %v6004_v17  ;;  %5692 = vmatprep.mubr.bf16.mxu0 %v5010_v7  ;;  %v6021_v17 = vld [vmem:[%s7180_s3 + $0x108] sm:$0xff]   ;;  %v2065_v8 = vrot.slane %v2063_v41, 5 }
  0xf2   : > { %5682 = vmatprep.subr.bf16.mxu0 %v6006_v58 }
  0xf3   : > { %5467 = vmatpush3.bf16.msra.mxu1 %v6005_v50  ;;  %v4969_v50 = vld [vmem:[%s6136_s25 + $0x48] sm:$0xe]  ;;  %v2066_v2 = vor.u32 %v2065_v8, %v2062_v36  ;;  %v3815_v36 = vrot.slane %v6883_v39, 5  ;;  %v6039_v39 = vld [vmem:[%s6136_s25 + $0x1c] sm:$0x1] }
  0xf4   : > { %5468 = vmatprep.subr.bf16.mxu1 %v6007_v62  ;;  %v4977_v49 = vrot.slane %v4969_v50, 9  ;;  %v4951_v50 = vld [vmem:[%s6144_s30 + $0x38] sm:$0xe] }
  0xf5   : > { %5683 = vmatpush3.bf16.msra.mxu0 %v6006_v58  ;;  %v3799_v58 = vrot.slane %v6822_v26, 5  ;;  %v6023_v26 = vld [vmem:[%s7180_s3 + $0x110] sm:$0xff]   ;;  %v2067_v5 = vrot.slane %v2066_v2, 4  ;;  %v2097_v2 = vshll.u32 %v6039_v39, 16 }
  0xf6   : > { %5684 = vmatprep.subr.bf16.mxu0 %v6008_v9 }
  0xf7   : > { %5469 = vmatpush3.bf16.msra.mxu1 %v6007_v62  ;;  %v2079_v62 = vrot.slane %v2077_v53, 5  ;;  %v2072_v22 = vsel %vm6174_vm2, %v2067_v5, %v7018_v34  ;;  %v4958_v34 = vrot.slane %v4950_v14, 9  ;;  %v7078_v53 = vrot.slane %v2088_v11, 4  ;;  %v6033_v14 = vld [vmem:[%s7180_s3 + $0x130] sm:$0xff]  }
  0xf8   : > { %5470 = vmatprep.subr.bf16.mxu1 %v6009_v48  ;;  %v3827_v11 = vrot.slane %v6915_v20, 5 }
  0xf9   : > { %5685 = vmatpush3.bf16.msra.mxu0 %v6008_v9  ;;  %v2080_v7 = vor.u32 %v2079_v62, %v2076_v61  ;;  %v2085_v9 = vrot.slane %v2083_v56, 5  ;;  %v4959_v61 = vrot.slane %v4951_v50, 9  ;;  %v3819_v62 = vrot.slane %v6887_v43, 5 }
  0xfa   : > { %5686 = vmatprep.subr.bf16.mxu0 %v6010_v35  ;;  %v7095_v52 = vsel %vm6266_vm5, %v4958_v34, %v3815_v36 }
  0xfb   : > { %5471 = vmatpush3.bf16.msra.mxu1 %v6009_v48  ;;  %v3803_v48 = vrot.slane %v6826_v29, 5  ;;  %v2081_v10 = vrot.slane %v2080_v7, 4  ;;  %v3880_v29 = vsel %vm6266_vm5, %v4976_v0, %v3879_v37  ;;  %v2133_v0 = vshll.u32 %v4636_v19, 16 }
  0xfc   : > { %5472 = vmatprep.subr.bf16.mxu1 %v6012_v13  ;;  %v7101_v43 = vsel %vm6266_vm5, %v4959_v61, %v3819_v62  ;;  %v6044_v61 = vld [vmem:[%s6136_s25 + $0x44] sm:$0x1] }
  0xfd   : > { %5687 = vmatpush3.bf16.msra.mxu0 %v6010_v35  ;;  %v3811_v35 = vrot.slane %v6854_v6, 5  ;;  %v3884_v6 = vsel %vm6266_vm5, %v4977_v49, %v3883_v44  ;;  %v2086_v4 = vsel %vm6174_vm2, %v2081_v10, %v2085_v9  ;;  %v3804_v40 = vsel %vm6266_vm5, %v4955_v16, %v3803_v48  ;;  %v4952_v49 = vld [vmem:[%s6144_s30 + $0x40] sm:$0xe]  ;;  %v6040_v16 = vld [vmem:[%s6136_s25 + $0x24] sm:$0x1] }
  0xfe   : > { %5688 = vmatprep.subr.bf16.mxu0 %v6013_v59  ;;  %v4674_v37 = vcombine.low %v2072_v22, %v2086_v4  ;;  %v2102_v44 = vshrl.u32 %v4632_v24, 16  ;;  %v5013_v41 = vcombine.low %v3880_v29, %v3884_v6  ;;  %v2135_v9 = vrot.slane %v2133_v0, 5  ;;  %v6041_v10 = vld [vmem:[%s6136_s25 + $0x2c] sm:$0x1] }
  0xff   : > { %5473 = vmatpush3.bf16.msra.mxu1 %v6012_v13  ;;  %v4954_v13 = vrot.slane %v4946_v63, 9  ;;  %v6028_v63 = vld [vmem:[%s7179_s2 + $0x220] sm:$0xff]   ;;  %v5024_v48 = vcombine.low %v7095_v52, %v7101_v43  ;;  %v3823_v6 = vrot.slane %v6905_v51, 5  ;;  %v6042_v51 = vld [vmem:[%s6136_s25 + $0x34] sm:$0x1]  ;;  %v2167_v62 = vshll.u32 %v6044_v61, 16 }
 0x100   : > { %5474 = vmatprep.subr.bf16.mxu1 %v6015_v54  ;;  %v2104_v8 = vrot.slane %v2102_v44, 4 }
 0x101   : > { %5689 = vmatpush3.bf16.msra.mxu0 %v6013_v59  ;;  %v4957_v59 = vrot.slane %v4949_v47, 9  ;;  %v3800_v31 = vsel %vm6266_vm5, %v4954_v13, %v3799_v58  ;;  %v2107_v58 = vrot.slane %v2105_v38, 5  ;;  %v4638_v47 = vld [vmem:[%s6136_s25 + $0x38] sm:$0xf] }
 0x102   : > { %5690 = vmatprep.subr.bf16.mxu0 %v6016_v57  ;;  %v5022_v30 = vcombine.low %v3800_v31, %v3804_v40  ;;  %v2147_v29 = vshll.u32 %v4638_v47, 16  ;;  %v2139_v31 = vshll.u32 %v6042_v51, 16 }
 0x103   : > { %5475 = vmatpush3.bf16.msra.mxu1 %v6015_v54  ;;  %v6032_v54 = vld [vmem:[%s6144_s30 + $0x38] ss:$8 sps:$4 sm:$0xff]   ;;  %v2108_v13 = vor.u32 %v2107_v58, %v2104_v8 }
 0x104   : > { %5484 = vmatprep.subr.bf16.mxu1 %v6018_v60  ;;  %v2149_v50 = vrot.slane %v2147_v29, 5 }
 0x105   : > { %5691 = vmatpush3.bf16.msra.mxu0 %v6016_v57  ;;  %v7051_v57 = vsel %vm6266_vm5, %v4956_v15, %v3807_v46  ;;  %v4640_v46 = vld [vmem:[%s6136_s25 + $0x40] sm:$0xf]  ;;  %v4960_v15 = vrot.slane %v4952_v49, 9  ;;  %v2109_v44 = vrot.slane %v2108_v13, 4 }
 0x106   : > { %5477 = vmatmul.mubr.bf16.vlgmr.msra.gmra.mrb[0].mxu1 %v6020_v28  ;;  %5700 = vmatprep.subr.bf16.mxu0 %v6019_v32  ;;  %v6025_v28 = vld [vmem:[%s7180_s3 + $0x118] sm:$0xff]   ;;  %v2158_v22 = vshrl.u32 %v4640_v46, 16  ;;  %v2161_v24 = vshll.u32 %v4640_v46, 16 }
 0x107   : > { %5485 = vmatpush3.bf16.msra.mxu1 %v6018_v60  ;;  %5480 = vmatprep.mubr.bf16.mxu1 %v6031_v12  ;;  %v7057_v60 = vsel %vm6266_vm5, %v4957_v59, %v3811_v35  ;;  %v2130_v12 = vshrl.u32 %v4636_v19, 16  ;;  %v4953_v35 = vld [vmem:[%s6144_s30 + $0x48] sm:$0xe]  ;;  %v2125_v59 = vshll.u32 %v6041_v10, 16  ;;  %v3824_v40 = vsel %vm6266_vm5, %v4960_v15, %v3823_v6 }
 0x108   : > { %5486 = vmatprep.subr.bf16.mxu1 %v6021_v17  ;;  %5693 = vmatmul.mubr.bf16.vlgmr.msra.gmra.mrb[0].mxu0 %v5011_v23  ;;  %v2091_v23 = vshll.u32 %v4630_v21, 16  ;;  %v2111_v21 = vshll.u32 %v6040_v16, 16  ;;  %v4961_v4 = vrot.slane %v4953_v35, 9  ;;  %v2160_v34 = vrot.slane %v2158_v22, 4 }
 0x109   : > { %5701 = vmatpush3.bf16.msra.mxu0 %v6019_v32  ;;  %v5023_v32 = vcombine.low %v7051_v57, %v7057_v60  ;;  %5696 = vmatprep.mubr.bf16.mxu0 %v5012_v25  ;;  %v2132_v7 = vrot.slane %v2130_v12, 4  ;;  %v6043_v12 = vld [vmem:[%s6136_s25 + $0x3c] sm:$0x1]  ;;  %v5034_v57 = vld [vmem:[%s7181_s4] ss:$0 sm:$0xff] }
 0x10a   : > { %5702 = vmatprep.subr.bf16.mxu0 %v6022_v55  ;;  %v7080_v3 = vrot.slane %v2091_v23, 5  ;;  %v6030_v23 = vld [vmem:[%s7179_s2 + $0x228] sm:$0xff]   ;;  %v3828_v20 = vsel %vm6266_vm5, %v4961_v4, %v3827_v11  ;;  %v2113_v38 = vrot.slane %v2111_v21, 5  ;;  %v2153_v0 = vshll.u32 %v6043_v12, 16 }
 0x10b   : > { %5487 = vmatpush3.bf16.msra.mxu1 %v6021_v17  ;;  %v4634_v17 = vld [vmem:[%s6136_s25 + $0x28] sm:$0xf]  ;;  %v5025_v19 = vcombine.low %v3824_v40, %v3828_v20  ;;  %s4383_s25 = sshll.u32 %s6094_s22, 3 }
 0x10c   : > { %5488 = vmatprep.subr.bf16.mxu1 %v6023_v26  ;;  %v2116_v56 = vshrl.u32 %v4634_v17, 16  ;;  %v2119_v25 = vshll.u32 %v4634_v17, 16  ;;  %v2094_v5 = vor.u32 %v7080_v3, %v7078_v53  ;;  %v2099_v17 = vrot.slane %v2097_v2, 5  ;;  %v6034_v53 = vld [vmem:[%s7179_s2 + $0x230] sm:$0xff]   ;;  %p275_p4 = scmp.lt.s32.totalorder %s4383_s25, 15 }
 0x10d   : > { %5703 = vmatpush3.bf16.msra.mxu0 %v6022_v55  ;;  %v6029_v55 = vld [vmem:[%s7180_s3 + $0x128] sm:$0xff]   ;;  %v2114_v36 = vsel %vm6174_vm2, %v2109_v44, %v2113_v38 }
 0x10e   : > { %5481 = vmatmul.mubr.bf16.gmra.mrb[4].mxu1 %v6032_v54  ;;  %5704 = vmatprep.subr.bf16.mxu0 %v6024_v27  ;;  %v2118_v45 = vrot.slane %v2116_v56, 4  ;;  %v2144_v54 = vshrl.u32 %v4638_v47, 16  ;;  %v2127_v56 = vrot.slane %v2125_v59, 5  ;;  %s7189_s25 = smov (!%p275_p4, %s4383_s25), 15 }
 0x10f   : > { %5489 = vmatpush3.bf16.msra.mxu1 %v6023_v26  ;;  %5500 = vmatprep.mubr.bf16.mxu1 %v4674_v37  ;;  %v2121_v26 = vrot.slane %v2119_v25, 5  ;;  %v2095_v37 = vrot.slane %v2094_v5, 4  ;;  %s4384_s8 = sshll.u32 %s7189_s25, 2 }
 0x110   : > { %5490 = vmatprep.subr.bf16.mxu1 %v6025_v28  ;;  %5697 = vmatmul.mubr.bf16.gmra.mrb[4].mxu0 %v5013_v41  ;;  %v2146_v41 = vrot.slane %v2144_v54, 4  ;;  %s7164_s10 = scalar_lea.vmem %s7182_s5, %s4384_s8 }
 0x111   : > { %5705 = vmatpush3.bf16.msra.mxu0 %v6024_v27  ;;  %5716 = vmatprep.mubr.bf16.mxu0 %v5022_v30  ;;  %v2122_v27 = vor.u32 %v2121_v26, %v2118_v45  ;;  %v2163_v30 = vrot.slane %v2161_v24, 5  ;;  %v2100_v25 = vsel %vm6174_vm2, %v2095_v37, %v2099_v17  ;;  %v2155_v45 = vrot.slane %v2153_v0, 5 }
 0x112   : > { %5706 = vmatprep.subr.bf16.mxu0 %v6026_v18  ;;  %v2150_v8 = vor.u32 %v2149_v50, %v2146_v41  ;;  %v4675_v2 = vcombine.low %v2100_v25, %v2114_v36  ;;  %v2169_v26 = vrot.slane %v2167_v62, 5 }
 0x113   : > { %5491 = vmatpush3.bf16.msra.mxu1 %v6025_v28  ;;  %v2136_v28 = vor.u32 %v2135_v9, %v2132_v7  ;;  %v2123_v3 = vrot.slane %v2122_v27, 4  ;;  %v2164_v58 = vor.u32 %v2163_v30, %v2160_v34 }
 0x114   : > { %5492 = vmatprep.subr.bf16.mxu1 %v6027_v42  ;;  %v2151_v46 = vrot.slane %v2150_v8, 4 }
 0x115   : > { %5707 = vmatpush3.bf16.msra.mxu0 %v6026_v18  ;;  %v2137_v18 = vrot.slane %v2136_v28, 4  ;;  %v2128_v49 = vsel %vm6174_vm2, %v2123_v3, %v2127_v56 }
 0x116   : > { %5708 = vmatprep.subr.bf16.mxu0 %v6028_v63  ;;  %v2156_v7 = vsel %vm6174_vm2, %v2151_v46, %v2155_v45 }
 0x117   : > { %5493 = vmatpush3.bf16.msra.mxu1 %v6027_v42  ;;  %v2141_v42 = vrot.slane %v2139_v31, 5 }
 0x118   : > { %5494 = vmatprep.subr.bf16.mxu1 %v6029_v55 }
 0x119   : > { %5709 = vmatpush3.bf16.msra.mxu0 %v6028_v63  ;;  %v6036_v63 = vld [vmem:[%s7179_s2 + $0x238] sm:$0xff]   ;;  %v2142_v39 = vsel %vm6174_vm2, %v2137_v18, %v2141_v42 }
 0x11a   : > { %5710 = vmatprep.subr.bf16.mxu0 %v6030_v23  ;;  %v4676_v47 = vcombine.low %v2128_v49, %v2142_v39 }
 0x11b   : > { %5495 = vmatpush3.bf16.msra.mxu1 %v6029_v55  ;;  %v2165_v55 = vrot.slane %v2164_v58, 4 }
 0x11c   : > { %5496 = vmatprep.subr.bf16.mxu1 %v6033_v14 }
 0x11d   : > { %5711 = vmatpush3.bf16.msra.mxu0 %v6030_v23  ;;  %v2170_v9 = vsel %vm6174_vm2, %v2165_v55, %v2169_v26 }
 0x11e   : > { %5712 = vmatprep.subr.bf16.mxu0 %v6034_v53  ;;  %v4677_v35 = vcombine.low %v2156_v7, %v2170_v9 }
 0x11f   : > { %5497 = vmatpush3.bf16.msra.mxu1 %v6033_v14 }
 0x120   : > { %5498 = vmatprep.subr.bf16.mxu1 %v6035_v1 }
 0x121   : > { %5713 = vmatpush3.bf16.msra.mxu0 %v6034_v53 }
 0x122   : > { %5714 = vmatprep.subr.bf16.mxu0 %v6036_v63 }
 0x123   : > { %5499 = vmatpush3.bf16.msra.mxu1 %v6035_v1 }
 0x125   : > { %5715 = vmatpush3.bf16.msra.mxu0 %v6036_v63 }
 0x126   : > { %5501 = vmatmul.mubr.bf16.vlgmr.msra.gmra.mrb[0].mxu1 %v4675_v2 }
 0x127   : > { %5504 = vmatprep.mubr.bf16.mxu1 %v4676_v47 }
 0x128   : > { %5717 = vmatmul.mubr.bf16.vlgmr.msra.gmra.mrb[0].mxu0 %v5023_v32 }
 0x129   : > { %5720 = vmatprep.mubr.bf16.mxu0 %v5024_v48 }
 0x12e   : > { %5505 = vmatmul.mubr.bf16.gmra.mrb[4].mxu1 %v4677_v35 }
 0x130   : > { %5721 = vmatmul.mubr.bf16.gmra.mrb[4].mxu0 %v5025_v19 }
 0x1f9   : > { %v5502_v5 = vpop.f32.mrb[0].mxu1 }
 0x1fa   : > { %v2303_v13 = vpop.f32.mrb[1].mxu1 }
 0x1fb   : > { %v5503_v16 = vpop.f32.mrb[2].mxu1  ;;  %v5718_v33 = vpop.f32.mrb[0].mxu0 }
 0x1fc   : > { %v2306_v21 = vpop.f32.mrb[3].mxu1  ;;  %v5724_v15 = vadd.f32 %v5718_v33, %v5502_v5  ;;  %v4146_v60 = vpop.f32.mrb[1].mxu0 }
 0x1fd   : > { %v5725_v32 = vadd.f32 %v4146_v60, %v2303_v13  ;;  %v5719_v10 = vpop.f32.mrb[2].mxu0 }
 0x1fe   : > { %v5726_v52 = vadd.f32 %v5719_v10, %v5503_v16  ;;  %v4149_v43 = vpop.f32.mrb[3].mxu0  ;;  %v4194_v29 = vadd.f32 %v5724_v15, %v5034_v57 }
 0x1ff   : > { %v4192_v48 = vadd.f32 %v5725_v32, %v5034_v57  ;;  %v5727_v59 = vadd.f32 %v4149_v43, %v2306_v21 }
 0x200   : > { %v4195_v6 = vadd.f32 %v5726_v52, %v5034_v57  ;;  %v4255_v20 = vmul.f32 %v4194_v29, %v4194_v29 }
 0x201   : > { %v5506_v54 = vpop.f32.mrb[4].mxu1  ;;  %v4193_v24 = vadd.f32 %v5727_v59, %v5034_v57  ;;  %v4253_v14 = vmul.f32 %v4192_v48, %v4192_v48 }
 0x202   : > { %v2319_v22 = vpop.f32.mrb[5].mxu1  ;;  %v5061_v11 = vpack.c.bf16 %v4195_v6, %v4194_v29  ;;  %v4256_v41 = vmul.f32 %v4195_v6, %v4195_v6 }
 0x203   : > { %v5507_v4 = vpop.f32.mrb[6].mxu1  ;;  %v5056_v27 = vpack.c.bf16 %v4193_v24, %v4192_v48  ;;  %v4240_v28 = vadd.f32 %v4193_v24, %v4192_v48  ;;  %v4254_v51 = vmul.f32 %v4193_v24, %v4193_v24  ;;  %v5722_v31 = vpop.f32.mrb[4].mxu0 }
 0x204   : > { %v2322_v23 = vpop.f32.mrb[7].mxu1  ;;  %5073 = vst [vmem:[%s7164_s10 + $0x8] sm:$0xff] %v5061_v11   ;;  %v5728_v40 = vadd.f32 %v5722_v31, %v5506_v54  ;;  %v4162_v17 = vpop.f32.mrb[5].mxu0 }
 0x205   : > { %5057 = vst [vmem:[%s7164_s10] sm:$0xff] %v5056_v27   ;;  %v4241_v37 = vadd.f32 %v4240_v28, %v4194_v29  ;;  %v4261_v44 = vadd.f32 %v4254_v51, %v4253_v14  ;;  %v5729_v38 = vadd.f32 %v4162_v17, %v2319_v22  ;;  %v5723_v19 = vpop.f32.mrb[6].mxu0 }
 0x206   : > { %v5730_v50 = vadd.f32 %v5723_v19, %v5507_v4  ;;  %v4165_v34 = vpop.f32.mrb[7].mxu0  ;;  %v4198_v56 = vadd.f32 %v5728_v40, %v5034_v57 }
 0x207   : > { %v4262_v30 = vadd.f32 %v4261_v44, %v4255_v20  ;;  %v4196_v53 = vadd.f32 %v5729_v38, %v5034_v57  ;;  %v4242_v1 = vadd.f32 %v4241_v37, %v4195_v6  ;;  %v5731_v3 = vadd.f32 %v4165_v34, %v2322_v23 }
 0x208   : > { %v4199_v18 = vadd.f32 %v5730_v50, %v5034_v57  ;;  %v4259_v63 = vmul.f32 %v4198_v56, %v4198_v56 }
 0x209   : > { %v4243_v42 = vadd.f32 %v4242_v1, %v4196_v53  ;;  %v4257_v25 = vmul.f32 %v4196_v53, %v4196_v53  ;;  %v4263_v12 = vadd.f32 %v4262_v30, %v4256_v41  ;;  %v4197_v0 = vadd.f32 %v5731_v3, %v5034_v57 }
 0x20a   : > { %v5071_v36 = vpack.c.bf16 %v4199_v18, %v4198_v56  ;;  %v4260_v2 = vmul.f32 %v4199_v18, %v4199_v18 }
 0x20b   : > { %v4264_v8 = vadd.f32 %v4263_v12, %v4257_v25  ;;  %v5066_v58 = vpack.c.bf16 %v4197_v0, %v4196_v53  ;;  %v4244_v61 = vadd.f32 %v4243_v42, %v4197_v0  ;;  %v4258_v62 = vmul.f32 %v4197_v0, %v4197_v0 }
 0x20c   : > { %5075 = vst [vmem:[%s7164_s10 + $0x18] sm:$0xff] %v5071_v36  }
 0x20d   : > { %5074 = vst [vmem:[%s7164_s10 + $0x10] sm:$0xff] %v5066_v58   ;;  %v4245_v49 = vadd.f32 %v4244_v61, %v4198_v56  ;;  %v4265_v39 = vadd.f32 %v4264_v8, %v4258_v62 }
 0x20f   : > { %v4246_v45 = vadd.f32 %v4245_v49, %v4199_v18  ;;  %v4266_v47 = vadd.f32 %v4265_v39, %v4259_v63 }
 0x211   : > { %v4247_v46 = vrot.slane %v4246_v45, 4  ;;  %v4267_v55 = vadd.f32 %v4266_v47, %v4260_v2 }
 0x213   : > { %v4248_v26 = vadd.f32 %v4247_v46, %v4246_v45  ;;  %v4268_v7 = vrot.slane %v4267_v55, 4 }
 0x215   : > { %v4249_v9 = vrot.slane %v4248_v26, 2  ;;  %v4269_v35 = vadd.f32 %v4268_v7, %v4267_v55 }
 0x217   : > { %v4250_v5 = vadd.f32 %v4249_v9, %v4248_v26  ;;  %v4270_v13 = vrot.slane %v4269_v35, 2 }
 0x219   : > { %v4251_v16 = vrot.slane %v4250_v5, 1  ;;  %v4271_v21 = vadd.f32 %v4270_v13, %v4269_v35 }
 0x21b   : > { %v4272_v33 = vrot.slane %v4271_v21, 1  ;;  %v4252_v15 = vadd.f32 %v4251_v16, %v4250_v5 }
 0x21d   : > { %v4273_v57 = vadd.f32 %v4272_v33, %v4271_v21 }
 0x21f   : > { %v4275_v60 = vsel %vm4274_vm6, %v4252_v15, %v4273_v57 }
 0x220   : > { %4276 = vst [vmem:[%s283_s15] sm:$0x3] %v4275_v60 }
 0x221 PF: > { %s17_s21 = sadd.s32 1, %s6051_s21  }
 0x222   : > { %p14_p5 = scmp.ge.s32.totalorder %s17_s21, 4  }
 0x224   :  { %16 = sbr.rel (!%p14_p5) target bundleno = 1 (0x1), region = 105 }

</bundles_post_ra>
